<compile_context>
chip_gen: v6e
topology: v6e:2x2x1
jax: 0.10.0
libtpu: 0.0.40
codegen_flags: <defaults>
</compile_context>

<pallas_src>
import jax
import jax.numpy as jnp
from jax.experimental import pallas as pl
from jax.experimental.pallas import tpu as pltpu

_BN_EPS = 1e-5


# ------------------------------ Pallas kernel -------------------------------


def _make_parnet_kernel(H, W, C):
    Wp = W + 2           # padded width
    Mp = H * Wp          # matmul M dim (padded-width rows, incl. 2 garbage/row)

    def kernel(x_ref, wcat_ref, bias_ref, wsse_ref, bsse_ref, o_ref,
               xpad_ref, patches_ref, acc_ref):
        """Fused (conv3x3+BN) + (conv1x1+BN folded) + SSE gate + SiLU, 1 image.

        x_ref:       (1, H*W, C)        f32 flat NHWC image
        wcat_ref:    (9*C, C)           bf16 folded conv weights (im2col layout)
        bias_ref:    (1, C)             f32 combined folded bias (b3 + b1)
        wsse_ref:    (C, C)             f32 SSE 1x1 weight (Cin, Cout)
        bsse_ref:    (1, C)             f32 SSE bias
        o_ref:       (1, H*W, C)
        xpad_ref:    ((H+2)*Wp+2, C)    f32 zero-padded flat image (+2 slack rows)
        patches_ref: (Mp, 9*C)          bf16 im2col buffer
        acc_ref:     (Mp, C)            f32 conv accumulator
        """
        # 1) Zero-pad the image into VMEM (no host jnp.pad / extra HBM pass).
        #    Fuse the SSE global-sum into the same single pass over x.
        xpad_ref[...] = jnp.zeros_like(xpad_ref)
        ssum = jnp.zeros((1, C), jnp.float32)
        for h in range(H):
            row = x_ref[0, pl.ds(h * W, W), :]
            xpad_ref[pl.ds((h + 1) * Wp + 1, W), :] = row
            ssum = ssum + jnp.sum(row.astype(jnp.float32), axis=0,
                                  keepdims=True)

        # 2) SSE gate, fused in-kernel: avg-pool -> 1x1 conv -> sigmoid.
        avg = ssum * (1.0 / (H * W))                               # (1, C)
        gate = jax.nn.sigmoid(
            jnp.dot(avg, wsse_ref[...], preferred_element_type=jnp.float32)
            + bsse_ref[...])                                       # (1, C)

        # 3) im2col via contiguous flat slices (padded-width trick): every tap
        #    is one lane-dense pl.ds slice -> no strided slice+reshape relayout.
        for dy in range(3):
            for dx in range(3):
                k = dy * 3 + dx
                patches_ref[:, k * C:(k + 1) * C] = (
                    xpad_ref[pl.ds(dy * Wp + dx, Mp), :].astype(jnp.bfloat16))

        # 4) Single MXU matmul: K = 9*C, bf16 operands, f32 accumulation.
        acc_ref[...] = jnp.dot(patches_ref[...], wcat_ref[...],
                               preferred_element_type=jnp.float32)

        # 5) f32 epilogue: folded bias + SSE-gated skip + SiLU. Crop the two
        #    garbage padded-width columns per row while storing (lane-dense,
        #    sublane-aligned output stores).
        bias = bias_ref[...]
        for h in range(H):
            a = acc_ref[pl.ds(h * Wp, W), :]                       # valid rows
            xr = x_ref[0, pl.ds(h * W, W), :].astype(jnp.float32)  # skip term
            y = a + bias + gate * xr
            y = y * jax.nn.sigmoid(y)
            o_ref[0, pl.ds(h * W, W), :] = y.astype(o_ref.dtype)

    return kernel


# ------------------------------- host wrapper --------------------------------


def parnet_attention(x_nhwc, params):
    """x_nhwc: (B, H, W, C) float32. params: folded params (see fold_params)."""
    wcat, bias, wsse, bsse = params
    B, H, W, C = x_nhwc.shape
    assert C % 128 == 0, "channel axis must be lane-dense (multiple of 128)"
    HW = H * W
    Wp = W + 2
    Mp = H * Wp

    x_flat = x_nhwc.reshape(B, HW, C)          # free relayout (contiguous)
    kernel = _make_parnet_kernel(H, W, C)

    out = pl.pallas_call(
        kernel,
        out_shape=jax.ShapeDtypeStruct((B, HW, C), x_nhwc.dtype),
        grid_spec=pltpu.PrefetchScalarGridSpec(
            num_scalar_prefetch=0,
            grid=(B,),
            in_specs=[
                pl.BlockSpec((1, HW, C), lambda b: (b, 0, 0)),    # x
                pl.BlockSpec((9 * C, C), lambda b: (0, 0)),       # wcat
                pl.BlockSpec((1, C), lambda b: (0, 0)),           # bias
                pl.BlockSpec((C, C), lambda b: (0, 0)),           # wsse
                pl.BlockSpec((1, C), lambda b: (0, 0)),           # bsse
            ],
            out_specs=pl.BlockSpec((1, HW, C), lambda b: (b, 0, 0)),
            scratch_shapes=[
                pltpu.VMEM(((H + 2) * Wp + 2, C), jnp.float32),   # xpad
                pltpu.VMEM((Mp, 9 * C), jnp.bfloat16),            # patches
                pltpu.VMEM((Mp, C), jnp.float32),                 # acc
            ],
        ),
        compiler_params=pltpu.CompilerParams(
            dimension_semantics=("parallel",)),
    )(x_flat, wcat, bias, wsse, bsse)

    return out.reshape(B, H, W, C)


# ------------------------- parameters & reference ---------------------------


def init_raw_params(key, C):
    """Deterministic parameters matching the PyTorch module's tensor shapes."""
    ks = jax.random.split(key, 14)
    sc = 0.1
    raw = {
        # conv1x1: weight (Cout, Cin), bias (Cout,)
        "w1": jax.random.normal(ks[0], (C, C), jnp.float32) * sc,
        "b1": jax.random.normal(ks[1], (C,), jnp.float32) * sc,
        # conv3x3: weight (Cout, Cin, 3, 3), bias (Cout,)
        "w3": jax.random.normal(ks[2], (C, C, 3, 3), jnp.float32) * sc,
        "b3": jax.random.normal(ks[3], (C,), jnp.float32) * sc,
        # sse conv1x1
        "wsse": jax.random.normal(ks[4], (C, C), jnp.float32) * sc,
        "bsse": jax.random.normal(ks[5], (C,), jnp.float32) * sc,
        # BatchNorm affine + running stats (inference form)
        "g1": 1.0 + 0.1 * jax.random.normal(ks[6], (C,), jnp.float32),
        "be1": 0.1 * jax.random.normal(ks[7], (C,), jnp.float32),
        "m1": 0.1 * jax.random.normal(ks[8], (C,), jnp.float32),
        "v1": 1.0 + 0.1 * jnp.abs(jax.random.normal(ks[9], (C,), jnp.float32)),
        "g3": 1.0 + 0.1 * jax.random.normal(ks[10], (C,), jnp.float32),
        "be3": 0.1 * jax.random.normal(ks[11], (C,), jnp.float32),
        "m3": 0.1 * jax.random.normal(ks[12], (C,), jnp.float32),
        "v3": 1.0 + 0.1 * jnp.abs(jax.random.normal(ks[13], (C,), jnp.float32)),
    }
    # TODO(synk): PyTorch's default-constructed BatchNorm runs in training mode
    # (batch statistics); here we use the standard eval()/inference-mode folding
    # with running stats, as is usual for fused inference kernels.
    return raw


def fold_params(raw):
    """Fold BN into the convs, fold the 1x1 conv into the 3x3 center tap, and
    lay the 3x3 weights out as a single (9*C, C) bf16 im2col matrix."""
    C = raw["w1"].shape[0]
    s1 = raw["g1"] / jnp.sqrt(raw["v1"] + _BN_EPS)
    s3 = raw["g3"] / jnp.sqrt(raw["v3"] + _BN_EPS)

    w1 = (raw["w1"] * s1[:, None]).T                           # (Cin, Cout)
    b1 = (raw["b1"] - raw["m1"]) * s1 + raw["be1"]             # (Cout,)
    w3 = jnp.transpose(raw["w3"] * s3[:, None, None, None],
                       (2, 3, 1, 0))                           # (3,3,Cin,Cout)
    b3 = (raw["b3"] - raw["m3"]) * s3 + raw["be3"]

    w3 = w3.at[1, 1].add(w1)                                   # 1x1 -> center tap
    bias = (b1 + b3)[None, :].astype(jnp.float32)              # (1, C)
    wcat = w3.reshape(9 * C, C).astype(jnp.bfloat16)           # (9C, C)

    wsse = raw["wsse"].T.astype(jnp.float32)                   # (Cin, Cout)
    bsse = raw["bsse"][None, :].astype(jnp.float32)
    return wcat, bias, wsse, bsse


def ref_forward(x_nhwc, raw):
    """Pure-JAX f32 reference of the module's forward (inference-mode BN)."""
    B, H, W, C = x_nhwc.shape

    def bn(x, g, be, m, v):
        return (x - m) * (g / jnp.sqrt(v + _BN_EPS)) + be

    x1 = jnp.einsum("bhwc,oc->bhwo", x_nhwc, raw["w1"]) + raw["b1"]
    x1 = bn(x1, raw["g1"], raw["be1"], raw["m1"], raw["v1"])

    xp = jnp.pad(x_nhwc, ((0, 0), (1, 1), (1, 1), (0, 0)))
    x2 = jnp.zeros((B, H, W, C), jnp.float32) + raw["b3"]
    for dy in range(3):
        for dx in range(3):
            x2 = x2 + jnp.einsum("bhwc,oc->bhwo",
                                 xp[:, dy:dy + H, dx:dx + W, :],
                                 raw["w3"][:, :, dy, dx])
    x2 = bn(x2, raw["g3"], raw["be3"], raw["m3"], raw["v3"])

    avg = jnp.mean(x_nhwc, axis=(1, 2))                        # (B, C)
    gate = jax.nn.sigmoid(jnp.einsum("bc,oc->bo", avg, raw["wsse"])
                          + raw["bsse"])
    x3 = x_nhwc * gate[:, None, None, :]

    y = x1 + x2 + x3
    return y * jax.nn.sigmoid(y)


if __name__ == "__main__":
    B, C, H, W = 2, 128, 16, 16     # small, but C is lane-dense (multiple of 128)
    key = jax.random.PRNGKey(0)
    kx, kp = jax.random.split(key)

    # PyTorch-convention input (NCHW) -> kernel layout (NHWC)
    x_nchw = jax.random.normal(kx, (B, C, H, W), jnp.float32)
    x_nhwc = jnp.transpose(x_nchw, (0, 2, 3, 1))

    raw = init_raw_params(kp, C)
    params = fold_params(raw)

    out = parnet_attention(x_nhwc, params)
    out = jax.block_until_ready(out)

    ref = ref_forward(x_nhwc, raw)
    max_err = float(jnp.max(jnp.abs(out - ref)))
    scale = float(jnp.max(jnp.abs(ref))) + 1e-6
    assert out.shape == (B, H, W, C)
    assert max_err / scale < 2e-2, (
        f"mismatch vs f32 reference: max_err={max_err}, rel={max_err / scale}")

    # back to NCHW to match the PyTorch output convention (glue only)
    _ = jnp.transpose(out, (0, 3, 1, 2))
    print("KERNEL_OK")
</pallas_src>

<mosaic_0001>
module attributes {stable_mosaic.version = 11 : i64} {
  func.func @kernel(%arg0: i32, %arg1: memref<1x256x128xf32, #tpu.memory_space<vmem>>, %arg2: memref<1152x128xbf16, #tpu.memory_space<vmem>>, %arg3: memref<1x128xf32, #tpu.memory_space<vmem>>, %arg4: memref<128x128xf32, #tpu.memory_space<vmem>>, %arg5: memref<1x128xf32, #tpu.memory_space<vmem>>, %arg6: memref<1x256x128xf32, #tpu.memory_space<vmem>>, %arg7: memref<326x128xf32, #tpu.memory_space<vmem>>, %arg8: memref<288x1152xbf16, #tpu.memory_space<vmem>>, %arg9: memref<288x128xf32, #tpu.memory_space<vmem>>) attributes {dimension_semantics = [#tpu.dimension_semantics<parallel>], iteration_bounds = array<i64: 2>, scalar_prefetch = 0 : i64, scratch_operands = 3 : i64, tpu.core_type = #tpu.core_type<tc>, window_params = [{transform_indices = @transform_0, window_bounds = array<i64: 1, 256, 128>}, {pipeline_mode = #tpu.pipeline_mode<synchronous>, transform_indices = @transform_1, window_bounds = array<i64: 1152, 128>}, {pipeline_mode = #tpu.pipeline_mode<synchronous>, transform_indices = @transform_2, window_bounds = array<i64: 1, 128>}, {pipeline_mode = #tpu.pipeline_mode<synchronous>, transform_indices = @transform_3, window_bounds = array<i64: 128, 128>}, {pipeline_mode = #tpu.pipeline_mode<synchronous>, transform_indices = @transform_4, window_bounds = array<i64: 1, 128>}, {transform_indices = @transform_5, window_bounds = array<i64: 1, 256, 128>}]} {
    %cst = arith.constant 0.000000e+00 : f32
    %0 = vector.broadcast %cst : f32 to vector<326x128xf32>
    %c0 = arith.constant 0 : index
    %c0_0 = arith.constant 0 : index
    %1 = vector.load %arg7[%c0, %c0_0] : memref<326x128xf32, #tpu.memory_space<vmem>>, vector<326x128xf32>
    tpu.vector_store %arg7[%c0, %c0_0], %0 {strides = array<i32>} : memref<326x128xf32, #tpu.memory_space<vmem>>, vector<326x128xf32>,
    %cst_1 = arith.constant 0.000000e+00 : f32
    %2 = vector.broadcast %cst_1 : f32 to vector<1x128xf32>
    %c0_2 = arith.constant 0 : index
    %c0_3 = arith.constant 0 : index
    %c0_4 = arith.constant 0 : index
    %3 = vector.load %arg1[%c0_2, %c0_3, %c0_4] : memref<1x256x128xf32, #tpu.memory_space<vmem>>, vector<1x16x128xf32>
    %4 = vector.shape_cast %3 : vector<1x16x128xf32> to vector<16x128xf32>
    %c19 = arith.constant 19 : index
    %c0_5 = arith.constant 0 : index
    %5 = vector.load %arg7[%c19, %c0_5] : memref<326x128xf32, #tpu.memory_space<vmem>>, vector<16x128xf32>
    tpu.vector_store %arg7[%c19, %c0_5], %4 {strides = array<i32>} : memref<326x128xf32, #tpu.memory_space<vmem>>, vector<16x128xf32>,
    %cst_6 = arith.constant dense<0.000000e+00> : vector<128xf32>
    %6 = vector.multi_reduction <add>, %4, %cst_6 [0] : vector<16x128xf32> to vector<128xf32>
    %7 = vector.shape_cast %6 : vector<128xf32> to vector<1x128xf32>
    %8 = arith.addf %2, %7 : vector<1x128xf32>
    %c0_7 = arith.constant 0 : index
    %c16 = arith.constant 16 : index
    %c0_8 = arith.constant 0 : index
    %9 = vector.load %arg1[%c0_7, %c16, %c0_8] : memref<1x256x128xf32, #tpu.memory_space<vmem>>, vector<1x16x128xf32>
    %10 = vector.shape_cast %9 : vector<1x16x128xf32> to vector<16x128xf32>
    %c37 = arith.constant 37 : index
    %c0_9 = arith.constant 0 : index
    %11 = vector.load %arg7[%c37, %c0_9] : memref<326x128xf32, #tpu.memory_space<vmem>>, vector<16x128xf32>
    tpu.vector_store %arg7[%c37, %c0_9], %10 {strides = array<i32>} : memref<326x128xf32, #tpu.memory_space<vmem>>, vector<16x128xf32>,
    %cst_10 = arith.constant dense<0.000000e+00> : vector<128xf32>
    %12 = vector.multi_reduction <add>, %10, %cst_10 [0] : vector<16x128xf32> to vector<128xf32>
    %13 = vector.shape_cast %12 : vector<128xf32> to vector<1x128xf32>
    %14 = arith.addf %8, %13 : vector<1x128xf32>
    %c0_11 = arith.constant 0 : index
    %c32 = arith.constant 32 : index
    %c0_12 = arith.constant 0 : index
    %15 = vector.load %arg1[%c0_11, %c32, %c0_12] : memref<1x256x128xf32, #tpu.memory_space<vmem>>, vector<1x16x128xf32>
    %16 = vector.shape_cast %15 : vector<1x16x128xf32> to vector<16x128xf32>
    %c55 = arith.constant 55 : index
    %c0_13 = arith.constant 0 : index
    %17 = vector.load %arg7[%c55, %c0_13] : memref<326x128xf32, #tpu.memory_space<vmem>>, vector<16x128xf32>
    tpu.vector_store %arg7[%c55, %c0_13], %16 {strides = array<i32>} : memref<326x128xf32, #tpu.memory_space<vmem>>, vector<16x128xf32>,
    %cst_14 = arith.constant dense<0.000000e+00> : vector<128xf32>
    %18 = vector.multi_reduction <add>, %16, %cst_14 [0] : vector<16x128xf32> to vector<128xf32>
    %19 = vector.shape_cast %18 : vector<128xf32> to vector<1x128xf32>
    %20 = arith.addf %14, %19 : vector<1x128xf32>
    %c0_15 = arith.constant 0 : index
    %c48 = arith.constant 48 : index
    %c0_16 = arith.constant 0 : index
    %21 = vector.load %arg1[%c0_15, %c48, %c0_16] : memref<1x256x128xf32, #tpu.memory_space<vmem>>, vector<1x16x128xf32>
    %22 = vector.shape_cast %21 : vector<1x16x128xf32> to vector<16x128xf32>
    %c73 = arith.constant 73 : index
    %c0_17 = arith.constant 0 : index
    %23 = vector.load %arg7[%c73, %c0_17] : memref<326x128xf32, #tpu.memory_space<vmem>>, vector<16x128xf32>
    tpu.vector_store %arg7[%c73, %c0_17], %22 {strides = array<i32>} : memref<326x128xf32, #tpu.memory_space<vmem>>, vector<16x128xf32>,
    %cst_18 = arith.constant dense<0.000000e+00> : vector<128xf32>
    %24 = vector.multi_reduction <add>, %22, %cst_18 [0] : vector<16x128xf32> to vector<128xf32>
    %25 = vector.shape_cast %24 : vector<128xf32> to vector<1x128xf32>
    %26 = arith.addf %20, %25 : vector<1x128xf32>
    %c0_19 = arith.constant 0 : index
    %c64 = arith.constant 64 : index
    %c0_20 = arith.constant 0 : index
    %27 = vector.load %arg1[%c0_19, %c64, %c0_20] : memref<1x256x128xf32, #tpu.memory_space<vmem>>, vector<1x16x128xf32>
    %28 = vector.shape_cast %27 : vector<1x16x128xf32> to vector<16x128xf32>
    %c91 = arith.constant 91 : index
    %c0_21 = arith.constant 0 : index
    %29 = vector.load %arg7[%c91, %c0_21] : memref<326x128xf32, #tpu.memory_space<vmem>>, vector<16x128xf32>
    tpu.vector_store %arg7[%c91, %c0_21], %28 {strides = array<i32>} : memref<326x128xf32, #tpu.memory_space<vmem>>, vector<16x128xf32>,
    %cst_22 = arith.constant dense<0.000000e+00> : vector<128xf32>
    %30 = vector.multi_reduction <add>, %28, %cst_22 [0] : vector<16x128xf32> to vector<128xf32>
    %31 = vector.shape_cast %30 : vector<128xf32> to vector<1x128xf32>
    %32 = arith.addf %26, %31 : vector<1x128xf32>
    %c0_23 = arith.constant 0 : index
    %c80 = arith.constant 80 : index
    %c0_24 = arith.constant 0 : index
    %33 = vector.load %arg1[%c0_23, %c80, %c0_24] : memref<1x256x128xf32, #tpu.memory_space<vmem>>, vector<1x16x128xf32>
    %34 = vector.shape_cast %33 : vector<1x16x128xf32> to vector<16x128xf32>
    %c109 = arith.constant 109 : index
    %c0_25 = arith.constant 0 : index
    %35 = vector.load %arg7[%c109, %c0_25] : memref<326x128xf32, #tpu.memory_space<vmem>>, vector<16x128xf32>
    tpu.vector_store %arg7[%c109, %c0_25], %34 {strides = array<i32>} : memref<326x128xf32, #tpu.memory_space<vmem>>, vector<16x128xf32>,
    %cst_26 = arith.constant dense<0.000000e+00> : vector<128xf32>
    %36 = vector.multi_reduction <add>, %34, %cst_26 [0] : vector<16x128xf32> to vector<128xf32>
    %37 = vector.shape_cast %36 : vector<128xf32> to vector<1x128xf32>
    %38 = arith.addf %32, %37 : vector<1x128xf32>
    %c0_27 = arith.constant 0 : index
    %c96 = arith.constant 96 : index
    %c0_28 = arith.constant 0 : index
    %39 = vector.load %arg1[%c0_27, %c96, %c0_28] : memref<1x256x128xf32, #tpu.memory_space<vmem>>, vector<1x16x128xf32>
    %40 = vector.shape_cast %39 : vector<1x16x128xf32> to vector<16x128xf32>
    %c127 = arith.constant 127 : index
    %c0_29 = arith.constant 0 : index
    %41 = vector.load %arg7[%c127, %c0_29] : memref<326x128xf32, #tpu.memory_space<vmem>>, vector<16x128xf32>
    tpu.vector_store %arg7[%c127, %c0_29], %40 {strides = array<i32>} : memref<326x128xf32, #tpu.memory_space<vmem>>, vector<16x128xf32>,
    %cst_30 = arith.constant dense<0.000000e+00> : vector<128xf32>
    %42 = vector.multi_reduction <add>, %40, %cst_30 [0] : vector<16x128xf32> to vector<128xf32>
    %43 = vector.shape_cast %42 : vector<128xf32> to vector<1x128xf32>
    %44 = arith.addf %38, %43 : vector<1x128xf32>
    %c0_31 = arith.constant 0 : index
    %c112 = arith.constant 112 : index
    %c0_32 = arith.constant 0 : index
    %45 = vector.load %arg1[%c0_31, %c112, %c0_32] : memref<1x256x128xf32, #tpu.memory_space<vmem>>, vector<1x16x128xf32>
    %46 = vector.shape_cast %45 : vector<1x16x128xf32> to vector<16x128xf32>
    %c145 = arith.constant 145 : index
    %c0_33 = arith.constant 0 : index
    %47 = vector.load %arg7[%c145, %c0_33] : memref<326x128xf32, #tpu.memory_space<vmem>>, vector<16x128xf32>
    tpu.vector_store %arg7[%c145, %c0_33], %46 {strides = array<i32>} : memref<326x128xf32, #tpu.memory_space<vmem>>, vector<16x128xf32>,
    %cst_34 = arith.constant dense<0.000000e+00> : vector<128xf32>
    %48 = vector.multi_reduction <add>, %46, %cst_34 [0] : vector<16x128xf32> to vector<128xf32>
    %49 = vector.shape_cast %48 : vector<128xf32> to vector<1x128xf32>
    %50 = arith.addf %44, %49 : vector<1x128xf32>
    %c0_35 = arith.constant 0 : index
    %c128 = arith.constant 128 : index
    %c0_36 = arith.constant 0 : index
    %51 = vector.load %arg1[%c0_35, %c128, %c0_36] : memref<1x256x128xf32, #tpu.memory_space<vmem>>, vector<1x16x128xf32>
    %52 = vector.shape_cast %51 : vector<1x16x128xf32> to vector<16x128xf32>
    %c163 = arith.constant 163 : index
    %c0_37 = arith.constant 0 : index
    %53 = vector.load %arg7[%c163, %c0_37] : memref<326x128xf32, #tpu.memory_space<vmem>>, vector<16x128xf32>
    tpu.vector_store %arg7[%c163, %c0_37], %52 {strides = array<i32>} : memref<326x128xf32, #tpu.memory_space<vmem>>, vector<16x128xf32>,
    %cst_38 = arith.constant dense<0.000000e+00> : vector<128xf32>
    %54 = vector.multi_reduction <add>, %52, %cst_38 [0] : vector<16x128xf32> to vector<128xf32>
    %55 = vector.shape_cast %54 : vector<128xf32> to vector<1x128xf32>
    %56 = arith.addf %50, %55 : vector<1x128xf32>
    %c0_39 = arith.constant 0 : index
    %c144 = arith.constant 144 : index
    %c0_40 = arith.constant 0 : index
    %57 = vector.load %arg1[%c0_39, %c144, %c0_40] : memref<1x256x128xf32, #tpu.memory_space<vmem>>, vector<1x16x128xf32>
    %58 = vector.shape_cast %57 : vector<1x16x128xf32> to vector<16x128xf32>
    %c181 = arith.constant 181 : index
    %c0_41 = arith.constant 0 : index
    %59 = vector.load %arg7[%c181, %c0_41] : memref<326x128xf32, #tpu.memory_space<vmem>>, vector<16x128xf32>
    tpu.vector_store %arg7[%c181, %c0_41], %58 {strides = array<i32>} : memref<326x128xf32, #tpu.memory_space<vmem>>, vector<16x128xf32>,
    %cst_42 = arith.constant dense<0.000000e+00> : vector<128xf32>
    %60 = vector.multi_reduction <add>, %58, %cst_42 [0] : vector<16x128xf32> to vector<128xf32>
    %61 = vector.shape_cast %60 : vector<128xf32> to vector<1x128xf32>
    %62 = arith.addf %56, %61 : vector<1x128xf32>
    %c0_43 = arith.constant 0 : index
    %c160 = arith.constant 160 : index
    %c0_44 = arith.constant 0 : index
    %63 = vector.load %arg1[%c0_43, %c160, %c0_44] : memref<1x256x128xf32, #tpu.memory_space<vmem>>, vector<1x16x128xf32>
    %64 = vector.shape_cast %63 : vector<1x16x128xf32> to vector<16x128xf32>
    %c199 = arith.constant 199 : index
    %c0_45 = arith.constant 0 : index
    %65 = vector.load %arg7[%c199, %c0_45] : memref<326x128xf32, #tpu.memory_space<vmem>>, vector<16x128xf32>
    tpu.vector_store %arg7[%c199, %c0_45], %64 {strides = array<i32>} : memref<326x128xf32, #tpu.memory_space<vmem>>, vector<16x128xf32>,
    %cst_46 = arith.constant dense<0.000000e+00> : vector<128xf32>
    %66 = vector.multi_reduction <add>, %64, %cst_46 [0] : vector<16x128xf32> to vector<128xf32>
    %67 = vector.shape_cast %66 : vector<128xf32> to vector<1x128xf32>
    %68 = arith.addf %62, %67 : vector<1x128xf32>
    %c0_47 = arith.constant 0 : index
    %c176 = arith.constant 176 : index
    %c0_48 = arith.constant 0 : index
    %69 = vector.load %arg1[%c0_47, %c176, %c0_48] : memref<1x256x128xf32, #tpu.memory_space<vmem>>, vector<1x16x128xf32>
    %70 = vector.shape_cast %69 : vector<1x16x128xf32> to vector<16x128xf32>
    %c217 = arith.constant 217 : index
    %c0_49 = arith.constant 0 : index
    %71 = vector.load %arg7[%c217, %c0_49] : memref<326x128xf32, #tpu.memory_space<vmem>>, vector<16x128xf32>
    tpu.vector_store %arg7[%c217, %c0_49], %70 {strides = array<i32>} : memref<326x128xf32, #tpu.memory_space<vmem>>, vector<16x128xf32>,
    %cst_50 = arith.constant dense<0.000000e+00> : vector<128xf32>
    %72 = vector.multi_reduction <add>, %70, %cst_50 [0] : vector<16x128xf32> to vector<128xf32>
    %73 = vector.shape_cast %72 : vector<128xf32> to vector<1x128xf32>
    %74 = arith.addf %68, %73 : vector<1x128xf32>
    %c0_51 = arith.constant 0 : index
    %c192 = arith.constant 192 : index
    %c0_52 = arith.constant 0 : index
    %75 = vector.load %arg1[%c0_51, %c192, %c0_52] : memref<1x256x128xf32, #tpu.memory_space<vmem>>, vector<1x16x128xf32>
    %76 = vector.shape_cast %75 : vector<1x16x128xf32> to vector<16x128xf32>
    %c235 = arith.constant 235 : index
    %c0_53 = arith.constant 0 : index
    %77 = vector.load %arg7[%c235, %c0_53] : memref<326x128xf32, #tpu.memory_space<vmem>>, vector<16x128xf32>
    tpu.vector_store %arg7[%c235, %c0_53], %76 {strides = array<i32>} : memref<326x128xf32, #tpu.memory_space<vmem>>, vector<16x128xf32>,
    %cst_54 = arith.constant dense<0.000000e+00> : vector<128xf32>
    %78 = vector.multi_reduction <add>, %76, %cst_54 [0] : vector<16x128xf32> to vector<128xf32>
    %79 = vector.shape_cast %78 : vector<128xf32> to vector<1x128xf32>
    %80 = arith.addf %74, %79 : vector<1x128xf32>
    %c0_55 = arith.constant 0 : index
    %c208 = arith.constant 208 : index
    %c0_56 = arith.constant 0 : index
    %81 = vector.load %arg1[%c0_55, %c208, %c0_56] : memref<1x256x128xf32, #tpu.memory_space<vmem>>, vector<1x16x128xf32>
    %82 = vector.shape_cast %81 : vector<1x16x128xf32> to vector<16x128xf32>
    %c253 = arith.constant 253 : index
    %c0_57 = arith.constant 0 : index
    %83 = vector.load %arg7[%c253, %c0_57] : memref<326x128xf32, #tpu.memory_space<vmem>>, vector<16x128xf32>
    tpu.vector_store %arg7[%c253, %c0_57], %82 {strides = array<i32>} : memref<326x128xf32, #tpu.memory_space<vmem>>, vector<16x128xf32>,
    %cst_58 = arith.constant dense<0.000000e+00> : vector<128xf32>
    %84 = vector.multi_reduction <add>, %82, %cst_58 [0] : vector<16x128xf32> to vector<128xf32>
    %85 = vector.shape_cast %84 : vector<128xf32> to vector<1x128xf32>
    %86 = arith.addf %80, %85 : vector<1x128xf32>
    %c0_59 = arith.constant 0 : index
    %c224 = arith.constant 224 : index
    %c0_60 = arith.constant 0 : index
    %87 = vector.load %arg1[%c0_59, %c224, %c0_60] : memref<1x256x128xf32, #tpu.memory_space<vmem>>, vector<1x16x128xf32>
    %88 = vector.shape_cast %87 : vector<1x16x128xf32> to vector<16x128xf32>
    %c271 = arith.constant 271 : index
    %c0_61 = arith.constant 0 : index
    %89 = vector.load %arg7[%c271, %c0_61] : memref<326x128xf32, #tpu.memory_space<vmem>>, vector<16x128xf32>
    tpu.vector_store %arg7[%c271, %c0_61], %88 {strides = array<i32>} : memref<326x128xf32, #tpu.memory_space<vmem>>, vector<16x128xf32>,
    %cst_62 = arith.constant dense<0.000000e+00> : vector<128xf32>
    %90 = vector.multi_reduction <add>, %88, %cst_62 [0] : vector<16x128xf32> to vector<128xf32>
    %91 = vector.shape_cast %90 : vector<128xf32> to vector<1x128xf32>
    %92 = arith.addf %86, %91 : vector<1x128xf32>
    %c0_63 = arith.constant 0 : index
    %c240 = arith.constant 240 : index
    %c0_64 = arith.constant 0 : index
    %93 = vector.load %arg1[%c0_63, %c240, %c0_64] : memref<1x256x128xf32, #tpu.memory_space<vmem>>, vector<1x16x128xf32>
    %94 = vector.shape_cast %93 : vector<1x16x128xf32> to vector<16x128xf32>
    %c289 = arith.constant 289 : index
    %c0_65 = arith.constant 0 : index
    %95 = vector.load %arg7[%c289, %c0_65] : memref<326x128xf32, #tpu.memory_space<vmem>>, vector<16x128xf32>
    tpu.vector_store %arg7[%c289, %c0_65], %94 {strides = array<i32>} : memref<326x128xf32, #tpu.memory_space<vmem>>, vector<16x128xf32>,
    %cst_66 = arith.constant dense<0.000000e+00> : vector<128xf32>
    %96 = vector.multi_reduction <add>, %94, %cst_66 [0] : vector<16x128xf32> to vector<128xf32>
    %97 = vector.shape_cast %96 : vector<128xf32> to vector<1x128xf32>
    %98 = arith.addf %92, %97 : vector<1x128xf32>
    %cst_67 = arith.constant 3.906250e-03 : f32
    %99 = vector.broadcast %cst_67 : f32 to vector<1x128xf32>
    %100 = arith.mulf %98, %99 : vector<1x128xf32>
    %c0_68 = arith.constant 0 : index
    %c0_69 = arith.constant 0 : index
    %101 = vector.load %arg4[%c0_68, %c0_69] : memref<128x128xf32, #tpu.memory_space<vmem>>, vector<128x128xf32>
    %cst_70 = arith.constant dense<0.000000e+00> : vector<1x128xf32>
    %102 = tpu.matmul %100, %101, %cst_70 {dimension_numbers = #tpu.dot_dimension_numbers<[1], [0], [0], [1], [0, 0, 1, 1], [], []>} : vector<1x128xf32>, vector<128x128xf32>, vector<1x128xf32> -> vector<1x128xf32>
    %c0_71 = arith.constant 0 : index
    %c0_72 = arith.constant 0 : index
    %103 = vector.load %arg5[%c0_71, %c0_72] : memref<1x128xf32, #tpu.memory_space<vmem>>, vector<1x128xf32>
    %104 = arith.addf %102, %103 : vector<1x128xf32>
    %105 = arith.negf %104 : vector<1x128xf32>
    %106 = math.exp %105 : vector<1x128xf32>
    %cst_73 = arith.constant 1.000000e+00 : f32
    %107 = vector.broadcast %cst_73 : f32 to vector<1x128xf32>
    %108 = arith.addf %107, %106 : vector<1x128xf32>
    %109 = arith.divf %107, %108 : vector<1x128xf32>
    %c0_74 = arith.constant 0 : index
    %c0_75 = arith.constant 0 : index
    %110 = vector.load %arg7[%c0_74, %c0_75] : memref<326x128xf32, #tpu.memory_space<vmem>>, vector<288x128xf32>
    %111 = arith.truncf %110 : vector<288x128xf32> to vector<288x128xbf16>
    %c0_76 = arith.constant 0 : index
    %c0_77 = arith.constant 0 : index
    %112 = vector.load %arg8[%c0_76, %c0_77] : memref<288x1152xbf16, #tpu.memory_space<vmem>>, vector<288x128xbf16>
    tpu.vector_store %arg8[%c0_76, %c0_77], %111 {strides = array<i32>} : memref<288x1152xbf16, #tpu.memory_space<vmem>>, vector<288x128xbf16>,
    %c1 = arith.constant 1 : index
    %c0_78 = arith.constant 0 : index
    %113 = vector.load %arg7[%c1, %c0_78] : memref<326x128xf32, #tpu.memory_space<vmem>>, vector<288x128xf32>
    %114 = arith.truncf %113 : vector<288x128xf32> to vector<288x128xbf16>
    %c0_79 = arith.constant 0 : index
    %c128_80 = arith.constant 128 : index
    %115 = vector.load %arg8[%c0_79, %c128_80] : memref<288x1152xbf16, #tpu.memory_space<vmem>>, vector<288x128xbf16>
    tpu.vector_store %arg8[%c0_79, %c128_80], %114 {strides = array<i32>} : memref<288x1152xbf16, #tpu.memory_space<vmem>>, vector<288x128xbf16>,
    %c2 = arith.constant 2 : index
    %c0_81 = arith.constant 0 : index
    %116 = vector.load %arg7[%c2, %c0_81] : memref<326x128xf32, #tpu.memory_space<vmem>>, vector<288x128xf32>
    %117 = arith.truncf %116 : vector<288x128xf32> to vector<288x128xbf16>
    %c0_82 = arith.constant 0 : index
    %c256 = arith.constant 256 : index
    %118 = vector.load %arg8[%c0_82, %c256] : memref<288x1152xbf16, #tpu.memory_space<vmem>>, vector<288x128xbf16>
    tpu.vector_store %arg8[%c0_82, %c256], %117 {strides = array<i32>} : memref<288x1152xbf16, #tpu.memory_space<vmem>>, vector<288x128xbf16>,
    %c18 = arith.constant 18 : index
    %c0_83 = arith.constant 0 : index
    %119 = vector.load %arg7[%c18, %c0_83] : memref<326x128xf32, #tpu.memory_space<vmem>>, vector<288x128xf32>
    %120 = arith.truncf %119 : vector<288x128xf32> to vector<288x128xbf16>
    %c0_84 = arith.constant 0 : index
    %c384 = arith.constant 384 : index
    %121 = vector.load %arg8[%c0_84, %c384] : memref<288x1152xbf16, #tpu.memory_space<vmem>>, vector<288x128xbf16>
    tpu.vector_store %arg8[%c0_84, %c384], %120 {strides = array<i32>} : memref<288x1152xbf16, #tpu.memory_space<vmem>>, vector<288x128xbf16>,
    %c19_85 = arith.constant 19 : index
    %c0_86 = arith.constant 0 : index
    %122 = vector.load %arg7[%c19_85, %c0_86] : memref<326x128xf32, #tpu.memory_space<vmem>>, vector<288x128xf32>
    %123 = arith.truncf %122 : vector<288x128xf32> to vector<288x128xbf16>
    %c0_87 = arith.constant 0 : index
    %c512 = arith.constant 512 : index
    %124 = vector.load %arg8[%c0_87, %c512] : memref<288x1152xbf16, #tpu.memory_space<vmem>>, vector<288x128xbf16>
    tpu.vector_store %arg8[%c0_87, %c512], %123 {strides = array<i32>} : memref<288x1152xbf16, #tpu.memory_space<vmem>>, vector<288x128xbf16>,
    %c20 = arith.constant 20 : index
    %c0_88 = arith.constant 0 : index
    %125 = vector.load %arg7[%c20, %c0_88] : memref<326x128xf32, #tpu.memory_space<vmem>>, vector<288x128xf32>
    %126 = arith.truncf %125 : vector<288x128xf32> to vector<288x128xbf16>
    %c0_89 = arith.constant 0 : index
    %c640 = arith.constant 640 : index
    %127 = vector.load %arg8[%c0_89, %c640] : memref<288x1152xbf16, #tpu.memory_space<vmem>>, vector<288x128xbf16>
    tpu.vector_store %arg8[%c0_89, %c640], %126 {strides = array<i32>} : memref<288x1152xbf16, #tpu.memory_space<vmem>>, vector<288x128xbf16>,
    %c36 = arith.constant 36 : index
    %c0_90 = arith.constant 0 : index
    %128 = vector.load %arg7[%c36, %c0_90] : memref<326x128xf32, #tpu.memory_space<vmem>>, vector<288x128xf32>
    %129 = arith.truncf %128 : vector<288x128xf32> to vector<288x128xbf16>
    %c0_91 = arith.constant 0 : index
    %c768 = arith.constant 768 : index
    %130 = vector.load %arg8[%c0_91, %c768] : memref<288x1152xbf16, #tpu.memory_space<vmem>>, vector<288x128xbf16>
    tpu.vector_store %arg8[%c0_91, %c768], %129 {strides = array<i32>} : memref<288x1152xbf16, #tpu.memory_space<vmem>>, vector<288x128xbf16>,
    %c37_92 = arith.constant 37 : index
    %c0_93 = arith.constant 0 : index
    %131 = vector.load %arg7[%c37_92, %c0_93] : memref<326x128xf32, #tpu.memory_space<vmem>>, vector<288x128xf32>
    %132 = arith.truncf %131 : vector<288x128xf32> to vector<288x128xbf16>
    %c0_94 = arith.constant 0 : index
    %c896 = arith.constant 896 : index
    %133 = vector.load %arg8[%c0_94, %c896] : memref<288x1152xbf16, #tpu.memory_space<vmem>>, vector<288x128xbf16>
    tpu.vector_store %arg8[%c0_94, %c896], %132 {strides = array<i32>} : memref<288x1152xbf16, #tpu.memory_space<vmem>>, vector<288x128xbf16>,
    %c38 = arith.constant 38 : index
    %c0_95 = arith.constant 0 : index
    %134 = vector.load %arg7[%c38, %c0_95] : memref<326x128xf32, #tpu.memory_space<vmem>>, vector<288x128xf32>
    %135 = arith.truncf %134 : vector<288x128xf32> to vector<288x128xbf16>
    %c0_96 = arith.constant 0 : index
    %c1024 = arith.constant 1024 : index
    %136 = vector.load %arg8[%c0_96, %c1024] : memref<288x1152xbf16, #tpu.memory_space<vmem>>, vector<288x128xbf16>
    tpu.vector_store %arg8[%c0_96, %c1024], %135 {strides = array<i32>} : memref<288x1152xbf16, #tpu.memory_space<vmem>>, vector<288x128xbf16>,
    %c0_97 = arith.constant 0 : index
    %c0_98 = arith.constant 0 : index
    %137 = vector.load %arg8[%c0_97, %c0_98] : memref<288x1152xbf16, #tpu.memory_space<vmem>>, vector<288x1152xbf16>
    %c0_99 = arith.constant 0 : index
    %c0_100 = arith.constant 0 : index
    %138 = vector.load %arg2[%c0_99, %c0_100] : memref<1152x128xbf16, #tpu.memory_space<vmem>>, vector<1152x128xbf16>
    %cst_101 = arith.constant dense<0.000000e+00> : vector<288x128xf32>
    %139 = tpu.matmul %137, %138, %cst_101 {dimension_numbers = #tpu.dot_dimension_numbers<[1], [0], [0], [1], [0, 0, 1, 1], [], []>} : vector<288x1152xbf16>, vector<1152x128xbf16>, vector<288x128xf32> -> vector<288x128xf32>
    %c0_102 = arith.constant 0 : index
    %c0_103 = arith.constant 0 : index
    %140 = vector.load %arg9[%c0_102, %c0_103] : memref<288x128xf32, #tpu.memory_space<vmem>>, vector<288x128xf32>
    tpu.vector_store %arg9[%c0_102, %c0_103], %139 {strides = array<i32>} : memref<288x128xf32, #tpu.memory_space<vmem>>, vector<288x128xf32>,
    %c0_104 = arith.constant 0 : index
    %c0_105 = arith.constant 0 : index
    %141 = vector.load %arg3[%c0_104, %c0_105] : memref<1x128xf32, #tpu.memory_space<vmem>>, vector<1x128xf32>
    %c0_106 = arith.constant 0 : index
    %c0_107 = arith.constant 0 : index
    %142 = vector.load %arg9[%c0_106, %c0_107] : memref<288x128xf32, #tpu.memory_space<vmem>>, vector<16x128xf32>
    %c0_108 = arith.constant 0 : index
    %c0_109 = arith.constant 0 : index
    %c0_110 = arith.constant 0 : index
    %143 = vector.load %arg1[%c0_108, %c0_109, %c0_110] : memref<1x256x128xf32, #tpu.memory_space<vmem>>, vector<1x16x128xf32>
    %144 = vector.shape_cast %143 : vector<1x16x128xf32> to vector<16x128xf32>
    %145 = vector.broadcast %141 : vector<1x128xf32> to vector<16x128xf32>
    %146 = arith.addf %142, %145 : vector<16x128xf32>
    %147 = vector.broadcast %109 : vector<1x128xf32> to vector<16x128xf32>
    %148 = arith.mulf %147, %144 : vector<16x128xf32>
    %149 = arith.addf %146, %148 : vector<16x128xf32>
    %150 = arith.negf %149 : vector<16x128xf32>
    %151 = math.exp %150 : vector<16x128xf32>
    %cst_111 = arith.constant 1.000000e+00 : f32
    %152 = vector.broadcast %cst_111 : f32 to vector<16x128xf32>
    %153 = arith.addf %152, %151 : vector<16x128xf32>
    %154 = arith.divf %152, %153 : vector<16x128xf32>
    %155 = arith.mulf %149, %154 : vector<16x128xf32>
    %c0_112 = arith.constant 0 : index
    %c0_113 = arith.constant 0 : index
    %c0_114 = arith.constant 0 : index
    %156 = vector.load %arg6[%c0_112, %c0_113, %c0_114] : memref<1x256x128xf32, #tpu.memory_space<vmem>>, vector<1x16x128xf32>
    %157 = vector.shape_cast %156 : vector<1x16x128xf32> to vector<16x128xf32>
    %158 = vector.shape_cast %155 : vector<16x128xf32> to vector<1x16x128xf32>
    tpu.vector_store %arg6[%c0_112, %c0_113, %c0_114], %158 {strides = array<i32>} : memref<1x256x128xf32, #tpu.memory_space<vmem>>, vector<1x16x128xf32>,
    %c18_115 = arith.constant 18 : index
    %c0_116 = arith.constant 0 : index
    %159 = vector.load %arg9[%c18_115, %c0_116] : memref<288x128xf32, #tpu.memory_space<vmem>>, vector<16x128xf32>
    %c0_117 = arith.constant 0 : index
    %c16_118 = arith.constant 16 : index
    %c0_119 = arith.constant 0 : index
    %160 = vector.load %arg1[%c0_117, %c16_118, %c0_119] : memref<1x256x128xf32, #tpu.memory_space<vmem>>, vector<1x16x128xf32>
    %161 = vector.shape_cast %160 : vector<1x16x128xf32> to vector<16x128xf32>
    %162 = vector.broadcast %141 : vector<1x128xf32> to vector<16x128xf32>
    %163 = arith.addf %159, %162 : vector<16x128xf32>
    %164 = vector.broadcast %109 : vector<1x128xf32> to vector<16x128xf32>
    %165 = arith.mulf %164, %161 : vector<16x128xf32>
    %166 = arith.addf %163, %165 : vector<16x128xf32>
    %167 = arith.negf %166 : vector<16x128xf32>
    %168 = math.exp %167 : vector<16x128xf32>
    %cst_120 = arith.constant 1.000000e+00 : f32
    %169 = vector.broadcast %cst_120 : f32 to vector<16x128xf32>
    %170 = arith.addf %169, %168 : vector<16x128xf32>
    %171 = arith.divf %169, %170 : vector<16x128xf32>
    %172 = arith.mulf %166, %171 : vector<16x128xf32>
    %c0_121 = arith.constant 0 : index
    %c16_122 = arith.constant 16 : index
    %c0_123 = arith.constant 0 : index
    %173 = vector.load %arg6[%c0_121, %c16_122, %c0_123] : memref<1x256x128xf32, #tpu.memory_space<vmem>>, vector<1x16x128xf32>
    %174 = vector.shape_cast %173 : vector<1x16x128xf32> to vector<16x128xf32>
    %175 = vector.shape_cast %172 : vector<16x128xf32> to vector<1x16x128xf32>
    tpu.vector_store %arg6[%c0_121, %c16_122, %c0_123], %175 {strides = array<i32>} : memref<1x256x128xf32, #tpu.memory_space<vmem>>, vector<1x16x128xf32>,
    %c36_124 = arith.constant 36 : index
    %c0_125 = arith.constant 0 : index
    %176 = vector.load %arg9[%c36_124, %c0_125] : memref<288x128xf32, #tpu.memory_space<vmem>>, vector<16x128xf32>
    %c0_126 = arith.constant 0 : index
    %c32_127 = arith.constant 32 : index
    %c0_128 = arith.constant 0 : index
    %177 = vector.load %arg1[%c0_126, %c32_127, %c0_128] : memref<1x256x128xf32, #tpu.memory_space<vmem>>, vector<1x16x128xf32>
    %178 = vector.shape_cast %177 : vector<1x16x128xf32> to vector<16x128xf32>
    %179 = vector.broadcast %141 : vector<1x128xf32> to vector<16x128xf32>
    %180 = arith.addf %176, %179 : vector<16x128xf32>
    %181 = vector.broadcast %109 : vector<1x128xf32> to vector<16x128xf32>
    %182 = arith.mulf %181, %178 : vector<16x128xf32>
    %183 = arith.addf %180, %182 : vector<16x128xf32>
    %184 = arith.negf %183 : vector<16x128xf32>
    %185 = math.exp %184 : vector<16x128xf32>
    %cst_129 = arith.constant 1.000000e+00 : f32
    %186 = vector.broadcast %cst_129 : f32 to vector<16x128xf32>
    %187 = arith.addf %186, %185 : vector<16x128xf32>
    %188 = arith.divf %186, %187 : vector<16x128xf32>
    %189 = arith.mulf %183, %188 : vector<16x128xf32>
    %c0_130 = arith.constant 0 : index
    %c32_131 = arith.constant 32 : index
    %c0_132 = arith.constant 0 : index
    %190 = vector.load %arg6[%c0_130, %c32_131, %c0_132] : memref<1x256x128xf32, #tpu.memory_space<vmem>>, vector<1x16x128xf32>
    %191 = vector.shape_cast %190 : vector<1x16x128xf32> to vector<16x128xf32>
    %192 = vector.shape_cast %189 : vector<16x128xf32> to vector<1x16x128xf32>
    tpu.vector_store %arg6[%c0_130, %c32_131, %c0_132], %192 {strides = array<i32>} : memref<1x256x128xf32, #tpu.memory_space<vmem>>, vector<1x16x128xf32>,
    %c54 = arith.constant 54 : index
    %c0_133 = arith.constant 0 : index
    %193 = vector.load %arg9[%c54, %c0_133] : memref<288x128xf32, #tpu.memory_space<vmem>>, vector<16x128xf32>
    %c0_134 = arith.constant 0 : index
    %c48_135 = arith.constant 48 : index
    %c0_136 = arith.constant 0 : index
    %194 = vector.load %arg1[%c0_134, %c48_135, %c0_136] : memref<1x256x128xf32, #tpu.memory_space<vmem>>, vector<1x16x128xf32>
    %195 = vector.shape_cast %194 : vector<1x16x128xf32> to vector<16x128xf32>
    %196 = vector.broadcast %141 : vector<1x128xf32> to vector<16x128xf32>
    %197 = arith.addf %193, %196 : vector<16x128xf32>
    %198 = vector.broadcast %109 : vector<1x128xf32> to vector<16x128xf32>
    %199 = arith.mulf %198, %195 : vector<16x128xf32>
    %200 = arith.addf %197, %199 : vector<16x128xf32>
    %201 = arith.negf %200 : vector<16x128xf32>
    %202 = math.exp %201 : vector<16x128xf32>
    %cst_137 = arith.constant 1.000000e+00 : f32
    %203 = vector.broadcast %cst_137 : f32 to vector<16x128xf32>
    %204 = arith.addf %203, %202 : vector<16x128xf32>
    %205 = arith.divf %203, %204 : vector<16x128xf32>
    %206 = arith.mulf %200, %205 : vector<16x128xf32>
    %c0_138 = arith.constant 0 : index
    %c48_139 = arith.constant 48 : index
    %c0_140 = arith.constant 0 : index
    %207 = vector.load %arg6[%c0_138, %c48_139, %c0_140] : memref<1x256x128xf32, #tpu.memory_space<vmem>>, vector<1x16x128xf32>
    %208 = vector.shape_cast %207 : vector<1x16x128xf32> to vector<16x128xf32>
    %209 = vector.shape_cast %206 : vector<16x128xf32> to vector<1x16x128xf32>
    tpu.vector_store %arg6[%c0_138, %c48_139, %c0_140], %209 {strides = array<i32>} : memref<1x256x128xf32, #tpu.memory_space<vmem>>, vector<1x16x128xf32>,
    %c72 = arith.constant 72 : index
    %c0_141 = arith.constant 0 : index
    %210 = vector.load %arg9[%c72, %c0_141] : memref<288x128xf32, #tpu.memory_space<vmem>>, vector<16x128xf32>
    %c0_142 = arith.constant 0 : index
    %c64_143 = arith.constant 64 : index
    %c0_144 = arith.constant 0 : index
    %211 = vector.load %arg1[%c0_142, %c64_143, %c0_144] : memref<1x256x128xf32, #tpu.memory_space<vmem>>, vector<1x16x128xf32>
    %212 = vector.shape_cast %211 : vector<1x16x128xf32> to vector<16x128xf32>
    %213 = vector.broadcast %141 : vector<1x128xf32> to vector<16x128xf32>
    %214 = arith.addf %210, %213 : vector<16x128xf32>
    %215 = vector.broadcast %109 : vector<1x128xf32> to vector<16x128xf32>
    %216 = arith.mulf %215, %212 : vector<16x128xf32>
    %217 = arith.addf %214, %216 : vector<16x128xf32>
    %218 = arith.negf %217 : vector<16x128xf32>
    %219 = math.exp %218 : vector<16x128xf32>
    %cst_145 = arith.constant 1.000000e+00 : f32
    %220 = vector.broadcast %cst_145 : f32 to vector<16x128xf32>
    %221 = arith.addf %220, %219 : vector<16x128xf32>
    %222 = arith.divf %220, %221 : vector<16x128xf32>
    %223 = arith.mulf %217, %222 : vector<16x128xf32>
    %c0_146 = arith.constant 0 : index
    %c64_147 = arith.constant 64 : index
    %c0_148 = arith.constant 0 : index
    %224 = vector.load %arg6[%c0_146, %c64_147, %c0_148] : memref<1x256x128xf32, #tpu.memory_space<vmem>>, vector<1x16x128xf32>
    %225 = vector.shape_cast %224 : vector<1x16x128xf32> to vector<16x128xf32>
    %226 = vector.shape_cast %223 : vector<16x128xf32> to vector<1x16x128xf32>
    tpu.vector_store %arg6[%c0_146, %c64_147, %c0_148], %226 {strides = array<i32>} : memref<1x256x128xf32, #tpu.memory_space<vmem>>, vector<1x16x128xf32>,
    %c90 = arith.constant 90 : index
    %c0_149 = arith.constant 0 : index
    %227 = vector.load %arg9[%c90, %c0_149] : memref<288x128xf32, #tpu.memory_space<vmem>>, vector<16x128xf32>
    %c0_150 = arith.constant 0 : index
    %c80_151 = arith.constant 80 : index
    %c0_152 = arith.constant 0 : index
    %228 = vector.load %arg1[%c0_150, %c80_151, %c0_152] : memref<1x256x128xf32, #tpu.memory_space<vmem>>, vector<1x16x128xf32>
    %229 = vector.shape_cast %228 : vector<1x16x128xf32> to vector<16x128xf32>
    %230 = vector.broadcast %141 : vector<1x128xf32> to vector<16x128xf32>
    %231 = arith.addf %227, %230 : vector<16x128xf32>
    %232 = vector.broadcast %109 : vector<1x128xf32> to vector<16x128xf32>
    %233 = arith.mulf %232, %229 : vector<16x128xf32>
    %234 = arith.addf %231, %233 : vector<16x128xf32>
    %235 = arith.negf %234 : vector<16x128xf32>
    %236 = math.exp %235 : vector<16x128xf32>
    %cst_153 = arith.constant 1.000000e+00 : f32
    %237 = vector.broadcast %cst_153 : f32 to vector<16x128xf32>
    %238 = arith.addf %237, %236 : vector<16x128xf32>
    %239 = arith.divf %237, %238 : vector<16x128xf32>
    %240 = arith.mulf %234, %239 : vector<16x128xf32>
    %c0_154 = arith.constant 0 : index
    %c80_155 = arith.constant 80 : index
    %c0_156 = arith.constant 0 : index
    %241 = vector.load %arg6[%c0_154, %c80_155, %c0_156] : memref<1x256x128xf32, #tpu.memory_space<vmem>>, vector<1x16x128xf32>
    %242 = vector.shape_cast %241 : vector<1x16x128xf32> to vector<16x128xf32>
    %243 = vector.shape_cast %240 : vector<16x128xf32> to vector<1x16x128xf32>
    tpu.vector_store %arg6[%c0_154, %c80_155, %c0_156], %243 {strides = array<i32>} : memref<1x256x128xf32, #tpu.memory_space<vmem>>, vector<1x16x128xf32>,
    %c108 = arith.constant 108 : index
    %c0_157 = arith.constant 0 : index
    %244 = vector.load %arg9[%c108, %c0_157] : memref<288x128xf32, #tpu.memory_space<vmem>>, vector<16x128xf32>
    %c0_158 = arith.constant 0 : index
    %c96_159 = arith.constant 96 : index
    %c0_160 = arith.constant 0 : index
    %245 = vector.load %arg1[%c0_158, %c96_159, %c0_160] : memref<1x256x128xf32, #tpu.memory_space<vmem>>, vector<1x16x128xf32>
    %246 = vector.shape_cast %245 : vector<1x16x128xf32> to vector<16x128xf32>
    %247 = vector.broadcast %141 : vector<1x128xf32> to vector<16x128xf32>
    %248 = arith.addf %244, %247 : vector<16x128xf32>
    %249 = vector.broadcast %109 : vector<1x128xf32> to vector<16x128xf32>
    %250 = arith.mulf %249, %246 : vector<16x128xf32>
    %251 = arith.addf %248, %250 : vector<16x128xf32>
    %252 = arith.negf %251 : vector<16x128xf32>
    %253 = math.exp %252 : vector<16x128xf32>
    %cst_161 = arith.constant 1.000000e+00 : f32
    %254 = vector.broadcast %cst_161 : f32 to vector<16x128xf32>
    %255 = arith.addf %254, %253 : vector<16x128xf32>
    %256 = arith.divf %254, %255 : vector<16x128xf32>
    %257 = arith.mulf %251, %256 : vector<16x128xf32>
    %c0_162 = arith.constant 0 : index
    %c96_163 = arith.constant 96 : index
    %c0_164 = arith.constant 0 : index
    %258 = vector.load %arg6[%c0_162, %c96_163, %c0_164] : memref<1x256x128xf32, #tpu.memory_space<vmem>>, vector<1x16x128xf32>
    %259 = vector.shape_cast %258 : vector<1x16x128xf32> to vector<16x128xf32>
    %260 = vector.shape_cast %257 : vector<16x128xf32> to vector<1x16x128xf32>
    tpu.vector_store %arg6[%c0_162, %c96_163, %c0_164], %260 {strides = array<i32>} : memref<1x256x128xf32, #tpu.memory_space<vmem>>, vector<1x16x128xf32>,
    %c126 = arith.constant 126 : index
    %c0_165 = arith.constant 0 : index
    %261 = vector.load %arg9[%c126, %c0_165] : memref<288x128xf32, #tpu.memory_space<vmem>>, vector<16x128xf32>
    %c0_166 = arith.constant 0 : index
    %c112_167 = arith.constant 112 : index
    %c0_168 = arith.constant 0 : index
    %262 = vector.load %arg1[%c0_166, %c112_167, %c0_168] : memref<1x256x128xf32, #tpu.memory_space<vmem>>, vector<1x16x128xf32>
    %263 = vector.shape_cast %262 : vector<1x16x128xf32> to vector<16x128xf32>
    %264 = vector.broadcast %141 : vector<1x128xf32> to vector<16x128xf32>
    %265 = arith.addf %261, %264 : vector<16x128xf32>
    %266 = vector.broadcast %109 : vector<1x128xf32> to vector<16x128xf32>
    %267 = arith.mulf %266, %263 : vector<16x128xf32>
    %268 = arith.addf %265, %267 : vector<16x128xf32>
    %269 = arith.negf %268 : vector<16x128xf32>
    %270 = math.exp %269 : vector<16x128xf32>
    %cst_169 = arith.constant 1.000000e+00 : f32
    %271 = vector.broadcast %cst_169 : f32 to vector<16x128xf32>
    %272 = arith.addf %271, %270 : vector<16x128xf32>
    %273 = arith.divf %271, %272 : vector<16x128xf32>
    %274 = arith.mulf %268, %273 : vector<16x128xf32>
    %c0_170 = arith.constant 0 : index
    %c112_171 = arith.constant 112 : index
    %c0_172 = arith.constant 0 : index
    %275 = vector.load %arg6[%c0_170, %c112_171, %c0_172] : memref<1x256x128xf32, #tpu.memory_space<vmem>>, vector<1x16x128xf32>
    %276 = vector.shape_cast %275 : vector<1x16x128xf32> to vector<16x128xf32>
    %277 = vector.shape_cast %274 : vector<16x128xf32> to vector<1x16x128xf32>
    tpu.vector_store %arg6[%c0_170, %c112_171, %c0_172], %277 {strides = array<i32>} : memref<1x256x128xf32, #tpu.memory_space<vmem>>, vector<1x16x128xf32>,
    %c144_173 = arith.constant 144 : index
    %c0_174 = arith.constant 0 : index
    %278 = vector.load %arg9[%c144_173, %c0_174] : memref<288x128xf32, #tpu.memory_space<vmem>>, vector<16x128xf32>
    %c0_175 = arith.constant 0 : index
    %c128_176 = arith.constant 128 : index
    %c0_177 = arith.constant 0 : index
    %279 = vector.load %arg1[%c0_175, %c128_176, %c0_177] : memref<1x256x128xf32, #tpu.memory_space<vmem>>, vector<1x16x128xf32>
    %280 = vector.shape_cast %279 : vector<1x16x128xf32> to vector<16x128xf32>
    %281 = vector.broadcast %141 : vector<1x128xf32> to vector<16x128xf32>
    %282 = arith.addf %278, %281 : vector<16x128xf32>
    %283 = vector.broadcast %109 : vector<1x128xf32> to vector<16x128xf32>
    %284 = arith.mulf %283, %280 : vector<16x128xf32>
    %285 = arith.addf %282, %284 : vector<16x128xf32>
    %286 = arith.negf %285 : vector<16x128xf32>
    %287 = math.exp %286 : vector<16x128xf32>
    %cst_178 = arith.constant 1.000000e+00 : f32
    %288 = vector.broadcast %cst_178 : f32 to vector<16x128xf32>
    %289 = arith.addf %288, %287 : vector<16x128xf32>
    %290 = arith.divf %288, %289 : vector<16x128xf32>
    %291 = arith.mulf %285, %290 : vector<16x128xf32>
    %c0_179 = arith.constant 0 : index
    %c128_180 = arith.constant 128 : index
    %c0_181 = arith.constant 0 : index
    %292 = vector.load %arg6[%c0_179, %c128_180, %c0_181] : memref<1x256x128xf32, #tpu.memory_space<vmem>>, vector<1x16x128xf32>
    %293 = vector.shape_cast %292 : vector<1x16x128xf32> to vector<16x128xf32>
    %294 = vector.shape_cast %291 : vector<16x128xf32> to vector<1x16x128xf32>
    tpu.vector_store %arg6[%c0_179, %c128_180, %c0_181], %294 {strides = array<i32>} : memref<1x256x128xf32, #tpu.memory_space<vmem>>, vector<1x16x128xf32>,
    %c162 = arith.constant 162 : index
    %c0_182 = arith.constant 0 : index
    %295 = vector.load %arg9[%c162, %c0_182] : memref<288x128xf32, #tpu.memory_space<vmem>>, vector<16x128xf32>
    %c0_183 = arith.constant 0 : index
    %c144_184 = arith.constant 144 : index
    %c0_185 = arith.constant 0 : index
    %296 = vector.load %arg1[%c0_183, %c144_184, %c0_185] : memref<1x256x128xf32, #tpu.memory_space<vmem>>, vector<1x16x128xf32>
    %297 = vector.shape_cast %296 : vector<1x16x128xf32> to vector<16x128xf32>
    %298 = vector.broadcast %141 : vector<1x128xf32> to vector<16x128xf32>
    %299 = arith.addf %295, %298 : vector<16x128xf32>
    %300 = vector.broadcast %109 : vector<1x128xf32> to vector<16x128xf32>
    %301 = arith.mulf %300, %297 : vector<16x128xf32>
    %302 = arith.addf %299, %301 : vector<16x128xf32>
    %303 = arith.negf %302 : vector<16x128xf32>
    %304 = math.exp %303 : vector<16x128xf32>
    %cst_186 = arith.constant 1.000000e+00 : f32
    %305 = vector.broadcast %cst_186 : f32 to vector<16x128xf32>
    %306 = arith.addf %305, %304 : vector<16x128xf32>
    %307 = arith.divf %305, %306 : vector<16x128xf32>
    %308 = arith.mulf %302, %307 : vector<16x128xf32>
    %c0_187 = arith.constant 0 : index
    %c144_188 = arith.constant 144 : index
    %c0_189 = arith.constant 0 : index
    %309 = vector.load %arg6[%c0_187, %c144_188, %c0_189] : memref<1x256x128xf32, #tpu.memory_space<vmem>>, vector<1x16x128xf32>
    %310 = vector.shape_cast %309 : vector<1x16x128xf32> to vector<16x128xf32>
    %311 = vector.shape_cast %308 : vector<16x128xf32> to vector<1x16x128xf32>
    tpu.vector_store %arg6[%c0_187, %c144_188, %c0_189], %311 {strides = array<i32>} : memref<1x256x128xf32, #tpu.memory_space<vmem>>, vector<1x16x128xf32>,
    %c180 = arith.constant 180 : index
    %c0_190 = arith.constant 0 : index
    %312 = vector.load %arg9[%c180, %c0_190] : memref<288x128xf32, #tpu.memory_space<vmem>>, vector<16x128xf32>
    %c0_191 = arith.constant 0 : index
    %c160_192 = arith.constant 160 : index
    %c0_193 = arith.constant 0 : index
    %313 = vector.load %arg1[%c0_191, %c160_192, %c0_193] : memref<1x256x128xf32, #tpu.memory_space<vmem>>, vector<1x16x128xf32>
    %314 = vector.shape_cast %313 : vector<1x16x128xf32> to vector<16x128xf32>
    %315 = vector.broadcast %141 : vector<1x128xf32> to vector<16x128xf32>
    %316 = arith.addf %312, %315 : vector<16x128xf32>
    %317 = vector.broadcast %109 : vector<1x128xf32> to vector<16x128xf32>
    %318 = arith.mulf %317, %314 : vector<16x128xf32>
    %319 = arith.addf %316, %318 : vector<16x128xf32>
    %320 = arith.negf %319 : vector<16x128xf32>
    %321 = math.exp %320 : vector<16x128xf32>
    %cst_194 = arith.constant 1.000000e+00 : f32
    %322 = vector.broadcast %cst_194 : f32 to vector<16x128xf32>
    %323 = arith.addf %322, %321 : vector<16x128xf32>
    %324 = arith.divf %322, %323 : vector<16x128xf32>
    %325 = arith.mulf %319, %324 : vector<16x128xf32>
    %c0_195 = arith.constant 0 : index
    %c160_196 = arith.constant 160 : index
    %c0_197 = arith.constant 0 : index
    %326 = vector.load %arg6[%c0_195, %c160_196, %c0_197] : memref<1x256x128xf32, #tpu.memory_space<vmem>>, vector<1x16x128xf32>
    %327 = vector.shape_cast %326 : vector<1x16x128xf32> to vector<16x128xf32>
    %328 = vector.shape_cast %325 : vector<16x128xf32> to vector<1x16x128xf32>
    tpu.vector_store %arg6[%c0_195, %c160_196, %c0_197], %328 {strides = array<i32>} : memref<1x256x128xf32, #tpu.memory_space<vmem>>, vector<1x16x128xf32>,
    %c198 = arith.constant 198 : index
    %c0_198 = arith.constant 0 : index
    %329 = vector.load %arg9[%c198, %c0_198] : memref<288x128xf32, #tpu.memory_space<vmem>>, vector<16x128xf32>
    %c0_199 = arith.constant 0 : index
    %c176_200 = arith.constant 176 : index
    %c0_201 = arith.constant 0 : index
    %330 = vector.load %arg1[%c0_199, %c176_200, %c0_201] : memref<1x256x128xf32, #tpu.memory_space<vmem>>, vector<1x16x128xf32>
    %331 = vector.shape_cast %330 : vector<1x16x128xf32> to vector<16x128xf32>
    %332 = vector.broadcast %141 : vector<1x128xf32> to vector<16x128xf32>
    %333 = arith.addf %329, %332 : vector<16x128xf32>
    %334 = vector.broadcast %109 : vector<1x128xf32> to vector<16x128xf32>
    %335 = arith.mulf %334, %331 : vector<16x128xf32>
    %336 = arith.addf %333, %335 : vector<16x128xf32>
    %337 = arith.negf %336 : vector<16x128xf32>
    %338 = math.exp %337 : vector<16x128xf32>
    %cst_202 = arith.constant 1.000000e+00 : f32
    %339 = vector.broadcast %cst_202 : f32 to vector<16x128xf32>
    %340 = arith.addf %339, %338 : vector<16x128xf32>
    %341 = arith.divf %339, %340 : vector<16x128xf32>
    %342 = arith.mulf %336, %341 : vector<16x128xf32>
    %c0_203 = arith.constant 0 : index
    %c176_204 = arith.constant 176 : index
    %c0_205 = arith.constant 0 : index
    %343 = vector.load %arg6[%c0_203, %c176_204, %c0_205] : memref<1x256x128xf32, #tpu.memory_space<vmem>>, vector<1x16x128xf32>
    %344 = vector.shape_cast %343 : vector<1x16x128xf32> to vector<16x128xf32>
    %345 = vector.shape_cast %342 : vector<16x128xf32> to vector<1x16x128xf32>
    tpu.vector_store %arg6[%c0_203, %c176_204, %c0_205], %345 {strides = array<i32>} : memref<1x256x128xf32, #tpu.memory_space<vmem>>, vector<1x16x128xf32>,
    %c216 = arith.constant 216 : index
    %c0_206 = arith.constant 0 : index
    %346 = vector.load %arg9[%c216, %c0_206] : memref<288x128xf32, #tpu.memory_space<vmem>>, vector<16x128xf32>
    %c0_207 = arith.constant 0 : index
    %c192_208 = arith.constant 192 : index
    %c0_209 = arith.constant 0 : index
    %347 = vector.load %arg1[%c0_207, %c192_208, %c0_209] : memref<1x256x128xf32, #tpu.memory_space<vmem>>, vector<1x16x128xf32>
    %348 = vector.shape_cast %347 : vector<1x16x128xf32> to vector<16x128xf32>
    %349 = vector.broadcast %141 : vector<1x128xf32> to vector<16x128xf32>
    %350 = arith.addf %346, %349 : vector<16x128xf32>
    %351 = vector.broadcast %109 : vector<1x128xf32> to vector<16x128xf32>
    %352 = arith.mulf %351, %348 : vector<16x128xf32>
    %353 = arith.addf %350, %352 : vector<16x128xf32>
    %354 = arith.negf %353 : vector<16x128xf32>
    %355 = math.exp %354 : vector<16x128xf32>
    %cst_210 = arith.constant 1.000000e+00 : f32
    %356 = vector.broadcast %cst_210 : f32 to vector<16x128xf32>
    %357 = arith.addf %356, %355 : vector<16x128xf32>
    %358 = arith.divf %356, %357 : vector<16x128xf32>
    %359 = arith.mulf %353, %358 : vector<16x128xf32>
    %c0_211 = arith.constant 0 : index
    %c192_212 = arith.constant 192 : index
    %c0_213 = arith.constant 0 : index
    %360 = vector.load %arg6[%c0_211, %c192_212, %c0_213] : memref<1x256x128xf32, #tpu.memory_space<vmem>>, vector<1x16x128xf32>
    %361 = vector.shape_cast %360 : vector<1x16x128xf32> to vector<16x128xf32>
    %362 = vector.shape_cast %359 : vector<16x128xf32> to vector<1x16x128xf32>
    tpu.vector_store %arg6[%c0_211, %c192_212, %c0_213], %362 {strides = array<i32>} : memref<1x256x128xf32, #tpu.memory_space<vmem>>, vector<1x16x128xf32>,
    %c234 = arith.constant 234 : index
    %c0_214 = arith.constant 0 : index
    %363 = vector.load %arg9[%c234, %c0_214] : memref<288x128xf32, #tpu.memory_space<vmem>>, vector<16x128xf32>
    %c0_215 = arith.constant 0 : index
    %c208_216 = arith.constant 208 : index
    %c0_217 = arith.constant 0 : index
    %364 = vector.load %arg1[%c0_215, %c208_216, %c0_217] : memref<1x256x128xf32, #tpu.memory_space<vmem>>, vector<1x16x128xf32>
    %365 = vector.shape_cast %364 : vector<1x16x128xf32> to vector<16x128xf32>
    %366 = vector.broadcast %141 : vector<1x128xf32> to vector<16x128xf32>
    %367 = arith.addf %363, %366 : vector<16x128xf32>
    %368 = vector.broadcast %109 : vector<1x128xf32> to vector<16x128xf32>
    %369 = arith.mulf %368, %365 : vector<16x128xf32>
    %370 = arith.addf %367, %369 : vector<16x128xf32>
    %371 = arith.negf %370 : vector<16x128xf32>
    %372 = math.exp %371 : vector<16x128xf32>
    %cst_218 = arith.constant 1.000000e+00 : f32
    %373 = vector.broadcast %cst_218 : f32 to vector<16x128xf32>
    %374 = arith.addf %373, %372 : vector<16x128xf32>
    %375 = arith.divf %373, %374 : vector<16x128xf32>
    %376 = arith.mulf %370, %375 : vector<16x128xf32>
    %c0_219 = arith.constant 0 : index
    %c208_220 = arith.constant 208 : index
    %c0_221 = arith.constant 0 : index
    %377 = vector.load %arg6[%c0_219, %c208_220, %c0_221] : memref<1x256x128xf32, #tpu.memory_space<vmem>>, vector<1x16x128xf32>
    %378 = vector.shape_cast %377 : vector<1x16x128xf32> to vector<16x128xf32>
    %379 = vector.shape_cast %376 : vector<16x128xf32> to vector<1x16x128xf32>
    tpu.vector_store %arg6[%c0_219, %c208_220, %c0_221], %379 {strides = array<i32>} : memref<1x256x128xf32, #tpu.memory_space<vmem>>, vector<1x16x128xf32>,
    %c252 = arith.constant 252 : index
    %c0_222 = arith.constant 0 : index
    %380 = vector.load %arg9[%c252, %c0_222] : memref<288x128xf32, #tpu.memory_space<vmem>>, vector<16x128xf32>
    %c0_223 = arith.constant 0 : index
    %c224_224 = arith.constant 224 : index
    %c0_225 = arith.constant 0 : index
    %381 = vector.load %arg1[%c0_223, %c224_224, %c0_225] : memref<1x256x128xf32, #tpu.memory_space<vmem>>, vector<1x16x128xf32>
    %382 = vector.shape_cast %381 : vector<1x16x128xf32> to vector<16x128xf32>
    %383 = vector.broadcast %141 : vector<1x128xf32> to vector<16x128xf32>
    %384 = arith.addf %380, %383 : vector<16x128xf32>
    %385 = vector.broadcast %109 : vector<1x128xf32> to vector<16x128xf32>
    %386 = arith.mulf %385, %382 : vector<16x128xf32>
    %387 = arith.addf %384, %386 : vector<16x128xf32>
    %388 = arith.negf %387 : vector<16x128xf32>
    %389 = math.exp %388 : vector<16x128xf32>
    %cst_226 = arith.constant 1.000000e+00 : f32
    %390 = vector.broadcast %cst_226 : f32 to vector<16x128xf32>
    %391 = arith.addf %390, %389 : vector<16x128xf32>
    %392 = arith.divf %390, %391 : vector<16x128xf32>
    %393 = arith.mulf %387, %392 : vector<16x128xf32>
    %c0_227 = arith.constant 0 : index
    %c224_228 = arith.constant 224 : index
    %c0_229 = arith.constant 0 : index
    %394 = vector.load %arg6[%c0_227, %c224_228, %c0_229] : memref<1x256x128xf32, #tpu.memory_space<vmem>>, vector<1x16x128xf32>
    %395 = vector.shape_cast %394 : vector<1x16x128xf32> to vector<16x128xf32>
    %396 = vector.shape_cast %393 : vector<16x128xf32> to vector<1x16x128xf32>
    tpu.vector_store %arg6[%c0_227, %c224_228, %c0_229], %396 {strides = array<i32>} : memref<1x256x128xf32, #tpu.memory_space<vmem>>, vector<1x16x128xf32>,
    %c270 = arith.constant 270 : index
    %c0_230 = arith.constant 0 : index
    %397 = vector.load %arg9[%c270, %c0_230] : memref<288x128xf32, #tpu.memory_space<vmem>>, vector<16x128xf32>
    %c0_231 = arith.constant 0 : index
    %c240_232 = arith.constant 240 : index
    %c0_233 = arith.constant 0 : index
    %398 = vector.load %arg1[%c0_231, %c240_232, %c0_233] : memref<1x256x128xf32, #tpu.memory_space<vmem>>, vector<1x16x128xf32>
    %399 = vector.shape_cast %398 : vector<1x16x128xf32> to vector<16x128xf32>
    %400 = vector.broadcast %141 : vector<1x128xf32> to vector<16x128xf32>
    %401 = arith.addf %397, %400 : vector<16x128xf32>
    %402 = vector.broadcast %109 : vector<1x128xf32> to vector<16x128xf32>
    %403 = arith.mulf %402, %399 : vector<16x128xf32>
    %404 = arith.addf %401, %403 : vector<16x128xf32>
    %405 = arith.negf %404 : vector<16x128xf32>
    %406 = math.exp %405 : vector<16x128xf32>
    %cst_234 = arith.constant 1.000000e+00 : f32
    %407 = vector.broadcast %cst_234 : f32 to vector<16x128xf32>
    %408 = arith.addf %407, %406 : vector<16x128xf32>
    %409 = arith.divf %407, %408 : vector<16x128xf32>
    %410 = arith.mulf %404, %409 : vector<16x128xf32>
    %c0_235 = arith.constant 0 : index
    %c240_236 = arith.constant 240 : index
    %c0_237 = arith.constant 0 : index
    %411 = vector.load %arg6[%c0_235, %c240_236, %c0_237] : memref<1x256x128xf32, #tpu.memory_space<vmem>>, vector<1x16x128xf32>
    %412 = vector.shape_cast %411 : vector<1x16x128xf32> to vector<16x128xf32>
    %413 = vector.shape_cast %410 : vector<16x128xf32> to vector<1x16x128xf32>
    tpu.vector_store %arg6[%c0_235, %c240_236, %c0_237], %413 {strides = array<i32>} : memref<1x256x128xf32, #tpu.memory_space<vmem>>, vector<1x16x128xf32>,
    return
  }
  func.func @transform_0(%arg0: i32) -> (i32, i32, i32) {
    %c0_i32 = arith.constant 0 : i32
    %c0_i32_0 = arith.constant 0 : i32
    %c0_i32_1 = arith.constant 0 : i32
    return %arg0, %c0_i32, %c0_i32_0 : i32, i32, i32
  }
  func.func @transform_1(%arg0: i32) -> (i32, i32) {
    %c0_i32 = arith.constant 0 : i32
    %c0_i32_0 = arith.constant 0 : i32
    %c0_i32_1 = arith.constant 0 : i32
    return %c0_i32, %c0_i32_0 : i32, i32
  }
  func.func @transform_2(%arg0: i32) -> (i32, i32) {
    %c0_i32 = arith.constant 0 : i32
    %c0_i32_0 = arith.constant 0 : i32
    %c0_i32_1 = arith.constant 0 : i32
    return %c0_i32, %c0_i32_0 : i32, i32
  }
  func.func @transform_3(%arg0: i32) -> (i32, i32) {
    %c0_i32 = arith.constant 0 : i32
    %c0_i32_0 = arith.constant 0 : i32
    %c0_i32_1 = arith.constant 0 : i32
    return %c0_i32, %c0_i32_0 : i32, i32
  }
  func.func @transform_4(%arg0: i32) -> (i32, i32) {
    %c0_i32 = arith.constant 0 : i32
    %c0_i32_0 = arith.constant 0 : i32
    %c0_i32_1 = arith.constant 0 : i32
    return %c0_i32, %c0_i32_0 : i32, i32
  }
  func.func @transform_5(%arg0: i32) -> (i32, i32, i32) {
    %c0_i32 = arith.constant 0 : i32
    %c0_i32_0 = arith.constant 0 : i32
    %c0_i32_1 = arith.constant 0 : i32
    return %arg0, %c0_i32, %c0_i32_0 : i32, i32, i32
  }
}

</mosaic_0001>

<bundles_post_ra>
// kernel: tpu_custom_call.1
= control target key start
LH: loop header
LB: loop body
LE: loop exit
PB: predicated region body
PF: predicated region fallthrough
CT: control target
= control target key end

     0   :  { %10 = vsyncpa [#allocation6], 0  ;;  %s8540_s0 = inlined_call_operand.hbm [shape: f32[2,256,128], index: 0, kind: input, shape index: {}]   ;;  %s8541_s1 = inlined_call_operand.hbm [shape: bf16[1152,128], index: 1, kind: input, shape index: {}]   ;;  %s8542_s2 = inlined_call_operand.vmem [shape: f32[1,128], index: 2, kind: input, shape index: {}]   ;;  %s8543_s3 = inlined_call_operand.hbm [shape: f32[128,128], index: 3, kind: input, shape index: {}]   ;;  %s8544_s4 = inlined_call_operand.vmem [shape: f32[1,128], index: 4, kind: input, shape index: {}]   ;;  %s8545_s5 = inlined_call_operand.hbm [shape: f32[2,256,128], index: 5, kind: output, shape index: {}]  }
   0x1   :  { %12 = vsyncpa [#allocation6 + $0x1], 0 }
   0x2   :  { %13 = vsyncpa [#allocation9], 0 }
   0x3   :  { %14 = vsyncpa [#allocation7], 0 }
   0x4   :  { %16 = vsyncpa [#allocation7 + $0x1], 0  ;;  %s7373_s18 = smov 0   ;;  %s7375_s19 = smov 0  }
   0x5   :  { %s7377_s20 = smov 0   ;;  %s7379_s21 = smov 0  }
   0x6 LB: > { %s7394_s22 = sadd.s32 4294967295, %s7327_s21   ;;  %s5582_s23 = sadd.s32 4294967294, %s7327_s21   ;;  %s7327_s21 = sphi %s7379_s21, %s8581_s21   ;;  %s7323_s20 = sphi %s7377_s20, %s8580_s20   ;;  %s7319_s19 = sphi %s7375_s19, %s8579_s19   ;;  %s7315_s18 = sphi %s7373_s18, %s8578_s18  }
   0x7   : > { %p42_p0 = scmp.ne.s32.totalorder %s7319_s19, %s7315_s18  ;;  %p8546_p1 = scmp.eq.s32.totalorder %s7394_s22, 0 }
   0x8   : > { %p156_p3 = scmp.eq.s32.totalorder %s5582_s23, 1  ;;  %p5583_p5 = scmp.ge.s32.totalorder %s7327_s21, 1 }
   0x9   : > { %p7403_p4 = por %p8546_p1, %p42_p0  ;;  %p163_p7 = scmp.lt.s32.totalorder %s7327_s21, 3 }
   0xa   : > { %p7408_p6 = por %p156_p3, %p42_p0  ;;  %s7329_s27 = smov [#allocation8]  }
   0xb   : > { %s8551_s24 = scalar_select %p7403_p4, 1, 0 }
   0xc   : > { %s8552_s25 = scalar_select %p7408_p6, 1, 0 }
   0xd   : > { %p7413_p8 = pnand %p5583_p5, %p163_p7  ;;  %s175_s28 = sshll.u32 %s7329_s27, 4  ;;  %s176_s28 = int_to_ptr.vmem [resolvable:$true] %s175_s28 }
   0xe   : > { %s7330_s30 = smov [#allocation10]   ;;  %s7190_s7 = scalar_lea.vmem %s176_s28, 9216 }
   0xf   : > { %s8553_s26 = scalar_select %p7413_p8, 1, 0 }
  0x10   : > { %p6676_p9 = pneg %p7413_p8  ;;  %s191_s6 = sshll.u32 %s7330_s30, 4  ;;  %s192_s6 = int_to_ptr.vmem [resolvable:$true] %s191_s6 }
  0x11   : > { %p7191_p13 = scmp.ne.s32.totalorder %s176_s28, %s7190_s7  ;;  %p7198_p5 = scmp.lt.s32.totalorder %s176_s28, %s176_s28 }
  0x12   : > { %p7422_p11 = pnand %p6676_p9, %p8546_p1  ;;  %p7199_p7 = scmp.lt.s32.totalorder %s7190_s7, %s7190_s7 }
  0x14   : > { %p7181_p12 = pneg %p7422_p11  ;;  %p7200_p10 = por %p7199_p7, %p7198_p5 }
  0x16   : > { %p7193_p0 = pnand %p7191_p13, %p7181_p12 }
  0x18   : > { %p7194_p3 = pneg %p7193_p0 }
  0x1a   : > { %p7201_p9 = pnand %p7200_p10, %p7194_p3 }
  0x1c   : > { %7204 = shalt.err (!%p7201_p9)
}
  0x1d   : > { %s7331_s8 = smov 64   ;;  %s7332_s9 = smov 4  }
  0x1e   : > { %6679 = dma.hbm_to_vmem [thread:$0]  (!%p7422_p11), %s8541_s1, 9216, %s176_s28, [#allocation9], %s7331_s8, %s7331_s8, %s7332_s9  }
  0x1f   : > { %s7216_s12 = scalar_lea.vmem %s192_s6, 2048  ;;  %p7224_p2 = scmp.lt.s32.totalorder %s192_s6, %s192_s6 }
  0x20   : > { %p7217_p1 = scmp.ne.s32.totalorder %s192_s6, %s7216_s12  ;;  %p7225_p6 = scmp.lt.s32.totalorder %s7216_s12, %s7216_s12 }
  0x22   : > { %p7219_p13 = pnand %p7217_p1, %p7181_p12  ;;  %p7226_p5 = por %p7225_p6, %p7224_p2 }
  0x24   : > { %p7220_p0 = pneg %p7219_p13 }
  0x26   : > { %p7227_p10 = pnand %p7226_p5, %p7220_p0 }
  0x28   : > { %7230 = shalt.err (!%p7227_p10)
}
  0x29   : > { %s8547_s13 = smov 128   ;;  %s7334_s14 = smov 8  }
  0x2a   : > { %6682 = dma.hbm_to_vmem [thread:$0]  (!%p7422_p11), %s8543_s3, 2048, %s192_s6, [#allocation9], %s8547_s13, %s8547_s13, %s7334_s14  }
  0x2b   : > { %s7448_s17 = sadd.s32 1, %s7327_s21   ;;  %s29_s27 = sadd.s32 1, %s7323_s20 }
  0x2c   : > { %s26_s23 = ssub.s32 %s7327_s21, %s7448_s17  ;;  %p36_p2 = scmp.ne.s32.totalorder %s7323_s20, %s7319_s19 }
  0x2d   : > { %p27_p1 = scmp.eq.s32.totalorder %s26_s23, 0  ;;  %p37_p6 = scmp.eq.s32.totalorder %s7327_s21, 0 }
  0x2e   : > { %p8555_p3 = scmp.eq.s32.totalorder %s7394_s22, 1  ;;  %p6693_p9 = scmp.lt.s32.totalorder %s7327_s21, 2 }
  0x2f   : > { %s7457_s28 = scalar_select %p27_p1, %s7323_s20, %s29_s27  }
  0x30   : > { %p38_p12 = por %p37_p6, %p36_p2  ;;  %p7461_p7 = por %p8555_p3, %p36_p2 }
  0x31   : > { %s208_s30 = sand.u32 1, %s7323_s20   ;;  %s6192_s6 = sshll.u32 %s7327_s21, 12 }
  0x32   : > { %s8556_s29 = scalar_select %p7461_p7, 1, 0 }
  0x33   : > { %s5587_s7 = sshll.u32 %s208_s30, 8  ;;  %s7471_s10 = scalar_lea.hbm %s8540_s0, %s6192_s6 }
  0x34   : > { %s212_s11 = scalar_lea.vmem [#allocation5], %s5587_s7  ;;  %p7475_p11 = pnand %p6693_p9, %p38_p12 }
  0x35   : > { %s219_s12 = sshll.u32 %s212_s11, 4  ;;  %s7479_s16 = scalar_lea.sflag [#allocation6], %s208_s30  ;;  %s7473_s12 = int_to_ptr.vmem [resolvable:$true] %s219_s12 }
  0x36   : > { %s7231_s23 = scalar_lea.hbm %s7471_s10, 4096  ;;  %p7233_p0 = pneg %p7475_p11 }
  0x37   : > { %p7232_p13 = scmp.ne.s32.totalorder %s7471_s10, %s7231_s23  ;;  %s7236_s7 = scalar_lea.hbm %s8540_s0, 8192 }
  0x38   : > { %p7237_p1 = scmp.lt.s32.totalorder %s7471_s10, %s8540_s0  ;;  %p7238_p2 = scmp.lt.s32.totalorder %s7236_s7, %s7231_s23 }
  0x39   : > { %p7234_p5 = pnand %p7233_p0, %p7232_p13 }
  0x3a   : > { %p7239_p6 = por %p7238_p2, %p7237_p1 }
  0x3b   : > { %p7235_p10 = pneg %p7234_p5 }
  0x3d   : > { %p7240_p12 = pnand %p7239_p6, %p7235_p10 }
  0x3f   : > { %7243 = shalt.err (!%p7240_p12)
}
  0x40   : > { %s7244_s30 = scalar_lea.vmem %s7473_s12, 4096  ;;  %s7335_s11 = smov [#allocation5]  }
  0x41   : > { %p7245_p3 = scmp.ne.s32.totalorder %s7473_s12, %s7244_s30  ;;  %s7249_s13 = sshll.u32 %s7335_s11, 4  ;;  %s7250_s13 = int_to_ptr.vmem [resolvable:$false] %s7249_s13 }
  0x42   : > { %s7251_s27 = scalar_lea.vmem %s7250_s13, 8192  ;;  %p7252_p5 = scmp.lt.s32.totalorder %s7473_s12, %s7250_s13 }
  0x43   : > { %p7247_p9 = pnand %p7245_p3, %p7233_p0  ;;  %p7253_p7 = scmp.lt.s32.totalorder %s7251_s27, %s7244_s30 }
  0x45   : > { %p7248_p13 = pneg %p7247_p9  ;;  %p7254_p4 = por %p7253_p7, %p7252_p5 }
  0x47   : > { %p7255_p8 = pnand %p7254_p4, %p7248_p13 }
  0x49   : > { %7258 = shalt.err (!%p7255_p8)
}
  0x4a   : > { %s8558_s23 = smov 128   ;;  %p8559_p0 = scmp.ne.s32.totalorder %s8553_s26, 0 }
  0x4b   : > { %6686 = dma.hbm_to_vmem [thread:$0]  (!%p7475_p11), %s7471_s10, 4096, %s7473_s12, %s7479_s16, %s8558_s23, %s8558_s23, %s7334_s14  }
  0x4c   : > { %231 = sbr.rel (%p8559_p0) target bundleno = 779 (0x30b), region = 40 }
  0x51   : > { %s7506_s6 = sand.u32 1, %s7319_s19   ;;  %p8560_p4 = scmp.ne.s32.totalorder %s8551_s24, 0 }
  0x52   : > { %s5591_s13 = sshll.u32 %s7506_s6, 8  ;;  %s234_s7 = scalar_lea.sflag [#allocation6], %s7506_s6 }
  0x53   : > { %s7512_s15 = scalar_lea.vmem [#allocation5], %s5591_s13 }
  0x54   : > { %7302 = dma.done.wait (%p8560_p4), %s234_s7, 4096  }
  0x55   : > { %7304 = vsyncadd (%p8560_p4), %s234_s7, 4294963200  ;;  %p8561_p8 = scmp.eq.s32.totalorder %s7394_s22, 0 }
  0x57   : > { %7306 = dma.done.wait (%p8561_p8), [#allocation9], 11264   ;;  %p8562_p7 = pmov %p8561_p8 }
  0x58   : > { %v7336_v0 = vmov 0   ;;  %v7337_v1 = vmov 0.0   ;;  %vm7338_vm0 = vmmov 0   ;;  %v7339_v2 = vmov 0.0|0.0   ;;  %v6740_v3 = vld [vmem:[#allocation8 + $0x38] sm:$0xff]   ;;  %v6741_v4 = vld [vmem:[#allocation8 + $0x30] sm:$0xff]  }
  0x59   : > { %7308 = vsyncadd (%p8562_p7), [#allocation9], 4294956032  ;;  %4128 = vmatprep.subr.bf16.mxu1 %v7336_v0  ;;  %6561 = vmatprep.subr.mxu0 %v7337_v1  ;;  %273 = vst [vmem:[#allocation2] sm:$0xff] %v7337_v1  ;;  %v522_v5 = vld [vmem:[#allocation10 + $0x78] sm:$0xff]  ;;  %v521_v6 = vld [vmem:[#allocation10 + $0x70] sm:$0xff]  ;;  %s8286_s12 = scalar_lea.vmem [#allocation11], %s5591_s13 }
  0x5a   : > { %274 = vst [vmem:[#allocation2 + $0x8] sm:$0xff] %v7337_v1  ;;  %275 = vst [vmem:[#allocation2 + $0x10] sm:$0xff] %v7337_v1  ;;  %6593 = vmatprep.mubr.msk.f32.mxu0 %vm7338_vm0, %v7337_v1  ;;  %4129 = vmatpush1.bf16.msra.mxu1 %v6740_v3  ;;  %v520_v7 = vld [vmem:[#allocation10 + $0x68] sm:$0xff]  ;;  %v519_v9 = vld [vmem:[#allocation10 + $0x60] sm:$0xff]  ;;  %s6517_s16 = sshll.u32 %s7394_s22, 12  ;;  %s5490_s8 = sshll.u32 %s8286_s12, 4  ;;  %s8493_s8 = int_to_ptr.vmem [resolvable:$true] %s5490_s8 }
  0x5b   : > { %276 = vst [vmem:[#allocation2 + $0x18] sm:$0xff] %v7337_v1  ;;  %277 = vst [vmem:[#allocation2 + $0x20] sm:$0xff] %v7337_v1  ;;  %4130 = vmatprep.subr.bf16.mxu1 %v7336_v0  ;;  %6562 = vmatpush3.msra.mxu0 %v522_v5  ;;  %v6742_v8 = vld [vmem:[#allocation8 + $0x28] sm:$0xff]   ;;  %v518_v10 = vld [vmem:[#allocation10 + $0x58] sm:$0xff]  ;;  %s8491_s11 = scalar_lea.hbm %s8545_s5, %s6517_s16  ;;  %s5477_s22 = scalar_lea.sflag [#allocation7], %s7506_s6 }
  0x5c   : > { %278 = vst [vmem:[#allocation2 + $0x28] sm:$0xff] %v7337_v1  ;;  %279 = vst [vmem:[#allocation2 + $0x30] sm:$0xff] %v7337_v1  ;;  %6563 = vmatprep.subr.mxu0 %v7337_v1  ;;  %v6743_v11 = vld [vmem:[#allocation8 + $0x20] sm:$0xff]   ;;  %v517_v12 = vld [vmem:[#allocation10 + $0x50] sm:$0xff]  ;;  %s7259_s27 = scalar_lea.vmem %s8493_s8, 4096  ;;  %p8575_p10 = scmp.ne.s32.totalorder %s8556_s29, 0 }
  0x5d   : > { %280 = vst [vmem:[#allocation2 + $0x38] sm:$0xff] %v7337_v1  ;;  %281 = vst [vmem:[#allocation2 + $0x40] sm:$0xff] %v7337_v1  ;;  %6564 = vmatpush3.msra.mxu0 %v521_v6  ;;  %v516_v13 = vld [vmem:[#allocation10 + $0x48] sm:$0xff]  ;;  %v6744_v14 = vld [vmem:[#allocation8 + $0x18] sm:$0xff]   ;;  %p7260_p11 = scmp.ne.s32.totalorder %s8493_s8, %s7259_s27  ;;  %s7340_s23 = smov [#allocation11]  }
  0x5e   : > { %282 = vst [vmem:[#allocation2 + $0x48] sm:$0xff] %v7337_v1  ;;  %283 = vst [vmem:[#allocation2 + $0x50] sm:$0xff] %v7337_v1  ;;  %4131 = vmatpush1.bf16.msra.mxu1 %v6741_v4  ;;  %6565 = vmatprep.subr.mxu0 %v7337_v1  ;;  %v515_v15 = vld [vmem:[#allocation10 + $0x40] sm:$0xff]  ;;  %v6745_v16 = vld [vmem:[#allocation8 + $0x10] sm:$0xff]   ;;  %s7263_s13 = sshll.u32 %s7340_s23, 4  ;;  %s7264_s13 = int_to_ptr.vmem [resolvable:$false] %s7263_s13 }
  0x5f   : > { %284 = vst [vmem:[#allocation2 + $0x58] sm:$0xff] %v7337_v1  ;;  %285 = vst [vmem:[#allocation2 + $0x60] sm:$0xff] %v7337_v1  ;;  %4132 = vmatprep.subr.bf16.mxu1 %v7336_v0  ;;  %6566 = vmatpush3.msra.mxu0 %v520_v7  ;;  %v514_v17 = vld [vmem:[#allocation10 + $0x38] sm:$0xff]  ;;  %v314_v18 = vld [vmem:[%s7512_s15] sm:$0xff]  ;;  %p7261_p1 = pnand %p7260_p11, %p8575_p10  ;;  %s7265_s7 = scalar_lea.vmem %s7264_s13, 8192 }
  0x60   : > { %286 = vst [vmem:[#allocation2 + $0x68] sm:$0xff] %v7337_v1  ;;  %287 = vst [vmem:[#allocation2 + $0x70] sm:$0xff] %v7337_v1  ;;  %6567 = vmatprep.subr.mxu0 %v7337_v1  ;;  %v315_v19 = vld [vmem:[%s7512_s15 + $0x8] sm:$0xff]  ;;  %v513_v20 = vld [vmem:[#allocation10 + $0x30] sm:$0xff]  ;;  %p7266_p6 = scmp.lt.s32.totalorder %s8493_s8, %s7264_s13  ;;  %p7267_p12 = scmp.lt.s32.totalorder %s7265_s7, %s7259_s27 }
  0x61   : > { %288 = vst [vmem:[#allocation2 + $0x78] sm:$0xff] %v7337_v1  ;;  %289 = vst [vmem:[#allocation2 + $0x80] sm:$0xff] %v7337_v1  ;;  %6568 = vmatpush3.msra.mxu0 %v519_v9  ;;  %v318_v21 = vadd.f32 %v315_v19, %v314_v18  ;;  %v326_v22 = vld [vmem:[%s7512_s15 + $0x10] sm:$0xff]  ;;  %v327_v23 = vld [vmem:[%s7512_s15 + $0x18] sm:$0xff]  ;;  %p7262_p2 = pneg %p7261_p1 }
  0x62   : > { %290 = vst [vmem:[#allocation2 + $0x88] sm:$0xff] %v7337_v1  ;;  %291 = vst [vmem:[#allocation2 + $0x90] sm:$0xff] %v7337_v1  ;;  %4133 = vmatpush1.bf16.msra.mxu1 %v6742_v8  ;;  %6569 = vmatprep.subr.mxu0 %v7337_v1  ;;  %v338_v24 = vld [vmem:[%s7512_s15 + $0x20] sm:$0xff]  ;;  %v330_v25 = vadd.f32 %v327_v23, %v326_v22  ;;  %v339_v26 = vld [vmem:[%s7512_s15 + $0x28] sm:$0xff]  ;;  %p7268_p3 = por %p7267_p12, %p7266_p6 }
  0x63   : > { %292 = vst [vmem:[#allocation2 + $0x98] sm:$0xff] %v7337_v1  ;;  %293 = vst [vmem:[#allocation2 + $0xa0] sm:$0xff] %v7337_v1  ;;  %4134 = vmatprep.subr.bf16.mxu1 %v7336_v0  ;;  %6570 = vmatpush3.msra.mxu0 %v518_v10  ;;  %v350_v27 = vld [vmem:[%s7512_s15 + $0x30] sm:$0xff]  ;;  %v351_v28 = vld [vmem:[%s7512_s15 + $0x38] sm:$0xff]  ;;  %v319_v30 = vrot.slane %v318_v21, 4  ;;  %v342_v31 = vadd.f32 %v339_v26, %v338_v24 }
  0x64   : > { %294 = vst [vmem:[#allocation2 + $0xa8] sm:$0xff] %v7337_v1  ;;  %295 = vst [vmem:[#allocation2 + $0xb0] sm:$0xff] %v7337_v1  ;;  %6571 = vmatprep.subr.mxu0 %v7337_v1  ;;  %v512_v29 = vld [vmem:[#allocation10 + $0x28] sm:$0xff]  ;;  %v354_v32 = vadd.f32 %v351_v28, %v350_v27  ;;  %v362_v33 = vld [vmem:[%s7512_s15 + $0x40] sm:$0xff]  ;;  %v6238_v36 = vpack.c.bf16 %v350_v27, %v350_v27  ;;  %v331_v38 = vrot.slane %v330_v25, 4  ;;  %p7269_p9 = pnand %p7268_p3, %p7262_p2 }
  0x65   : > { %296 = vst [vmem:[#allocation2 + $0xb8] sm:$0xff] %v7337_v1  ;;  %297 = vst [vmem:[#allocation2 + $0xc0] sm:$0xff] %v7337_v1  ;;  %6572 = vmatpush3.msra.mxu0 %v517_v12  ;;  %v363_v34 = vld [vmem:[%s7512_s15 + $0x48] sm:$0xff]  ;;  %v374_v35 = vld [vmem:[%s7512_s15 + $0x50] sm:$0xff]  ;;  %v6239_v43 = vpack.c.bf16 %v351_v28, %v351_v28  ;;  %v320_v45 = vadd.f32 %v319_v30, %v318_v21  ;;  %v343_v46 = vrot.slane %v342_v31, 4 }
  0x66   : > { %298 = vst [vmem:[#allocation2 + $0xc8] sm:$0xff] %v7337_v1  ;;  %299 = vst [vmem:[#allocation2 + $0xd0] sm:$0xff] %v7337_v1  ;;  %4135 = vmatpush1.bf16.msra.mxu1 %v6743_v11  ;;  %6573 = vmatprep.subr.mxu0 %v7337_v1  ;;  %v7590_v37 = vld [vmem:[#allocation8 + $0x8] sm:$0xff]   ;;  %v366_v39 = vadd.f32 %v363_v34, %v362_v33  ;;  %v375_v40 = vld [vmem:[%s7512_s15 + $0x58] sm:$0xff]  ;;  %v355_v47 = vrot.slane %v354_v32, 4  ;;  %v332_v52 = vadd.f32 %v331_v38, %v330_v25 }
  0x67   : > { %300 = vst [vmem:[#allocation2 + $0xd8] sm:$0xff] %v7337_v1  ;;  %301 = vst [vmem:[#allocation2 + $0xe0] sm:$0xff] %v7337_v1  ;;  %4136 = vmatprep.subr.bf16.mxu1 %v7336_v0  ;;  %6574 = vmatpush3.msra.mxu0 %v516_v13  ;;  %v386_v41 = vld [vmem:[%s7512_s15 + $0x60] sm:$0xff]  ;;  %v387_v42 = vld [vmem:[%s7512_s15 + $0x68] sm:$0xff]  ;;  %v378_v48 = vadd.f32 %v375_v40, %v374_v35  ;;  %v321_v60 = vrot.slane %v320_v45, 2  ;;  %v344_v61 = vadd.f32 %v343_v46, %v342_v31 }
  0x68   : > { %302 = vst [vmem:[#allocation2 + $0xe8] sm:$0xff] %v7337_v1  ;;  %303 = vst [vmem:[#allocation2 + $0xf0] sm:$0xff] %v7337_v1  ;;  %6575 = vmatprep.subr.mxu0 %v7337_v1  ;;  %v511_v44 = vld [vmem:[#allocation10 + $0x20] sm:$0xff]  ;;  %v7597_v49 = vld [vmem:[%s7512_s15 + $0x70] sm:$0xff]  ;;  %v367_v53 = vrot.slane %v366_v39, 4  ;;  %v390_v54 = vadd.f32 %v387_v42, %v386_v41  ;;  %v356_v62 = vadd.f32 %v355_v47, %v354_v32  ;;  %v333_v6 = vrot.slane %v332_v52, 2 }
  0x69   : > { %304 = vst [vmem:[#allocation2 + $0xf8] sm:$0xff] %v7337_v1  ;;  %305 = vst [vmem:[#allocation2 + $0x100] sm:$0xff] %v7337_v1  ;;  %6576 = vmatpush3.msra.mxu0 %v515_v15  ;;  %v7600_v50 = vld [vmem:[%s7512_s15 + $0x78] sm:$0xff]  ;;  %v7603_v51 = vld [vmem:[%s7512_s15 + $0x80] sm:$0xff]  ;;  %v379_v63 = vrot.slane %v378_v48, 4  ;;  %v345_v15 = vrot.slane %v344_v61, 2 }
  0x6a   : > { %306 = vst [vmem:[#allocation2 + $0x108] sm:$0xff] %v7337_v1  ;;  %307 = vst [vmem:[#allocation2 + $0x110] sm:$0xff] %v7337_v1  ;;  %4137 = vmatpush1.bf16.msra.mxu1 %v6744_v14  ;;  %6577 = vmatprep.subr.mxu0 %v7337_v1  ;;  %v402_v55 = vadd.f32 %v7600_v50, %v7597_v49  ;;  %v7610_v56 = vld [vmem:[%s7512_s15 + $0x88] sm:$0xff]  ;;  %v7614_v57 = vld [vmem:[%s7512_s15 + $0x90] sm:$0xff]  ;;  %v368_v7 = vadd.f32 %v367_v53, %v366_v39  ;;  %v391_v8 = vrot.slane %v390_v54, 4 }
  0x6b   : > { %308 = vst [vmem:[#allocation2 + $0x118] sm:$0xff] %v7337_v1  ;;  %309 = vst [vmem:[#allocation2 + $0x120] sm:$0xff] %v7337_v1  ;;  %4138 = vmatprep.subr.bf16.mxu1 %v7336_v0  ;;  %6578 = vmatpush3.msra.mxu0 %v514_v17  ;;  %v7617_v58 = vld [vmem:[%s7512_s15 + $0x98] sm:$0xff]  ;;  %v7628_v3 = vld [vmem:[%s7512_s15 + $0xa8] sm:$0xff]  ;;  %v322_v14 = vadd.f32 %v321_v60, %v320_v45  ;;  %v380_v17 = vadd.f32 %v379_v63, %v378_v48 }
  0x6c   : > { %310 = vst [vmem:[#allocation2 + $0x128] sm:$0xff] %v7337_v1  ;;  %311 = vst [vmem:[#allocation2 + $0x130] sm:$0xff] %v7337_v1  ;;  %6579 = vmatprep.subr.mxu0 %v7337_v1  ;;  %v510_v59 = vld [vmem:[#allocation10 + $0x18] sm:$0xff]  ;;  %v7631_v4 = vld [vmem:[%s7512_s15 + $0xb0] sm:$0xff]  ;;  %v403_v9 = vrot.slane %v402_v55, 4  ;;  %v334_v21 = vadd.f32 %v333_v6, %v332_v52  ;;  %v414_v53 = vadd.f32 %v7610_v56, %v7603_v51 }
  0x6d   : > { %312 = vst [vmem:[#allocation2 + $0x138] sm:$0xff] %v7337_v1  ;;  %313 = vst [vmem:[#allocation2 + $0x140] sm:$0x3f] %v7337_v1  ;;  %6580 = vmatpush3.msra.mxu0 %v513_v20  ;;  %v6747_v5 = vld [vmem:[#allocation8] sm:$0xff]   ;;  %v7636_v10 = vld [vmem:[%s7512_s15 + $0xb8] sm:$0xff]  ;;  %v381_v31 = vrot.slane %v380_v17, 2  ;;  %v426_v63 = vadd.f32 %v7617_v58, %v7614_v57 }
  0x6e   : > { %780 = vst [vmem:[#allocation3] sm:$0xf] %v7339_v2  ;;  %781 = vst [vmem:[#allocation3 + $0x24] sm:$0xf] %v7339_v2  ;;  %4139 = vmatpush1.bf16.msra.mxu1 %v6745_v16  ;;  %6581 = vmatprep.subr.mxu0 %v7337_v1  ;;  %v7625_v2 = vld [vmem:[%s7512_s15 + $0xa0] sm:$0xff]  ;;  %v7643_v12 = vld [vmem:[%s7512_s15 + $0xc8] sm:$0xff] }
  0x6f   : > { %316 = vst [vmem:[#allocation2 + $0x13] sm:$0xff] %v314_v18  ;;  %317 = vst [vmem:[#allocation2 + $0x1b] sm:$0xff] %v315_v19  ;;  %4140 = vmatprep.subr.bf16.mxu1 %v7336_v0  ;;  %6582 = vmatpush3.msra.mxu0 %v512_v29  ;;  %v7640_v11 = vld [vmem:[%s7512_s15 + $0xc0] sm:$0xff]  ;;  %v509_v13 = vld [vmem:[#allocation10 + $0x10] sm:$0xff]  ;;  %v357_v16 = vrot.slane %v356_v62, 2  ;;  %v346_v29 = vadd.f32 %v345_v15, %v344_v61  ;;  %v335_v32 = vrot.slane %v334_v21, 1 }
  0x70   : > { %328 = vst [vmem:[#allocation2 + $0x25] sm:$0xff] %v326_v22  ;;  %329 = vst [vmem:[#allocation2 + $0x2d] sm:$0xff] %v327_v23  ;;  %6583 = vmatprep.subr.mxu0 %v7337_v1  ;;  %v7650_v18 = vld [vmem:[%s7512_s15 + $0xd0] sm:$0xff]  ;;  %v7653_v19 = vld [vmem:[%s7512_s15 + $0xd8] sm:$0xff]  ;;  %v369_v22 = vrot.slane %v368_v7, 2  ;;  %v392_v23 = vadd.f32 %v391_v8, %v390_v54 }
  0x71   : > { %340 = vst [vmem:[#allocation2 + $0x37] sm:$0xff] %v338_v24  ;;  %341 = vst [vmem:[#allocation2 + $0x3f] sm:$0xff] %v339_v26  ;;  %v7656_v20 = vld [vmem:[%s7512_s15 + $0xe0] sm:$0xff]  ;;  %6584 = vmatpush3.msra.mxu0 %v511_v44  ;;  %v404_v24 = vadd.f32 %v403_v9, %v402_v55  ;;  %v7662_v25 = vld [vmem:[%s7512_s15 + $0xe8] sm:$0xff]  ;;  %v358_v30 = vadd.f32 %v357_v16, %v356_v62  ;;  %v347_v38 = vrot.slane %v346_v29, 1  ;;  %v415_v62 = vrot.slane %v414_v53, 4 }
  0x72   : > { %352 = vst [vmem:[#allocation2 + $0x49] sm:$0xff] %v350_v27  ;;  %353 = vst [vmem:[#allocation2 + $0x51] sm:$0xff] %v351_v28  ;;  %4141 = vmatpush1.bf16.msra.mxu1 %v7590_v37  ;;  %v7666_v26 = vld [vmem:[%s7512_s15 + $0xf0] sm:$0xff]  ;;  %v7669_v27 = vld [vmem:[%s7512_s15 + $0xf8] sm:$0xff]  ;;  %6585 = vmatprep.subr.mxu0 %v7337_v1  ;;  %v323_v28 = vrot.slane %v322_v14, 1 }
  0x73   : > { %364 = vst [vmem:[#allocation2 + $0x5b] sm:$0xff] %v362_v33  ;;  %365 = vst [vmem:[#allocation2 + $0x63] sm:$0xff] %v363_v34  ;;  %4142 = vmatprep.subr.bf16.mxu1 %v7336_v0  ;;  %6586 = vmatpush3.msra.mxu0 %v510_v59  ;;  %v370_v33 = vadd.f32 %v369_v22, %v368_v7  ;;  %v393_v34 = vrot.slane %v392_v23, 2  ;;  %v359_v39 = vrot.slane %v358_v30, 1  ;;  %v507_v46 = vld [vmem:[#allocation10] sm:$0xff]  ;;  %v6749_v6 = vld [vmem:[#allocation8 + $0x70] sm:$0xff]  }
  0x74   : > { %376 = vst [vmem:[#allocation2 + $0x6d] sm:$0xff] %v374_v35  ;;  %377 = vst [vmem:[#allocation2 + $0x75] sm:$0xff] %v375_v40  ;;  %v405_v35 = vrot.slane %v404_v24, 2  ;;  %6587 = vmatprep.subr.mxu0 %v7337_v1  ;;  %v324_v37 = vadd.f32 %v323_v28, %v322_v14  ;;  %v382_v40 = vadd.f32 %v381_v31, %v380_v17 }
  0x75   : > { %388 = vst [vmem:[#allocation2 + $0x7f] sm:$0xff] %v386_v41  ;;  %389 = vst [vmem:[#allocation2 + $0x87] sm:$0xff] %v387_v42  ;;  %v6748_v41 = vld [vmem:[#allocation8 + $0x78] sm:$0xff]   ;;  %6588 = vmatpush3.msra.mxu0 %v509_v13  ;;  %v336_v42 = vadd.f32 %v335_v32, %v334_v21  ;;  %v394_v44 = vadd.f32 %v393_v34, %v392_v23  ;;  %v348_v47 = vadd.f32 %v347_v38, %v346_v29  ;;  %v6750_v21 = vld [vmem:[#allocation8 + $0x68] sm:$0xff]  }
  0x76   : > { %1005 = vst [vmem:[#allocation3 + $0x148] sm:$0xf] %v6238_v36  ;;  %400 = vst [vmem:[#allocation2 + $0x91] sm:$0xff] %v7597_v49  ;;  %v508_v36 = vld [vmem:[#allocation10 + $0x8] sm:$0xff]  ;;  %4143 = vmatpush1.bf16.msra.mxu1 %v6747_v5  ;;  %v406_v45 = vadd.f32 %v405_v35, %v404_v24  ;;  %6589 = vmatprep.subr.mxu0 %v7337_v1  ;;  %v360_v48 = vadd.f32 %v359_v39, %v358_v30  ;;  %v383_v52 = vrot.slane %v382_v40, 1 }
  0x77   : > { %401 = vst [vmem:[#allocation2 + $0x99] sm:$0xff] %v7600_v50  ;;  %412 = vst [vmem:[#allocation2 + $0xa3] sm:$0xff] %v7603_v51  ;;  %4144 = vmatprep.subr.bf16.mxu1 %v7336_v0  ;;  %6590 = vmatpush3.msra.mxu0 %v508_v36  ;;  %v337_v54 = vadd.f32 %v336_v42, %v324_v37  ;;  %v395_v59 = vrot.slane %v394_v44, 1  ;;  %v438_v5 = vadd.f32 %v7628_v3, %v7625_v2  ;;  %v6751_v37 = vld [vmem:[#allocation8 + $0x60] sm:$0xff]   ;;  %v816_v42 = vld [vmem:[#allocation2 + $0x1] sm:$0xff] }
  0x78   : > { %1006 = vst [vmem:[#allocation3 + $0x16c] sm:$0xf] %v6239_v43  ;;  %413 = vst [vmem:[#allocation2 + $0xab] sm:$0xff] %v7610_v56  ;;  %v371_v43 = vrot.slane %v370_v33, 1  ;;  %v407_v60 = vrot.slane %v406_v45, 1  ;;  %6591 = vmatprep.subr.mxu0 %v7337_v1  ;;  %v384_v61 = vadd.f32 %v383_v52, %v382_v40  ;;  %v416_v8 = vadd.f32 %v415_v62, %v414_v53  ;;  %v602_v52 = vld [vmem:[#allocation2 + $0x10] sm:$0xff] }
  0x79   : > { %424 = vst [vmem:[#allocation2 + $0xb5] sm:$0xff] %v7614_v57  ;;  %425 = vst [vmem:[#allocation2 + $0xbd] sm:$0xff] %v7617_v58  ;;  %6592 = vmatpush3.msra.mxu0 %v507_v46  ;;  %v349_v7 = vadd.f32 %v348_v47, %v337_v54  ;;  %v396_v51 = vadd.f32 %v395_v59, %v394_v44  ;;  %v427_v1 = vrot.slane %v426_v63, 4  ;;  %v439_v9 = vrot.slane %v438_v5, 4  ;;  %v603_v59 = vld [vmem:[#allocation2 + $0x18] sm:$0xff] }
  0x7a   : > { %436 = vst [vmem:[#allocation2 + $0xc7] sm:$0xff] %v7625_v2  ;;  %437 = vst [vmem:[#allocation2 + $0xcf] sm:$0xff] %v7628_v3  ;;  %v372_v55 = vadd.f32 %v371_v43, %v370_v33  ;;  %4145 = vmatpush2.bf16.msra.mxu1 %v6748_v41  ;;  %v408_v56 = vadd.f32 %v407_v60, %v406_v45  ;;  %4305 = vmatprep.subr.bf16.mxu0 %v7336_v0  ;;  %v417_v14 = vrot.slane %v416_v8, 2  ;;  %v817_v43 = vld [vmem:[#allocation2 + $0x9] sm:$0xff] }
  0x7b   : > { %448 = vst [vmem:[#allocation2 + $0xd9] sm:$0xff] %v7631_v4  ;;  %449 = vst [vmem:[#allocation2 + $0xe1] sm:$0xff] %v7636_v10  ;;  %4146 = vmatprep.subr.bf16.mxu1 %v7336_v0  ;;  %v450_v13 = vadd.f32 %v7636_v10, %v7631_v4  ;;  %v361_v57 = vadd.f32 %v360_v48, %v349_v7  ;;  %v462_v58 = vadd.f32 %v7643_v12, %v7640_v11  ;;  %v6753_v48 = vld [vmem:[#allocation8 + $0x58] sm:$0xff]  }
  0x7c   : > { %460 = vst [vmem:[#allocation2 + $0xeb] sm:$0xff] %v7640_v11  ;;  %461 = vst [vmem:[#allocation2 + $0xf3] sm:$0xff] %v7643_v12  ;;  %v474_v2 = vadd.f32 %v7653_v19, %v7650_v18  ;;  %v486_v3 = vadd.f32 %v7662_v25, %v7656_v20  ;;  %v428_v15 = vadd.f32 %v427_v1, %v426_v63  ;;  %v604_v1 = vld [vmem:[#allocation2 + $0x20] sm:$0xff] }
  0x7d   : > { %472 = vst [vmem:[#allocation2 + $0xfd] sm:$0xff] %v7650_v18  ;;  %473 = vst [vmem:[#allocation2 + $0x105] sm:$0xff] %v7653_v19  ;;  %v440_v16 = vadd.f32 %v439_v9, %v438_v5  ;;  %v451_v17 = vrot.slane %v450_v13, 4  ;;  %v373_v22 = vadd.f32 %v372_v55, %v361_v57  ;;  %v463_v23 = vrot.slane %v462_v58, 4  ;;  %v818_v5 = vld [vmem:[#allocation2 + $0x11] sm:$0xff]  ;;  %v605_v9 = vld [vmem:[#allocation2 + $0x28] sm:$0xff] }
  0x7e   : > { %484 = vst [vmem:[#allocation2 + $0x10f] sm:$0xff] %v7656_v20  ;;  %485 = vst [vmem:[#allocation2 + $0x117] sm:$0xff] %v7662_v25  ;;  %4147 = vmatpush2.bf16.msra.mxu1 %v6749_v6  ;;  %v475_v24 = vrot.slane %v474_v2, 4  ;;  %v487_v4 = vrot.slane %v486_v3, 4  ;;  %v418_v10 = vadd.f32 %v417_v14, %v416_v8  ;;  %v429_v11 = vrot.slane %v428_v15, 2  ;;  %v819_v6 = vld [vmem:[#allocation2 + $0x19] sm:$0xff] }
  0x7f   : > { %496 = vst [vmem:[#allocation2 + $0x121] sm:$0xff] %v7666_v26  ;;  %497 = vst [vmem:[#allocation2 + $0x129] sm:$0xff] %v7669_v27  ;;  %4148 = vmatprep.subr.bf16.mxu1 %v7336_v0  ;;  %v441_v12 = vrot.slane %v440_v16, 2  ;;  %v452_v28 = vadd.f32 %v451_v17, %v450_v13  ;;  %v385_v18 = vadd.f32 %v384_v61, %v373_v22 }
  0x80   : > { %v464_v19 = vadd.f32 %v463_v23, %v462_v58  ;;  %v476_v29 = vadd.f32 %v475_v24, %v474_v2  ;;  %v488_v20 = vadd.f32 %v487_v4, %v486_v3  ;;  %v419_v25 = vrot.slane %v418_v10, 1  ;;  %v820_v58 = vld [vmem:[#allocation2 + $0x21] sm:$0xff]  ;;  %v821_v2 = vld [vmem:[#allocation2 + $0x29] sm:$0xff] }
  0x81   : > { %v430_v30 = vadd.f32 %v429_v11, %v428_v15  ;;  %v442_v31 = vadd.f32 %v441_v12, %v440_v16  ;;  %v453_v32 = vrot.slane %v452_v28, 2  ;;  %v397_v33 = vadd.f32 %v396_v51, %v385_v18  ;;  %v606_v4 = vld [vmem:[#allocation2 + $0x30] sm:$0xff] }
  0x82   : > { %4149 = vmatpush2.bf16.msra.mxu1 %v6750_v21  ;;  %v465_v34 = vrot.slane %v464_v19, 2  ;;  %v477_v35 = vrot.slane %v476_v29, 2  ;;  %v489_v36 = vrot.slane %v488_v20, 2  ;;  %v420_v38 = vadd.f32 %v419_v25, %v418_v10  ;;  %v6755_v21 = vld [vmem:[#allocation8 + $0x50] sm:$0xff]  }
  0x83   : > { %4150 = vmatprep.subr.bf16.mxu1 %v7336_v0  ;;  %v431_v39 = vrot.slane %v430_v30, 1  ;;  %v443_v40 = vrot.slane %v442_v31, 1  ;;  %v454_v41 = vadd.f32 %v453_v32, %v452_v28  ;;  %v409_v44 = vadd.f32 %v408_v56, %v397_v33  ;;  %v607_v28 = vld [vmem:[#allocation2 + $0x38] sm:$0xff] }
  0x84   : > { %v466_v45 = vadd.f32 %v465_v34, %v464_v19  ;;  %v478_v46 = vadd.f32 %v477_v35, %v476_v29  ;;  %v7698_v47 = vadd.f32 %v489_v36, %v488_v20  ;;  %v498_v55 = vadd.f32 %v7669_v27, %v7666_v26  ;;  %v822_v19 = vld [vmem:[#allocation2 + $0x31] sm:$0xff]  ;;  %v823_v29 = vld [vmem:[#allocation2 + $0x39] sm:$0xff] }
  0x85   : > { %v432_v53 = vadd.f32 %v431_v39, %v430_v30  ;;  %v455_v54 = vrot.slane %v454_v41, 1  ;;  %v421_v60 = vadd.f32 %v420_v38, %v409_v44  ;;  %v444_v61 = vadd.f32 %v443_v40, %v442_v31  ;;  %v608_v39 = vld [vmem:[#allocation2 + $0x40] sm:$0xff]  ;;  %v609_v40 = vld [vmem:[#allocation2 + $0x48] sm:$0xff] }
  0x86   : > { %v467_v62 = vrot.slane %v466_v45, 1  ;;  %v479_v63 = vrot.slane %v478_v46, 1  ;;  %4151 = vmatpush2.bf16.msra.mxu1 %v6751_v37  ;;  %v491_v7 = vrot.slane %v7698_v47, 1  ;;  %v499_v51 = vrot.slane %v498_v55, 4  ;;  %v6757_v37 = vld [vmem:[#allocation8 + $0x48] sm:$0xff]  }
  0x87   : > { %4152 = vmatprep.subr.bf16.mxu1 %v7336_v0  ;;  %v6229_v56 = vpack.c.bf16 %v816_v42, %v816_v42  ;;  %v6230_v8 = vpack.c.bf16 %v817_v43, %v817_v43  ;;  %v433_v13 = vadd.f32 %v432_v53, %v421_v60  ;;  %v456_v57 = vadd.f32 %v455_v54, %v454_v41  ;;  %v824_v41 = vld [vmem:[#allocation2 + $0x41] sm:$0xff]  ;;  %v610_v60 = vld [vmem:[#allocation2 + $0x50] sm:$0xff] }
  0x88   : > { %v468_v26 = vadd.f32 %v467_v62, %v466_v45  ;;  %v480_v27 = vadd.f32 %v479_v63, %v478_v46  ;;  %v500_v3 = vadd.f32 %v499_v51, %v498_v55  ;;  %v6195_v14 = vpack.c.bf16 %v602_v52, %v602_v52  ;;  %v6752_v52 = vld [vmem:[#allocation8 + $0xb8] sm:$0xff]   ;;  %v6761_v53 = vld [vmem:[#allocation3] ss:$36 sps:$4 sm:$0xff]   ;;  %v6756_v51 = vld [vmem:[#allocation8 + $0xa8] sm:$0xff]  }
  0x89   : > { %996 = vst [vmem:[#allocation3 + $0x4] sm:$0xf] %v6229_v56  ;;  %997 = vst [vmem:[#allocation3 + $0x28] sm:$0xf] %v6230_v8  ;;  %v6196_v15 = vpack.c.bf16 %v603_v59, %v603_v59  ;;  %v6231_v16 = vpack.c.bf16 %v818_v5, %v818_v5  ;;  %v445_v17 = vadd.f32 %v444_v61, %v433_v13  ;;  %v6766_v55 = vld [vmem:[#allocation8 + $0x138] sm:$0xff]   ;;  %v611_v61 = vld [vmem:[#allocation2 + $0x58] sm:$0xff] }
  0x8a   : > { %4153 = vmatpush2.bf16.msra.mxu1 %v6753_v48  ;;  %v6232_v22 = vpack.c.bf16 %v819_v6, %v819_v6  ;;  %v6197_v23 = vpack.c.bf16 %v604_v1, %v604_v1  ;;  %v6198_v24 = vpack.c.bf16 %v605_v9, %v605_v9  ;;  %v501_v10 = vrot.slane %v500_v3, 2  ;;  %782 = vst [vmem:[#allocation3 + $0x48] sm:$0xf] %v6195_v14  ;;  %v6754_v62 = vld [vmem:[#allocation8 + $0xb0] sm:$0xff]   ;;  %v6780_v9 = vld [vmem:[#allocation8 + $0x128] sm:$0xff]  }
  0x8b   : > { %4154 = vmatprep.subr.bf16.mxu1 %v7336_v0  ;;  %783 = vst [vmem:[#allocation3 + $0x6c] sm:$0xf] %v6196_v15  ;;  %998 = vst [vmem:[#allocation3 + $0x4c] sm:$0xf] %v6231_v16  ;;  %v6233_v11 = vpack.c.bf16 %v820_v58, %v820_v58  ;;  %v6234_v12 = vpack.c.bf16 %v821_v2, %v821_v2  ;;  %v6199_v18 = vpack.c.bf16 %v606_v4, %v606_v4  ;;  %v6772_v6 = vld [vmem:[#allocation8 + $0x130] sm:$0xff]   ;;  %v612_v15 = vld [vmem:[#allocation2 + $0x60] sm:$0xff] }
  0x8c   : > { %v457_v20 = vadd.f32 %v456_v57, %v445_v17  ;;  %999 = vst [vmem:[#allocation3 + $0x70] sm:$0xf] %v6232_v22  ;;  %784 = vst [vmem:[#allocation3 + $0x90] sm:$0xf] %v6197_v23  ;;  %v6200_v25 = vpack.c.bf16 %v607_v28, %v607_v28  ;;  %v6235_v30 = vpack.c.bf16 %v822_v19, %v822_v19  ;;  %v1032_v1 = vld [vmem:[#allocation2 + $0x2] sm:$0xff]  ;;  %v1033_v13 = vld [vmem:[#allocation2 + $0xa] sm:$0xff] }
  0x8d   : > { %785 = vst [vmem:[#allocation3 + $0xb4] sm:$0xf] %v6198_v24  ;;  %v6236_v31 = vpack.c.bf16 %v823_v29, %v823_v29  ;;  %v502_v32 = vadd.f32 %v501_v10, %v500_v3  ;;  %1000 = vst [vmem:[#allocation3 + $0x94] sm:$0xf] %v6233_v11  ;;  %v6247_v33 = vpack.c.bf16 %v7597_v49, %v7597_v49  ;;  %v613_v16 = vld [vmem:[#allocation2 + $0x68] sm:$0xff]  ;;  %v6758_v4 = vld [vmem:[#allocation8 + $0xa0] sm:$0xff]  }
  0x8e   : > { %1001 = vst [vmem:[#allocation3 + $0xb8] sm:$0xf] %v6234_v12  ;;  %786 = vst [vmem:[#allocation3 + $0xd8] sm:$0xf] %v6199_v18  ;;  %v6248_v34 = vpack.c.bf16 %v7600_v50, %v7600_v50  ;;  %v469_v35 = vadd.f32 %v468_v26, %v457_v20  ;;  %v492_v36 = vadd.f32 %v491_v7, %v7698_v47  ;;  %4155 = vmatpush2.bf16.msra.mxu1 %v6755_v21  ;;  %v6759_v47 = vld [vmem:[#allocation8 + $0x40] sm:$0xff]   ;;  %v828_v17 = vld [vmem:[#allocation2 + $0x61] sm:$0xff] }
  0x8f   : > { %787 = vst [vmem:[#allocation3 + $0xfc] sm:$0xf] %v6200_v25  ;;  %1002 = vst [vmem:[#allocation3 + $0xdc] sm:$0xf] %v6235_v30  ;;  %v503_v38 = vrot.slane %v502_v32, 1  ;;  %4156 = vmatprep.subr.bf16.mxu1 %v7336_v0  ;;  %v6201_v42 = vpack.c.bf16 %v608_v39, %v608_v39  ;;  %v6202_v43 = vpack.c.bf16 %v609_v40, %v609_v40  ;;  %v827_v7 = vld [vmem:[#allocation2 + $0x59] sm:$0xff] }
  0x90   : > { %1003 = vst [vmem:[#allocation3 + $0x100] sm:$0xf] %v6236_v31  ;;  %1014 = vst [vmem:[#allocation3 + $0x28c] sm:$0xf] %v6247_v33  ;;  %v481_v49 = vadd.f32 %v480_v27, %v469_v35  ;;  %v6237_v50 = vpack.c.bf16 %v824_v41, %v824_v41  ;;  %v6763_v45 = vld [vmem:[#allocation3 + $0x4] ss:$36 sps:$4 sm:$0xff]   ;;  %v6203_v63 = vpack.c.bf16 %v610_v60, %v610_v60 }
  0x91   : > { %1015 = vst [vmem:[#allocation3 + $0x2b0] sm:$0xf] %v6248_v34  ;;  %v504_v44 = vadd.f32 %v503_v38, %v502_v32  ;;  %788 = vst [vmem:[#allocation3 + $0x120] sm:$0xf] %v6201_v42  ;;  %4160 = vmatprep.mubr.bf16.mxu1 %v6763_v45  ;;  %v6204_v5 = vpack.c.bf16 %v611_v61, %v611_v61  ;;  %v6240_v56 = vpack.c.bf16 %v827_v7, %v827_v7  ;;  %v1248_v26 = vld [vmem:[#allocation2 + $0x12] sm:$0xff]  ;;  %v1249_v27 = vld [vmem:[#allocation2 + $0x1a] sm:$0xff] }
  0x92   : > { %v493_v46 = vadd.f32 %v492_v36, %v481_v49  ;;  %4157 = vmatpush2.bf16.msra.mxu1 %v6757_v37  ;;  %789 = vst [vmem:[#allocation3 + $0x144] sm:$0xf] %v6202_v43  ;;  %1004 = vst [vmem:[#allocation3 + $0x124] sm:$0xf] %v6237_v50  ;;  %v6769_v8 = vld [vmem:[#allocation3 + $0x48] ss:$36 sps:$4 sm:$0xff]   ;;  %v6265_v57 = vpack.c.bf16 %v1032_v1, %v1032_v1  ;;  %v6266_v2 = vpack.c.bf16 %v1033_v13, %v1033_v13 }
  0x93   : > { %4158 = vmatprep.subr.bf16.mxu1 %v7336_v0  ;;  %v6767_v59 = vld [vmem:[#allocation3 + $0x4c] ss:$36 sps:$4 sm:$0xff]   ;;  %790 = vst [vmem:[#allocation3 + $0x168] sm:$0xf] %v6203_v63  ;;  %791 = vst [vmem:[#allocation3 + $0x18c] sm:$0xf] %v6204_v5  ;;  %v6301_v3 = vpack.c.bf16 %v1248_v26, %v1248_v26  ;;  %v6302_v14 = vpack.c.bf16 %v1249_v27, %v1249_v27  ;;  %v6205_v21 = vpack.c.bf16 %v612_v15, %v612_v15 }
  0x94   : > { %v505_v48 = vadd.f32 %v504_v44, %v493_v46  ;;  %1007 = vst [vmem:[#allocation3 + $0x190] sm:$0xf] %v6240_v56  ;;  %1212 = vst [vmem:[#allocation3 + $0x8] sm:$0xf] %v6265_v57  ;;  %v6206_v22 = vpack.c.bf16 %v613_v16, %v613_v16  ;;  %v829_v23 = vld [vmem:[#allocation2 + $0x69] sm:$0xff]  ;;  %v6241_v24 = vpack.c.bf16 %v828_v17, %v828_v17  ;;  %v6787_v29 = vld [vmem:[#allocation8 + $0x120] sm:$0xff]  }
  0x95   : > { %v6773_v58 = vld [vmem:[#allocation3 + $0x94] ss:$36 sps:$4 sm:$0xff]   ;;  %1213 = vst [vmem:[#allocation3 + $0x2c] sm:$0xf] %v6266_v2  ;;  %1428 = vst [vmem:[#allocation3 + $0xc] sm:$0xf] %v6301_v3  ;;  %v6242_v10 = vpack.c.bf16 %v829_v23, %v829_v23 }
  0x96   : > { %v506_v54 = vmul.f32 0.00390625, %v505_v48  ;;  %4159 = vmatpush2.bf16.msra.mxu1 %v6759_v47  ;;  %1429 = vst [vmem:[#allocation3 + $0x30] sm:$0xf] %v6302_v14  ;;  %1214 = vst [vmem:[#allocation3 + $0x50] sm:$0xf] %v6301_v3  ;;  %v1250_v11 = vld [vmem:[#allocation2 + $0x22] sm:$0xff] }
  0x97   : > { %4482 = vmatprep.subr.bf16.mxu1 %v7336_v0  ;;  %1215 = vst [vmem:[#allocation3 + $0x74] sm:$0xf] %v6302_v14  ;;  %v1251_v12 = vld [vmem:[#allocation2 + $0x2a] sm:$0xff]  ;;  %792 = vst [vmem:[#allocation3 + $0x1b0] sm:$0xf] %v6205_v21  ;;  %v6303_v28 = vpack.c.bf16 %v1250_v11, %v1250_v11  ;;  %v615_v25 = vld [vmem:[#allocation2 + $0x78] sm:$0xff] }
  0x98   : > { %6594 = vmatmul.mubr.f32.vlgmr.msra.gmra.mxu0 %v506_v54  ;;  %793 = vst [vmem:[#allocation3 + $0x1d4] sm:$0xf] %v6206_v22  ;;  %1008 = vst [vmem:[#allocation3 + $0x1b4] sm:$0xf] %v6241_v24  ;;  %v6304_v18 = vpack.c.bf16 %v1251_v12, %v1251_v12  ;;  %v6760_v19 = vld [vmem:[#allocation8 + $0x98] sm:$0xff]   ;;  %v6208_v33 = vpack.c.bf16 %v615_v25, %v615_v25  ;;  %v831_v35 = vld [vmem:[#allocation2 + $0x79] sm:$0xff] }
  0x99   : > { %4306 = vmatpush1.bf16.msra.mxu0 %v6752_v52  ;;  %4161 = vmatmul.mubr.bf16.vlgmr.msra.gmra.mxu1 %v6761_v53  ;;  %1009 = vst [vmem:[#allocation3 + $0x1d8] sm:$0xf] %v6242_v10  ;;  %v614_v20 = vld [vmem:[#allocation2 + $0x70] sm:$0xff]  ;;  %v6775_v30 = vld [vmem:[#allocation3 + $0x90] ss:$36 sps:$4 sm:$0xff]   ;;  %v6244_v38 = vpack.c.bf16 %v831_v35, %v831_v35  ;;  %v6764_v42 = vld [vmem:[#allocation8 + $0x90] sm:$0xff]  }
  0x9a   : > { %4307 = vmatprep.subr.bf16.mxu0 %v7336_v0  ;;  %4483 = vmatpush1.bf16.msra.mxu1 %v6766_v55  ;;  %v6778_v31 = vld [vmem:[#allocation3 + $0xdc] ss:$36 sps:$4 sm:$0xff]   ;;  %1430 = vst [vmem:[#allocation3 + $0x54] sm:$0xf] %v6303_v28  ;;  %1431 = vst [vmem:[#allocation3 + $0x78] sm:$0xf] %v6304_v18  ;;  %v6207_v32 = vpack.c.bf16 %v614_v20, %v614_v20 }
  0x9b   : > { %4168 = vmatprep.mubr.bf16.mxu1 %v6767_v59  ;;  %4484 = vmatprep.subr.bf16.mxu1 %v7336_v0  ;;  %1216 = vst [vmem:[#allocation3 + $0x98] sm:$0xf] %v6303_v28  ;;  %1217 = vst [vmem:[#allocation3 + $0xbc] sm:$0xf] %v6304_v18  ;;  %v830_v34 = vld [vmem:[#allocation2 + $0x71] sm:$0xff]  ;;  %v1253_v39 = vld [vmem:[#allocation2 + $0x3a] sm:$0xff] }
  0x9c   : > { %v1252_v36 = vld [vmem:[#allocation2 + $0x32] sm:$0xff]  ;;  %794 = vst [vmem:[#allocation3 + $0x1f8] sm:$0xf] %v6207_v32  ;;  %795 = vst [vmem:[#allocation3 + $0x21c] sm:$0xf] %v6208_v33  ;;  %v6243_v37 = vpack.c.bf16 %v830_v34, %v830_v34  ;;  %v6306_v49 = vpack.c.bf16 %v1253_v39, %v1253_v39  ;;  %v616_v50 = vld [vmem:[#allocation2 + $0x80] sm:$0xff] }
  0x9d   : > { %4308 = vmatpush1.bf16.msra.mxu0 %v6754_v62  ;;  %v6305_v40 = vpack.c.bf16 %v1252_v36, %v1252_v36  ;;  %v6794_v41 = vld [vmem:[#allocation8 + $0x118] sm:$0xff]   ;;  %1011 = vst [vmem:[#allocation3 + $0x220] sm:$0xf] %v6244_v38  ;;  %v617_v44 = vld [vmem:[#allocation2 + $0x88] sm:$0xff]  ;;  %v6209_v45 = vpack.c.bf16 %v616_v50, %v616_v50  ;;  %v6765_v52 = vld [vmem:[#allocation8 + $0x88] sm:$0xff]  }
  0x9e   : > { %4309 = vmatprep.subr.bf16.mxu0 %v7336_v0  ;;  %4485 = vmatpush1.bf16.msra.mxu1 %v6772_v6  ;;  %v6797_v43 = vld [vmem:[#allocation3 + $0xc] ss:$36 sps:$4 sm:$0xff]   ;;  %1010 = vst [vmem:[#allocation3 + $0x1fc] sm:$0xf] %v6243_v37  ;;  %1433 = vst [vmem:[#allocation3 + $0xc0] sm:$0xf] %v6306_v49  ;;  %v6210_v47 = vpack.c.bf16 %v617_v44, %v617_v44 }
  0x9f   : > { %4486 = vmatprep.subr.bf16.mxu1 %v7336_v0  ;;  %1432 = vst [vmem:[#allocation3 + $0x9c] sm:$0xf] %v6305_v40  ;;  %1218 = vst [vmem:[#allocation3 + $0xe0] sm:$0xf] %v6305_v40  ;;  %v832_v46 = vld [vmem:[#allocation2 + $0x81] sm:$0xff]  ;;  %4337 = vmatprep.mubr.bf16.mxu0 %v6797_v43  ;;  %v833_v55 = vld [vmem:[#allocation2 + $0x89] sm:$0xff] }
  0xa0   : > { %1219 = vst [vmem:[#allocation3 + $0x104] sm:$0xf] %v6306_v49  ;;  %v6245_v48 = vpack.c.bf16 %v832_v46, %v832_v46  ;;  %v6802_v53 = vld [vmem:[#allocation8 + $0x110] sm:$0xff]   ;;  %796 = vst [vmem:[#allocation3 + $0x240] sm:$0xf] %v6209_v45  ;;  %v6246_v60 = vpack.c.bf16 %v833_v55, %v833_v55  ;;  %v6812_v5 = vld [vmem:[#allocation8 + $0x108] sm:$0xff]  }
  0xa1   : > { %4310 = vmatpush1.bf16.msra.mxu0 %v6756_v51  ;;  %4169 = vmatmul.mubr.bf16.gmra.mxu1 %v6769_v8  ;;  %v6781_v54 = vld [vmem:[#allocation3 + $0xd8] ss:$36 sps:$4 sm:$0xff]   ;;  %797 = vst [vmem:[#allocation3 + $0x264] sm:$0xf] %v6210_v47  ;;  %v6784_v59 = vld [vmem:[#allocation3 + $0x124] ss:$36 sps:$4 sm:$0xff]  }
  0xa2   : > { %4311 = vmatprep.subr.bf16.mxu0 %v7336_v0  ;;  %4176 = vmatprep.mubr.bf16.mxu1 %v6773_v58  ;;  %1012 = vst [vmem:[#allocation3 + $0x244] sm:$0xf] %v6245_v48  ;;  %v1254_v61 = vld [vmem:[#allocation2 + $0x42] sm:$0xff]  ;;  %v1255_v62 = vld [vmem:[#allocation2 + $0x4a] sm:$0xff]  ;;  %1013 = vst [vmem:[#allocation3 + $0x268] sm:$0xf] %v6246_v60 }
  0xa3   : > { %4487 = vmatpush1.bf16.msra.mxu1 %v6780_v9  ;;  %v6307_v63 = vpack.c.bf16 %v1254_v61, %v1254_v61  ;;  %v6308_v6 = vpack.c.bf16 %v1255_v62, %v1255_v62  ;;  %v6770_v7 = vld [vmem:[#allocation8 + $0x80] sm:$0xff]   ;;  %v618_v51 = vld [vmem:[#allocation2 + $0x90] sm:$0xff]  ;;  %v6786_v27 = vld [vmem:[#allocation3 + $0x120] ss:$36 sps:$4 sm:$0xff]  }
  0xa4   : > { %4488 = vmatprep.subr.bf16.mxu1 %v7336_v0  ;;  %v619_v56 = vld [vmem:[#allocation2 + $0x98] sm:$0xff]  ;;  %v6771_v8 = vld [vmem:[#allocation8 + $0xf8] sm:$0xff]   ;;  %v6211_v9 = vpack.c.bf16 %v618_v51, %v618_v51  ;;  %v620_v3 = vld [vmem:[#allocation2 + $0xa0] sm:$0xff] }
  0xa5   : > { %4312 = vmatpush1.bf16.msra.mxu0 %v6758_v4  ;;  %1434 = vst [vmem:[#allocation3 + $0xe4] sm:$0xf] %v6307_v63  ;;  %1220 = vst [vmem:[#allocation3 + $0x128] sm:$0xf] %v6307_v63  ;;  %v6821_v1 = vld [vmem:[#allocation8 + $0x100] sm:$0xff]   ;;  %v6212_v13 = vpack.c.bf16 %v619_v56, %v619_v56  ;;  %v6829_v15 = vld [vmem:[#allocation8 + $0x178] sm:$0xff]   ;;  %v6213_v16 = vpack.c.bf16 %v620_v3, %v620_v3 }
  0xa6   : > { %4313 = vmatprep.subr.bf16.mxu0 %v7336_v0  ;;  %1435 = vst [vmem:[#allocation3 + $0x108] sm:$0xf] %v6308_v6  ;;  %1221 = vst [vmem:[#allocation3 + $0x14c] sm:$0xf] %v6308_v6  ;;  %v1256_v57 = vld [vmem:[#allocation2 + $0x52] sm:$0xff]  ;;  %v1257_v26 = vld [vmem:[#allocation2 + $0x5a] sm:$0xff] }
  0xa7   : > { %4489 = vmatpush1.bf16.msra.mxu1 %v6787_v29  ;;  %798 = vst [vmem:[#allocation3 + $0x288] sm:$0xf] %v6211_v9  ;;  %799 = vst [vmem:[#allocation3 + $0x2ac] sm:$0xf] %v6212_v13  ;;  %v6309_v58 = vpack.c.bf16 %v1256_v57, %v1256_v57  ;;  %v6310_v2 = vpack.c.bf16 %v1257_v26, %v1257_v26  ;;  %v6790_v14 = vld [vmem:[#allocation3 + $0x16c] ss:$36 sps:$4 sm:$0xff]  }
  0xa8   : > { %4490 = vmatprep.subr.bf16.mxu1 %v7336_v0  ;;  %v621_v17 = vld [vmem:[#allocation2 + $0xa8] sm:$0xff]  ;;  %800 = vst [vmem:[#allocation3 + $0x2d0] sm:$0xf] %v6213_v16  ;;  %v6777_v29 = vld [vmem:[#allocation8 + $0xe8] sm:$0xff]   ;;  %v6792_v20 = vld [vmem:[#allocation3 + $0x168] ss:$36 sps:$4 sm:$0xff]  }
  0xa9   : > { %4314 = vmatpush1.bf16.msra.mxu0 %v6760_v19  ;;  %4177 = vmatmul.mubr.bf16.gmra.mxu1 %v6775_v30  ;;  %1436 = vst [vmem:[#allocation3 + $0x12c] sm:$0xf] %v6309_v58  ;;  %1437 = vst [vmem:[#allocation3 + $0x150] sm:$0xf] %v6310_v2  ;;  %v836_v21 = vld [vmem:[#allocation2 + $0xa1] sm:$0xff]  ;;  %v6214_v23 = vpack.c.bf16 %v621_v17, %v621_v17  ;;  %v837_v4 = vld [vmem:[#allocation2 + $0xa9] sm:$0xff] }
  0xaa   : > { %4315 = vmatprep.subr.bf16.mxu0 %v7336_v0  ;;  %4184 = vmatprep.mubr.bf16.mxu1 %v6778_v31  ;;  %1222 = vst [vmem:[#allocation3 + $0x170] sm:$0xf] %v6309_v58  ;;  %1223 = vst [vmem:[#allocation3 + $0x194] sm:$0xf] %v6310_v2  ;;  %v6776_v22 = vld [vmem:[#allocation8 + $0xf0] sm:$0xff]   ;;  %v6249_v24 = vpack.c.bf16 %v836_v21, %v836_v21  ;;  %v6250_v10 = vpack.c.bf16 %v837_v4, %v837_v4  ;;  %v622_v25 = vld [vmem:[#allocation2 + $0xb0] sm:$0xff] }
  0xab   : > { %4491 = vmatpush1.bf16.msra.mxu1 %v6794_v41  ;;  %801 = vst [vmem:[#allocation3 + $0x2f4] sm:$0xf] %v6214_v23  ;;  %v1258_v11 = vld [vmem:[#allocation2 + $0x62] sm:$0xff]  ;;  %v1259_v12 = vld [vmem:[#allocation2 + $0x6a] sm:$0xff]  ;;  %v623_v30 = vld [vmem:[#allocation2 + $0xb8] sm:$0xff]  ;;  %v6215_v32 = vpack.c.bf16 %v622_v25, %v622_v25 }
  0xac   : > { %4492 = vmatprep.subr.bf16.mxu1 %v7336_v0  ;;  %1016 = vst [vmem:[#allocation3 + $0x2d4] sm:$0xf] %v6249_v24  ;;  %v6311_v28 = vpack.c.bf16 %v1258_v11, %v1258_v11  ;;  %v6312_v18 = vpack.c.bf16 %v1259_v12, %v1259_v12  ;;  %v6837_v19 = vld [vmem:[#allocation8 + $0x170] sm:$0xff]   ;;  %1017 = vst [vmem:[#allocation3 + $0x2f8] sm:$0xf] %v6250_v10  ;;  %v6216_v33 = vpack.c.bf16 %v623_v30, %v623_v30  ;;  %v838_v34 = vld [vmem:[#allocation2 + $0xb1] sm:$0xff] }
  0xad   : > { %4316 = vmatpush1.bf16.msra.mxu0 %v6764_v42  ;;  %v6799_v31 = vld [vmem:[#allocation3 + $0x1b4] ss:$36 sps:$4 sm:$0xff]   ;;  %802 = vst [vmem:[#allocation3 + $0x318] sm:$0xf] %v6215_v32  ;;  %v6251_v37 = vpack.c.bf16 %v838_v34, %v838_v34  ;;  %v1260_v39 = vld [vmem:[#allocation2 + $0x72] sm:$0xff]  ;;  %v625_v43 = vld [vmem:[#allocation2 + $0xc8] sm:$0xff] }
  0xae   : > { %4317 = vmatprep.subr.bf16.mxu0 %v7336_v0  ;;  %1438 = vst [vmem:[#allocation3 + $0x174] sm:$0xf] %v6311_v28  ;;  %1439 = vst [vmem:[#allocation3 + $0x198] sm:$0xf] %v6312_v18  ;;  %v839_v35 = vld [vmem:[#allocation2 + $0xb9] sm:$0xff]  ;;  %v6313_v41 = vpack.c.bf16 %v1260_v39, %v1260_v39  ;;  %v840_v50 = vld [vmem:[#allocation2 + $0xc1] sm:$0xff]  ;;  %v6218_v46 = vpack.c.bf16 %v625_v43, %v625_v43 }
  0xaf   : > { %4493 = vmatpush1.bf16.msra.mxu1 %v6802_v53  ;;  %1224 = vst [vmem:[#allocation3 + $0x1b8] sm:$0xf] %v6311_v28  ;;  %1225 = vst [vmem:[#allocation3 + $0x1dc] sm:$0xf] %v6312_v18  ;;  %v6782_v36 = vld [vmem:[#allocation8 + $0xe0] sm:$0xff]   ;;  %v6252_v38 = vpack.c.bf16 %v839_v35, %v839_v35  ;;  %v624_v42 = vld [vmem:[#allocation2 + $0xc0] sm:$0xff]  ;;  %v6253_v47 = vpack.c.bf16 %v840_v50, %v840_v50 }
  0xb0   : > { %4494 = vmatprep.subr.bf16.mxu1 %v7336_v0  ;;  %803 = vst [vmem:[#allocation3 + $0x33c] sm:$0xf] %v6216_v33  ;;  %v1261_v40 = vld [vmem:[#allocation2 + $0x7a] sm:$0xff]  ;;  %1018 = vst [vmem:[#allocation3 + $0x31c] sm:$0xf] %v6251_v37  ;;  %v6783_v44 = vld [vmem:[#allocation8 + $0xd8] sm:$0xff]   ;;  %v6217_v45 = vpack.c.bf16 %v624_v42, %v624_v42 }
  0xb1   : > { %4318 = vmatpush1.bf16.msra.mxu0 %v6765_v52  ;;  %4185 = vmatmul.mubr.bf16.gmra.mxu1 %v6781_v54  ;;  %1019 = vst [vmem:[#allocation3 + $0x340] sm:$0xf] %v6252_v38  ;;  %v6314_v49 = vpack.c.bf16 %v1261_v40, %v1261_v40  ;;  %v6801_v48 = vld [vmem:[#allocation3 + $0x1b0] ss:$36 sps:$4 sm:$0xff]   ;;  %1440 = vst [vmem:[#allocation3 + $0x1bc] sm:$0xf] %v6313_v41 }
  0xb2   : > { %4319 = vmatprep.subr.bf16.mxu0 %v7336_v0  ;;  %4192 = vmatprep.mubr.bf16.mxu1 %v6784_v59  ;;  %1226 = vst [vmem:[#allocation3 + $0x200] sm:$0xf] %v6313_v41  ;;  %v6807_v52 = vld [vmem:[#allocation3 + $0x1fc] ss:$36 sps:$4 sm:$0xff]   ;;  %804 = vst [vmem:[#allocation3 + $0x360] sm:$0xf] %v6217_v45 }
  0xb3   : > { %4495 = vmatpush1.bf16.msra.mxu1 %v6812_v5  ;;  %1441 = vst [vmem:[#allocation3 + $0x1e0] sm:$0xf] %v6314_v49  ;;  %1227 = vst [vmem:[#allocation3 + $0x224] sm:$0xf] %v6314_v49  ;;  %v841_v53 = vld [vmem:[#allocation2 + $0xc9] sm:$0xff]  ;;  %v6847_v55 = vld [vmem:[#allocation8 + $0x168] sm:$0xff]  }
  0xb4   : > { %4496 = vmatprep.subr.bf16.mxu1 %v7336_v0  ;;  %805 = vst [vmem:[#allocation3 + $0x384] sm:$0xf] %v6218_v46  ;;  %1020 = vst [vmem:[#allocation3 + $0x364] sm:$0xf] %v6253_v47  ;;  %v6254_v54 = vpack.c.bf16 %v841_v53, %v841_v53  ;;  %v1262_v59 = vld [vmem:[#allocation2 + $0x82] sm:$0xff]  ;;  %v1263_v60 = vld [vmem:[#allocation2 + $0x8a] sm:$0xff] }
  0xb5   : > { %4320 = vmatpush1.bf16.msra.mxu0 %v6770_v7  ;;  %v6315_v61 = vpack.c.bf16 %v1262_v59, %v1262_v59  ;;  %v6316_v62 = vpack.c.bf16 %v1263_v60, %v1263_v60  ;;  %v626_v63 = vld [vmem:[#allocation2 + $0xd0] sm:$0xff]  ;;  %v627_v5 = vld [vmem:[#allocation2 + $0xd8] sm:$0xff]  ;;  %v6788_v6 = vld [vmem:[#allocation8 + $0xd0] sm:$0xff]  }
  0xb6   : > { %4321 = vmatprep.subr.bf16.mxu0 %v7336_v0  ;;  %1021 = vst [vmem:[#allocation3 + $0x388] sm:$0xf] %v6254_v54  ;;  %v6219_v7 = vpack.c.bf16 %v626_v63, %v626_v63  ;;  %v6220_v51 = vpack.c.bf16 %v627_v5, %v627_v5  ;;  %v842_v56 = vld [vmem:[#allocation2 + $0xd1] sm:$0xff]  ;;  %v6809_v9 = vld [vmem:[#allocation3 + $0x1f8] ss:$36 sps:$4 sm:$0xff]   ;;  %v845_v24 = vld [vmem:[#allocation2 + $0xe9] sm:$0xff] }
  0xb7   : > { %4497 = vmatpush1.bf16.msra.mxu1 %v6821_v1  ;;  %1442 = vst [vmem:[#allocation3 + $0x204] sm:$0xf] %v6315_v61  ;;  %1228 = vst [vmem:[#allocation3 + $0x248] sm:$0xf] %v6315_v61  ;;  %v6789_v1 = vld [vmem:[#allocation8 + $0xc8] sm:$0xff]   ;;  %v6255_v13 = vpack.c.bf16 %v842_v56, %v842_v56  ;;  %v1264_v58 = vld [vmem:[#allocation2 + $0x92] sm:$0xff]  ;;  %v6258_v12 = vpack.c.bf16 %v845_v24, %v845_v24 }
  0xb8   : > { %4498 = vmatprep.subr.bf16.mxu1 %v7336_v0  ;;  %1443 = vst [vmem:[#allocation3 + $0x228] sm:$0xf] %v6316_v62  ;;  %1229 = vst [vmem:[#allocation3 + $0x26c] sm:$0xf] %v6316_v62  ;;  %v6814_v26 = vld [vmem:[#allocation3 + $0x244] ss:$36 sps:$4 sm:$0xff]   ;;  %v6317_v3 = vpack.c.bf16 %v1264_v58, %v1264_v58 }
  0xb9   : > { %4322 = vmatpush2.bf16.msra.mxu0 %v6771_v8  ;;  %4193 = vmatmul.mubr.bf16.gmra.mxu1 %v6786_v27  ;;  %v843_v8 = vld [vmem:[#allocation2 + $0xd9] sm:$0xff]  ;;  %806 = vst [vmem:[#allocation3 + $0x3a8] sm:$0xf] %v6219_v7  ;;  %807 = vst [vmem:[#allocation3 + $0x3cc] sm:$0xf] %v6220_v51  ;;  %v844_v23 = vld [vmem:[#allocation2 + $0xe1] sm:$0xff] }
  0xba   : > { %4323 = vmatprep.subr.bf16.mxu0 %v7336_v0  ;;  %4200 = vmatprep.mubr.bf16.mxu1 %v6790_v14  ;;  %v6256_v57 = vpack.c.bf16 %v843_v8, %v843_v8  ;;  %1022 = vst [vmem:[#allocation3 + $0x3ac] sm:$0xf] %v6255_v13  ;;  %v6856_v27 = vld [vmem:[#allocation8 + $0x160] sm:$0xff]   ;;  %1444 = vst [vmem:[#allocation3 + $0x24c] sm:$0xf] %v6317_v3  ;;  %v6798_v4 = vld [vmem:[#allocation8 + $0x1b8] sm:$0xff]   ;;  %v6257_v11 = vpack.c.bf16 %v844_v23, %v844_v23 }
  0xbb   : > { %4499 = vmatpush2.bf16.msra.mxu1 %v6829_v15  ;;  %v1265_v2 = vld [vmem:[#allocation2 + $0x9a] sm:$0xff]  ;;  %1230 = vst [vmem:[#allocation3 + $0x290] sm:$0xf] %v6317_v3  ;;  %v6795_v21 = vld [vmem:[#allocation3 + $0x8] ss:$36 sps:$4 sm:$0xff]   ;;  %v6806_v34 = vld [vmem:[#allocation8 + $0x1b0] sm:$0xff]  }
  0xbc   : > { %4500 = vmatprep.subr.bf16.mxu1 %v7336_v0  ;;  %1023 = vst [vmem:[#allocation3 + $0x3d0] sm:$0xf] %v6256_v57  ;;  %v6318_v14 = vpack.c.bf16 %v1265_v2, %v1265_v2  ;;  %v628_v15 = vld [vmem:[#allocation2 + $0xe0] sm:$0xff]  ;;  %v6793_v16 = vld [vmem:[#allocation8 + $0xc0] sm:$0xff]   ;;  %v6864_v28 = vld [vmem:[#allocation8 + $0x158] sm:$0xff]  }
  0xbd   : > { %4324 = vmatpush2.bf16.msra.mxu0 %v6776_v22  ;;  %v6221_v17 = vpack.c.bf16 %v628_v15, %v628_v15  ;;  %v629_v22 = vld [vmem:[#allocation2 + $0xe8] sm:$0xff]  ;;  %v6803_v18 = vld [vmem:[#allocation3 + $0x54] ss:$36 sps:$4 sm:$0xff]   ;;  %1024 = vst [vmem:[#allocation3 + $0x3f4] sm:$0xf] %v6257_v11  ;;  %v630_v32 = vld [vmem:[#allocation2 + $0xf0] sm:$0xff] }
  0xbe   : > { %4325 = vmatprep.subr.bf16.mxu0 %v7336_v0  ;;  %1445 = vst [vmem:[#allocation3 + $0x270] sm:$0xf] %v6318_v14  ;;  %1231 = vst [vmem:[#allocation3 + $0x2b4] sm:$0xf] %v6318_v14  ;;  %v6222_v10 = vpack.c.bf16 %v629_v22, %v629_v22  ;;  %v6822_v25 = vld [vmem:[#allocation3 + $0x28c] ss:$36 sps:$4 sm:$0xff]   ;;  %v6223_v35 = vpack.c.bf16 %v630_v32, %v630_v32 }
  0xbf   : > { %4501 = vmatpush2.bf16.msra.mxu1 %v6837_v19  ;;  %808 = vst [vmem:[#allocation3 + $0x3f0] sm:$0xf] %v6221_v17  ;;  %v6817_v19 = vld [vmem:[#allocation3 + $0x240] ss:$36 sps:$4 sm:$0xff]   ;;  %1025 = vst [vmem:[#allocation3 + $0x418] sm:$0xf] %v6258_v12 }
  0xc0   : > { %4502 = vmatprep.subr.bf16.mxu1 %v7336_v0  ;;  %809 = vst [vmem:[#allocation3 + $0x414] sm:$0xf] %v6222_v10  ;;  %v631_v33 = vld [vmem:[#allocation2 + $0xf8] sm:$0xff]  ;;  %810 = vst [vmem:[#allocation3 + $0x438] sm:$0xf] %v6223_v35  ;;  %v6872_v49 = vld [vmem:[#allocation8 + $0x150] sm:$0xff]  }
  0xc1   : > { %4326 = vmatpush2.bf16.msra.mxu0 %v6777_v29  ;;  %4201 = vmatmul.mubr.bf16.gmra.mxu1 %v6792_v20  ;;  %v1266_v29 = vld [vmem:[#allocation2 + $0xa2] sm:$0xff]  ;;  %v1267_v20 = vld [vmem:[#allocation2 + $0xaa] sm:$0xff]  ;;  %v847_v38 = vld [vmem:[#allocation2 + $0xf9] sm:$0xff] }
  0xc2   : > { %4327 = vmatprep.subr.bf16.mxu0 %v7336_v0  ;;  %4208 = vmatprep.mubr.bf16.mxu1 %v6799_v31  ;;  %v6319_v30 = vpack.c.bf16 %v1266_v29, %v1266_v29  ;;  %v6320_v31 = vpack.c.bf16 %v1267_v20, %v1267_v20  ;;  %v846_v37 = vld [vmem:[#allocation2 + $0xf1] sm:$0xff]  ;;  %v6260_v41 = vpack.c.bf16 %v847_v38, %v847_v38  ;;  %v1269_v43 = vld [vmem:[#allocation2 + $0xba] sm:$0xff]  ;;  %v6810_v46 = vld [vmem:[#allocation3 + $0x9c] ss:$36 sps:$4 sm:$0xff]  }
  0xc3   : > { %4503 = vmatpush2.bf16.msra.mxu1 %v6847_v55  ;;  %v6805_v39 = vld [vmem:[#allocation3 + $0x50] ss:$36 sps:$4 sm:$0xff]   ;;  %v6259_v40 = vpack.c.bf16 %v846_v37, %v846_v37  ;;  %v6322_v45 = vpack.c.bf16 %v1269_v43, %v1269_v43  ;;  %v6824_v47 = vld [vmem:[#allocation3 + $0x288] ss:$36 sps:$4 sm:$0xff]   ;;  %v848_v54 = vld [vmem:[#allocation2 + $0x101] sm:$0xff] }
  0xc4   : > { %4504 = vmatprep.subr.bf16.mxu1 %v7336_v0  ;;  %1446 = vst [vmem:[#allocation3 + $0x294] sm:$0xf] %v6319_v30  ;;  %1447 = vst [vmem:[#allocation3 + $0x2b8] sm:$0xf] %v6320_v31  ;;  %v1268_v42 = vld [vmem:[#allocation2 + $0xb2] sm:$0xff]  ;;  %v849_v55 = vld [vmem:[#allocation2 + $0x109] sm:$0xff]  ;;  %v6261_v61 = vpack.c.bf16 %v848_v54, %v848_v54 }
  0xc5   : > { %4328 = vmatpush2.bf16.msra.mxu0 %v6782_v36  ;;  %v6224_v36 = vpack.c.bf16 %v631_v33, %v631_v33  ;;  %1232 = vst [vmem:[#allocation3 + $0x2d8] sm:$0xf] %v6319_v30  ;;  %1233 = vst [vmem:[#allocation3 + $0x2fc] sm:$0xf] %v6320_v31  ;;  %v6321_v50 = vpack.c.bf16 %v1268_v42, %v1268_v42  ;;  %v6830_v59 = vld [vmem:[#allocation3 + $0x2d4] ss:$36 sps:$4 sm:$0xff]   ;;  %v6262_v62 = vpack.c.bf16 %v849_v55, %v849_v55 }
  0xc6   : > { %4329 = vmatprep.subr.bf16.mxu0 %v7336_v0  ;;  %1026 = vst [vmem:[#allocation3 + $0x43c] sm:$0xf] %v6259_v40  ;;  %1027 = vst [vmem:[#allocation3 + $0x460] sm:$0xf] %v6260_v41  ;;  %v6825_v63 = vld [vmem:[#allocation8 + $0x1a0] sm:$0xff]   ;;  %v1270_v5 = vld [vmem:[#allocation2 + $0xc2] sm:$0xff] }
  0xc7   : > { %4505 = vmatpush2.bf16.msra.mxu1 %v6856_v27  ;;  %811 = vst [vmem:[#allocation3 + $0x45c] sm:$0xf] %v6224_v36  ;;  %1448 = vst [vmem:[#allocation3 + $0x2dc] sm:$0xf] %v6321_v50  ;;  %v6323_v7 = vpack.c.bf16 %v1270_v5, %v1270_v5  ;;  %v6882_v56 = vld [vmem:[#allocation8 + $0x148] sm:$0xff]   ;;  %v634_v8 = vld [vmem:[#allocation2 + $0x110] sm:$0xff] }
  0xc8   : > { %4506 = vmatprep.subr.bf16.mxu1 %v7336_v0  ;;  %1234 = vst [vmem:[#allocation3 + $0x320] sm:$0xf] %v6321_v50  ;;  %1449 = vst [vmem:[#allocation3 + $0x300] sm:$0xf] %v6322_v45  ;;  %v6813_v13 = vld [vmem:[#allocation3 + $0x98] ss:$36 sps:$4 sm:$0xff]   ;;  %v6227_v57 = vpack.c.bf16 %v634_v8, %v634_v8 }
  0xc9   : > { %4330 = vmatpush2.bf16.msra.mxu0 %v6783_v44  ;;  %4209 = vmatmul.mubr.bf16.gmra.mxu1 %v6801_v48  ;;  %v6816_v44 = vld [vmem:[#allocation8 + $0x1a8] sm:$0xff]   ;;  %1235 = vst [vmem:[#allocation3 + $0x344] sm:$0xf] %v6322_v45  ;;  %1028 = vst [vmem:[#allocation3 + $0x484] sm:$0xf] %v6261_v61  ;;  %v6833_v14 = vld [vmem:[#allocation8 + $0x198] sm:$0xff]  }
  0xca   : > { %4331 = vmatprep.subr.bf16.mxu0 %v7336_v0  ;;  %4216 = vmatprep.mubr.bf16.mxu1 %v6807_v52  ;;  %v632_v48 = vld [vmem:[#allocation2 + $0x100] sm:$0xff]  ;;  %v633_v52 = vld [vmem:[#allocation2 + $0x108] sm:$0xff]  ;;  %1029 = vst [vmem:[#allocation3 + $0x4a8] sm:$0xf] %v6262_v62  ;;  %1450 = vst [vmem:[#allocation3 + $0x324] sm:$0xf] %v6323_v7 }
  0xcb   : > { %4507 = vmatpush2.bf16.msra.mxu1 %v6864_v28  ;;  %v6225_v53 = vpack.c.bf16 %v632_v48, %v632_v48  ;;  %v6226_v60 = vpack.c.bf16 %v633_v52, %v633_v52  ;;  %1236 = vst [vmem:[#allocation3 + $0x368] sm:$0xf] %v6323_v7  ;;  %v6818_v58 = vld [vmem:[#allocation3 + $0xe4] ss:$36 sps:$4 sm:$0xff]   ;;  %v851_v2 = vld [vmem:[#allocation2 + $0x119] sm:$0xff]  ;;  %v1682_v43 = vld [vmem:[#allocation2 + $0x24] sm:$0xff] }
  0xcc   : > { %4508 = vmatprep.subr.bf16.mxu1 %v7336_v0  ;;  %v6832_v3 = vld [vmem:[#allocation3 + $0x2d0] ss:$36 sps:$4 sm:$0xff]   ;;  %814 = vst [vmem:[#allocation3 + $0x4c8] sm:$0xf] %v6227_v57  ;;  %v6264_v15 = vpack.c.bf16 %v851_v2, %v851_v2  ;;  %v6841_v24 = vld [vmem:[#allocation8 + $0x190] sm:$0xff]   ;;  %v7750_v38 = vld [vmem:[#allocation8 + $0x238] sm:$0xff]  }
  0xcd   : > { %4332 = vmatpush2.bf16.msra.mxu0 %v6788_v6  ;;  %812 = vst [vmem:[#allocation3 + $0x480] sm:$0xf] %v6225_v53  ;;  %v1271_v6 = vld [vmem:[#allocation2 + $0xca] sm:$0xff]  ;;  %813 = vst [vmem:[#allocation3 + $0x4a4] sm:$0xf] %v6226_v60  ;;  %v1272_v17 = vld [vmem:[#allocation2 + $0xd2] sm:$0xff] }
  0xce   : > { %4333 = vmatprep.subr.bf16.mxu0 %v7336_v0  ;;  %v6324_v51 = vpack.c.bf16 %v1271_v6, %v1271_v6  ;;  %1031 = vst [vmem:[#allocation3 + $0x4f0] sm:$0xf] %v6264_v15  ;;  %v6325_v22 = vpack.c.bf16 %v1272_v17, %v1272_v17  ;;  %v6820_v10 = vld [vmem:[#allocation3 + $0xe0] ss:$36 sps:$4 sm:$0xff]   ;;  %v6826_v11 = vld [vmem:[#allocation3 + $0x12c] ss:$36 sps:$4 sm:$0xff]  }
  0xcf   : > { %4509 = vmatpush2.bf16.msra.mxu1 %v6872_v49  ;;  %v1464_v12 = vld [vmem:[#allocation2 + $0x13] sm:$0xff]  ;;  %v1465_v28 = vld [vmem:[#allocation2 + $0x1b] sm:$0xff]  ;;  %v1275_v35 = vld [vmem:[#allocation2 + $0xea] sm:$0xff] }
  0xd0   : > { %4510 = vmatprep.subr.bf16.mxu1 %v7336_v0  ;;  %1451 = vst [vmem:[#allocation3 + $0x348] sm:$0xf] %v6324_v51  ;;  %1237 = vst [vmem:[#allocation3 + $0x38c] sm:$0xf] %v6324_v51  ;;  %v1680_v29 = vld [vmem:[#allocation2 + $0x14] sm:$0xff]  ;;  %v1681_v20 = vld [vmem:[#allocation2 + $0x1c] sm:$0xff]  ;;  %v6328_v37 = vpack.c.bf16 %v1275_v35, %v1275_v35 }
  0xd1   : > { %4334 = vmatpush2.bf16.msra.mxu0 %v6789_v1  ;;  %4217 = vmatmul.mubr.bf16.gmra.mxu1 %v6809_v9  ;;  %v635_v1 = vld [vmem:[#allocation2 + $0x118] sm:$0xff]  ;;  %1452 = vst [vmem:[#allocation3 + $0x36c] sm:$0xf] %v6325_v22  ;;  %1238 = vst [vmem:[#allocation3 + $0x3b0] sm:$0xf] %v6325_v22  ;;  %v6373_v30 = vpack.c.bf16 %v1680_v29, %v1680_v29  ;;  %v6374_v31 = vpack.c.bf16 %v1681_v20, %v1681_v20  ;;  %v1467_v42 = vld [vmem:[#allocation2 + $0x2b] sm:$0xff] }
  0xd2   : > { %4335 = vmatprep.subr.bf16.mxu0 %v7336_v0  ;;  %4224 = vmatprep.mubr.bf16.mxu1 %v6814_v26  ;;  %v850_v9 = vld [vmem:[#allocation2 + $0x111] sm:$0xff]  ;;  %v6228_v26 = vpack.c.bf16 %v635_v1, %v635_v1  ;;  %v6840_v32 = vld [vmem:[#allocation3 + $0x318] ss:$36 sps:$4 sm:$0xff]   ;;  %1455 = vst [vmem:[#allocation3 + $0x3d8] sm:$0xf] %v6328_v37  ;;  %v6876_v1 = vld [vmem:[#allocation8 + $0x1f0] sm:$0xff]  }
  0xd3   : > { %4511 = vmatpush2.bf16.msra.mxu1 %v6882_v56  ;;  %v6263_v27 = vpack.c.bf16 %v850_v9, %v850_v9  ;;  %v6845_v33 = vld [vmem:[#allocation3 + $0x364] ss:$36 sps:$4 sm:$0xff]   ;;  %1860 = vst [vmem:[#allocation3 + $0x14] sm:$0xf] %v6373_v30  ;;  %1861 = vst [vmem:[#allocation3 + $0x38] sm:$0xf] %v6374_v31 }
  0xd4   : > { %4512 = vmatprep.subr.bf16.mxu1 %v7336_v0  ;;  %815 = vst [vmem:[#allocation3 + $0x4ec] sm:$0xf] %v6228_v26  ;;  %v6860_v40 = vld [vmem:[#allocation8 + $0x180] sm:$0xff]   ;;  %v6828_v49 = vld [vmem:[#allocation3 + $0x128] ss:$36 sps:$4 sm:$0xff]   ;;  %v1278_v8 = vld [vmem:[#allocation2 + $0x102] sm:$0xff] }
  0xd5   : > { %4336 = vmatpush2.bf16.msra.mxu0 %v6793_v16  ;;  %1030 = vst [vmem:[#allocation3 + $0x4cc] sm:$0xf] %v6263_v27  ;;  %v6838_v16 = vld [vmem:[#allocation3 + $0x31c] ss:$36 sps:$4 sm:$0xff]   ;;  %1241 = vst [vmem:[#allocation3 + $0x41c] sm:$0xf] %v6328_v37  ;;  %v6331_v9 = vpack.c.bf16 %v1278_v8, %v1278_v8 }
  0xd6   : > { %4659 = vmatprep.subr.bf16.mxu0 %v7336_v0  ;;  %v6834_v50 = vld [vmem:[#allocation3 + $0x174] ss:$36 sps:$4 sm:$0xff]   ;;  %v1683_v45 = vld [vmem:[#allocation2 + $0x2c] sm:$0xff]  ;;  %v1684_v61 = vld [vmem:[#allocation2 + $0x34] sm:$0xff] }
  0xd7   : > { %v6376_v48 = vpack.c.bf16 %v1683_v45, %v1683_v45  ;;  %v1276_v52 = vld [vmem:[#allocation2 + $0xf2] sm:$0xff]  ;;  %v1277_v53 = vld [vmem:[#allocation2 + $0xfa] sm:$0xff]  ;;  %v6848_v62 = vld [vmem:[#allocation3 + $0x360] ss:$36 sps:$4 sm:$0xff]   ;;  %v6377_v6 = vpack.c.bf16 %v1684_v61, %v1684_v61  ;;  %1458 = vst [vmem:[#allocation3 + $0x444] sm:$0xf] %v6331_v9 }
  0xd8   : > { %4338 = vmatmul.mubr.bf16.vlgmr.msra.gmra.mxu0 %v6795_v21  ;;  %v1273_v21 = vld [vmem:[#allocation2 + $0xda] sm:$0xff]  ;;  %v6329_v54 = vpack.c.bf16 %v1276_v52, %v1276_v52  ;;  %v6330_v55 = vpack.c.bf16 %v1277_v53, %v1277_v53  ;;  %v1470_v27 = vld [vmem:[#allocation2 + $0x43] sm:$0xff]  ;;  %1244 = vst [vmem:[#allocation3 + $0x488] sm:$0xf] %v6331_v9  ;;  %v6903_v30 = vld [vmem:[#allocation8 + $0x1d8] sm:$0xff]  }
  0xd9   : > { %4660 = vmatpush1.bf16.msra.mxu0 %v6798_v4  ;;  %4345 = vmatprep.mubr.bf16.mxu0 %v6803_v18  ;;  %v6326_v23 = vpack.c.bf16 %v1273_v21, %v1273_v21  ;;  %v6891_v4 = vld [vmem:[#allocation8 + $0x140] sm:$0xff]   ;;  %v6337_v18 = vpack.c.bf16 %v1464_v12, %v1464_v12  ;;  %1863 = vst [vmem:[#allocation3 + $0x80] sm:$0xf] %v6376_v48  ;;  %2077 = vst [vmem:[#allocation3 + $0x3c] sm:$0xf] %v6376_v48  ;;  %v6886_v15 = vld [vmem:[#allocation8 + $0x1e8] sm:$0xff]  }
  0xda   : > { %4661 = vmatprep.subr.bf16.mxu0 %v7336_v0  ;;  %4225 = vmatmul.mubr.bf16.gmra.mxu1 %v6817_v19  ;;  %v6338_v19 = vpack.c.bf16 %v1465_v28, %v1465_v28  ;;  %v1469_v60 = vld [vmem:[#allocation2 + $0x3b] sm:$0xff]  ;;  %1456 = vst [vmem:[#allocation3 + $0x3fc] sm:$0xf] %v6329_v54  ;;  %1457 = vst [vmem:[#allocation3 + $0x420] sm:$0xf] %v6330_v55  ;;  %v6343_v2 = vpack.c.bf16 %v1470_v27, %v1470_v27  ;;  %v1472_v29 = vld [vmem:[#allocation2 + $0x53] sm:$0xff] }
  0xdb   : > { %4232 = vmatprep.mubr.bf16.mxu1 %v6822_v25  ;;  %1453 = vst [vmem:[#allocation3 + $0x390] sm:$0xf] %v6326_v23  ;;  %1239 = vst [vmem:[#allocation3 + $0x3d4] sm:$0xf] %v6326_v23  ;;  %4513 = vmatpush2.bf16.msra.mxu1 %v6891_v4  ;;  %v6851_v25 = vld [vmem:[#allocation8 + $0x188] sm:$0xff]   ;;  %v6342_v5 = vpack.c.bf16 %v1469_v60, %v1469_v60  ;;  %v1687_v23 = vld [vmem:[#allocation2 + $0x4c] sm:$0xff]  ;;  %v6345_v31 = vpack.c.bf16 %v1472_v29, %v1472_v29 }
  0xdc   : > { %1644 = vst [vmem:[#allocation3 + $0x10] sm:$0xf] %v6337_v18  ;;  %1645 = vst [vmem:[#allocation3 + $0x34] sm:$0xf] %v6338_v19  ;;  %6648 = vmatprep.subr.bf16.mxu1 %v7750_v38  ;;  %v6853_v7 = vld [vmem:[#allocation3 + $0x3ac] ss:$36 sps:$4 sm:$0xff]  }
  0xdd   : > { %4662 = vmatpush1.bf16.msra.mxu0 %v6806_v34  ;;  %v1274_v34 = vld [vmem:[#allocation2 + $0xe2] sm:$0xff]  ;;  %1242 = vst [vmem:[#allocation3 + $0x440] sm:$0xf] %v6329_v54  ;;  %1243 = vst [vmem:[#allocation3 + $0x464] sm:$0xf] %v6330_v55  ;;  %v1280_v4 = vld [vmem:[#allocation2 + $0x112] sm:$0xff] }
  0xde   : > { %4663 = vmatprep.subr.bf16.mxu0 %v7336_v0  ;;  %v6327_v36 = vpack.c.bf16 %v1274_v34, %v1274_v34  ;;  %v1685_v51 = vld [vmem:[#allocation2 + $0x3c] sm:$0xff]  ;;  %1649 = vst [vmem:[#allocation3 + $0xc4] sm:$0xf] %v6342_v5  ;;  %1864 = vst [vmem:[#allocation3 + $0xa4] sm:$0xf] %v6377_v6  ;;  %v6333_v12 = vpack.c.bf16 %v1280_v4, %v1280_v4  ;;  %v1691_v45 = vld [vmem:[#allocation2 + $0x6c] sm:$0xff] }
  0xdf   : > { %v6378_v56 = vpack.c.bf16 %v1685_v51, %v1685_v51  ;;  %2078 = vst [vmem:[#allocation3 + $0x60] sm:$0xf] %v6377_v6  ;;  %v6836_v57 = vld [vmem:[#allocation3 + $0x170] ss:$36 sps:$4 sm:$0xff]   ;;  %v6855_v21 = vld [vmem:[#allocation3 + $0x3a8] ss:$36 sps:$4 sm:$0xff]   ;;  %v6384_v52 = vpack.c.bf16 %v1691_v45, %v1691_v45 }
  0xe0   : > { %4346 = vmatmul.mubr.bf16.gmra.mxu0 %v6805_v39  ;;  %v1466_v39 = vld [vmem:[#allocation2 + $0x23] sm:$0xff]  ;;  %1454 = vst [vmem:[#allocation3 + $0x3b4] sm:$0xf] %v6327_v36  ;;  %1240 = vst [vmem:[#allocation3 + $0x3f8] sm:$0xf] %v6327_v36  ;;  %v1473_v20 = vld [vmem:[#allocation2 + $0x5b] sm:$0xff] }
  0xe1   : > { %4353 = vmatprep.mubr.bf16.mxu0 %v6810_v46  ;;  %4664 = vmatpush1.bf16.msra.mxu0 %v6816_v44  ;;  %v6339_v41 = vpack.c.bf16 %v1466_v39, %v1466_v39  ;;  %v6340_v44 = vpack.c.bf16 %v1467_v42, %v1467_v42  ;;  %v6375_v46 = vpack.c.bf16 %v1682_v43, %v1682_v43  ;;  %v6861_v22 = vld [vmem:[#allocation3 + $0x3f4] ss:$36 sps:$4 sm:$0xff]   ;;  %v6849_v19 = vld [vmem:[#allocation3 + $0x204] ss:$36 sps:$4 sm:$0xff]   ;;  %v6857_v54 = vld [vmem:[#allocation3 + $0x24c] ss:$36 sps:$4 sm:$0xff]  }
  0xe2   : > { %4665 = vmatprep.subr.bf16.mxu0 %v7336_v0  ;;  %4233 = vmatmul.mubr.bf16.gmra.mxu1 %v6824_v47  ;;  %v6868_v47 = vld [vmem:[#allocation8 + $0x1f8] sm:$0xff]   ;;  %1865 = vst [vmem:[#allocation3 + $0xc8] sm:$0xf] %v6378_v56  ;;  %2079 = vst [vmem:[#allocation3 + $0x84] sm:$0xf] %v6378_v56  ;;  %v1689_v34 = vld [vmem:[#allocation2 + $0x5c] sm:$0xff] }
  0xe3   : > { %4240 = vmatprep.mubr.bf16.mxu1 %v6830_v59  ;;  %1646 = vst [vmem:[#allocation3 + $0x58] sm:$0xf] %v6339_v41  ;;  %1647 = vst [vmem:[#allocation3 + $0x7c] sm:$0xf] %v6340_v44  ;;  %v1468_v59 = vld [vmem:[#allocation2 + $0x33] sm:$0xff]  ;;  %v1282_v35 = vld [vmem:[#allocation2 + $0x122] sm:$0xff]  ;;  %v6382_v37 = vpack.c.bf16 %v1689_v34, %v1689_v34 }
  0xe4   : > { %1862 = vst [vmem:[#allocation3 + $0x5c] sm:$0xf] %v6375_v46  ;;  %2076 = vst [vmem:[#allocation3 + $0x18] sm:$0xf] %v6375_v46  ;;  %v6844_v18 = vld [vmem:[#allocation3 + $0x1b8] ss:$36 sps:$4 sm:$0xff]  }
  0xe5   : > { %4666 = vmatpush1.bf16.msra.mxu0 %v6825_v63  ;;  %v6341_v63 = vpack.c.bf16 %v1468_v59, %v1468_v59  ;;  %1650 = vst [vmem:[#allocation3 + $0xe8] sm:$0xf] %v6343_v2  ;;  %1460 = vst [vmem:[#allocation3 + $0x48c] sm:$0xf] %v6333_v12  ;;  %v1283_v39 = vld [vmem:[#allocation2 + $0x12a] sm:$0xff]  ;;  %v6920_v59 = vld [vmem:[#allocation8 + $0x1c8] sm:$0xff]  }
  0xe6   : > { %4667 = vmatprep.subr.bf16.mxu0 %v7336_v0  ;;  %1246 = vst [vmem:[#allocation3 + $0x4d0] sm:$0xf] %v6333_v12  ;;  %1652 = vst [vmem:[#allocation3 + $0x130] sm:$0xf] %v6345_v31  ;;  %v6869_v41 = vld [vmem:[#allocation3 + $0x43c] ss:$36 sps:$4 sm:$0xff]  }
  0xe7   : > { %1648 = vst [vmem:[#allocation3 + $0xa0] sm:$0xf] %v6341_v63  ;;  %v1474_v42 = vld [vmem:[#allocation2 + $0x63] sm:$0xff]  ;;  %1869 = vst [vmem:[#allocation3 + $0x158] sm:$0xf] %v6382_v37  ;;  %v1475_v43 = vld [vmem:[#allocation2 + $0x6b] sm:$0xff] }
  0xe8   : > { %4354 = vmatmul.mubr.bf16.gmra.mxu0 %v6813_v13  ;;  %v1279_v13 = vld [vmem:[#allocation2 + $0x10a] sm:$0xff]  ;;  %2083 = vst [vmem:[#allocation3 + $0x114] sm:$0xf] %v6382_v37  ;;  %1871 = vst [vmem:[#allocation3 + $0x1a0] sm:$0xf] %v6384_v52  ;;  %v1476_v5 = vld [vmem:[#allocation2 + $0x73] sm:$0xff] }
  0xe9   : > { %4361 = vmatprep.mubr.bf16.mxu0 %v6818_v58  ;;  %4668 = vmatpush1.bf16.msra.mxu0 %v6833_v14  ;;  %v6332_v26 = vpack.c.bf16 %v1279_v13, %v1279_v13  ;;  %v1471_v58 = vld [vmem:[#allocation2 + $0x4b] sm:$0xff]  ;;  %2085 = vst [vmem:[#allocation3 + $0x15c] sm:$0xf] %v6384_v52  ;;  %v6871_v55 = vld [vmem:[#allocation3 + $0x438] ss:$36 sps:$4 sm:$0xff]   ;;  %v6349_v51 = vpack.c.bf16 %v1476_v5, %v1476_v5  ;;  %v2114_v9 = vld [vmem:[#allocation2 + $0x35] sm:$0xff] }
  0xea   : > { %4241 = vmatmul.mubr.bf16.gmra.mxu1 %v6832_v3  ;;  %4669 = vmatprep.subr.bf16.mxu0 %v7336_v0  ;;  %v1686_v3 = vld [vmem:[#allocation2 + $0x44] sm:$0xff]  ;;  %v2113_v61 = vld [vmem:[#allocation2 + $0x2d] sm:$0xff]  ;;  %v1477_v6 = vld [vmem:[#allocation2 + $0x7b] sm:$0xff]  ;;  %v6447_v27 = vpack.c.bf16 %v2114_v9, %v2114_v9 }
  0xeb   : > { %4248 = vmatprep.mubr.bf16.mxu1 %v6838_v16  ;;  %v6842_v14 = vld [vmem:[#allocation3 + $0x1bc] ss:$36 sps:$4 sm:$0xff]   ;;  %1459 = vst [vmem:[#allocation3 + $0x468] sm:$0xf] %v6332_v26  ;;  %v6344_v16 = vpack.c.bf16 %v1471_v58, %v1471_v58  ;;  %v6379_v17 = vpack.c.bf16 %v1686_v3, %v1686_v3  ;;  %1245 = vst [vmem:[#allocation3 + $0x4ac] sm:$0xf] %v6332_v26  ;;  %v6446_v63 = vpack.c.bf16 %v2113_v61, %v2113_v61 }
  0xec   : > { %v1690_v44 = vld [vmem:[#allocation2 + $0x64] sm:$0xff]  ;;  %v6350_v56 = vpack.c.bf16 %v1477_v6, %v1477_v6  ;;  %v1693_v8 = vld [vmem:[#allocation2 + $0x7c] sm:$0xff]  ;;  %1656 = vst [vmem:[#allocation3 + $0x1c0] sm:$0xf] %v6349_v51  ;;  %2294 = vst [vmem:[#allocation3 + $0x64] sm:$0xf] %v6447_v27 }
  0xed   : > { %4670 = vmatpush1.bf16.msra.mxu0 %v6841_v24  ;;  %1651 = vst [vmem:[#allocation3 + $0x10c] sm:$0xf] %v6344_v16  ;;  %1866 = vst [vmem:[#allocation3 + $0xec] sm:$0xf] %v6379_v17  ;;  %v6380_v24 = vpack.c.bf16 %v1687_v23, %v1687_v23  ;;  %v6910_v46 = vld [vmem:[#allocation8 + $0x1d0] sm:$0xff]   ;;  %v6383_v48 = vpack.c.bf16 %v1690_v44, %v1690_v44  ;;  %v2115_v13 = vld [vmem:[#allocation2 + $0x3d] sm:$0xff]  ;;  %v6386_v26 = vpack.c.bf16 %v1693_v8, %v1693_v8 }
  0xee   : > { %4671 = vmatprep.subr.bf16.mxu0 %v7336_v0  ;;  %2080 = vst [vmem:[#allocation3 + $0xa8] sm:$0xf] %v6379_v17  ;;  %v6852_v53 = vld [vmem:[#allocation3 + $0x200] ss:$36 sps:$4 sm:$0xff]   ;;  %2293 = vst [vmem:[#allocation3 + $0x40] sm:$0xf] %v6446_v63  ;;  %v6448_v58 = vpack.c.bf16 %v2115_v13, %v2115_v13 }
  0xef   : > { %1867 = vst [vmem:[#allocation3 + $0x110] sm:$0xf] %v6380_v24  ;;  %2081 = vst [vmem:[#allocation3 + $0xcc] sm:$0xf] %v6380_v24  ;;  %v2112_v60 = vld [vmem:[#allocation2 + $0x25] sm:$0xff]  ;;  %v6928_v2 = vld [vmem:[#allocation8 + $0x1c0] sm:$0xff]  }
  0xf0   : > { %4362 = vmatmul.mubr.bf16.gmra.mxu0 %v6820_v10  ;;  %v1281_v10 = vld [vmem:[#allocation2 + $0x11a] sm:$0xff]  ;;  %1870 = vst [vmem:[#allocation3 + $0x17c] sm:$0xf] %v6383_v48  ;;  %2084 = vst [vmem:[#allocation3 + $0x138] sm:$0xf] %v6383_v48  ;;  %v1478_v3 = vld [vmem:[#allocation2 + $0x83] sm:$0xff] }
  0xf1   : > { %4369 = vmatprep.mubr.bf16.mxu0 %v6826_v11  ;;  %4672 = vmatpush1.bf16.msra.mxu0 %v6851_v25  ;;  %v6895_v11 = vld [vmem:[#allocation8 + $0x1e0] sm:$0xff]   ;;  %v6334_v28 = vpack.c.bf16 %v1281_v10, %v1281_v10  ;;  %1657 = vst [vmem:[#allocation3 + $0x1e4] sm:$0xf] %v6350_v56  ;;  %1873 = vst [vmem:[#allocation3 + $0x1e8] sm:$0xf] %v6386_v26  ;;  %v1479_v16 = vld [vmem:[#allocation2 + $0x8b] sm:$0xff] }
  0xf2   : > { %4249 = vmatmul.mubr.bf16.gmra.mxu1 %v6840_v32  ;;  %4673 = vmatprep.subr.bf16.mxu0 %v7336_v0  ;;  %v6863_v25 = vld [vmem:[#allocation3 + $0x3f0] ss:$36 sps:$4 sm:$0xff]   ;;  %v6346_v32 = vpack.c.bf16 %v1473_v20, %v1473_v20  ;;  %2295 = vst [vmem:[#allocation3 + $0x88] sm:$0xf] %v6448_v58  ;;  %2087 = vst [vmem:[#allocation3 + $0x1a4] sm:$0xf] %v6386_v26 }
  0xf3   : > { %4256 = vmatprep.mubr.bf16.mxu1 %v6845_v33  ;;  %1461 = vst [vmem:[#allocation3 + $0x4b0] sm:$0xf] %v6334_v28  ;;  %1247 = vst [vmem:[#allocation3 + $0x4f4] sm:$0xf] %v6334_v28  ;;  %v1688_v33 = vld [vmem:[#allocation2 + $0x54] sm:$0xff]  ;;  %v1694_v17 = vld [vmem:[#allocation2 + $0x84] sm:$0xff] }
  0xf4   : > { %1653 = vst [vmem:[#allocation3 + $0x154] sm:$0xf] %v6346_v32  ;;  %v6381_v36 = vpack.c.bf16 %v1688_v33, %v1688_v33  ;;  %v6387_v23 = vpack.c.bf16 %v1694_v17, %v1694_v17  ;;  %v6865_v24 = vld [vmem:[#allocation3 + $0x294] ss:$36 sps:$4 sm:$0xff]   ;;  %v2116_v10 = vld [vmem:[#allocation2 + $0x45] sm:$0xff]  ;;  %v1700_v63 = vld [vmem:[#allocation2 + $0xb4] sm:$0xff] }
  0xf5   : > { %4674 = vmatpush1.bf16.msra.mxu0 %v6860_v40  ;;  %v6335_v40 = vpack.c.bf16 %v1282_v35, %v1282_v35  ;;  %v6879_v12 = vld [vmem:[#allocation3 + $0x480] ss:$36 sps:$4 sm:$0xff]   ;;  %v6867_v20 = vld [vmem:[#allocation3 + $0x290] ss:$36 sps:$4 sm:$0xff]  }
  0xf6   : > { %4675 = vmatprep.subr.bf16.mxu0 %v7336_v0  ;;  %1868 = vst [vmem:[#allocation3 + $0x134] sm:$0xf] %v6381_v36  ;;  %2082 = vst [vmem:[#allocation3 + $0xf0] sm:$0xf] %v6381_v36  ;;  %v6873_v31 = vld [vmem:[#allocation3 + $0x2dc] ss:$36 sps:$4 sm:$0xff]  }
  0xf7   : > { %1462 = vst [vmem:[#allocation3 + $0x4d4] sm:$0xf] %v6335_v40  ;;  %1874 = vst [vmem:[#allocation3 + $0x20c] sm:$0xf] %v6387_v23  ;;  %v1697_v33 = vld [vmem:[#allocation2 + $0x9c] sm:$0xff]  ;;  %v1699_v44 = vld [vmem:[#allocation2 + $0xac] sm:$0xff] }
  0xf8   : > { %4370 = vmatmul.mubr.bf16.gmra.mxu0 %v6828_v49  ;;  %v6336_v49 = vpack.c.bf16 %v1283_v39, %v1283_v39  ;;  %2088 = vst [vmem:[#allocation3 + $0x1c8] sm:$0xf] %v6387_v23  ;;  %v2118_v35 = vld [vmem:[#allocation2 + $0x55] sm:$0xff]  ;;  %v2119_v36 = vld [vmem:[#allocation2 + $0x5d] sm:$0xff]  ;;  %v6390_v37 = vpack.c.bf16 %v1697_v33, %v1697_v33  ;;  %v6392_v48 = vpack.c.bf16 %v1699_v44, %v1699_v44  ;;  %v6880_v58 = vld [vmem:[#allocation3 + $0x324] ss:$36 sps:$4 sm:$0xff]  }
  0xf9   : > { %4377 = vmatprep.mubr.bf16.mxu0 %v6834_v50  ;;  %4676 = vmatpush2.bf16.msra.mxu0 %v6868_v47  ;;  %v6347_v50 = vpack.c.bf16 %v1474_v42, %v1474_v42  ;;  %v6348_v47 = vpack.c.bf16 %v1475_v43, %v1475_v43  ;;  %v6451_v39 = vpack.c.bf16 %v2118_v35, %v2118_v35  ;;  %v1698_v42 = vld [vmem:[#allocation2 + $0xa4] sm:$0xff]  ;;  %v1485_v61 = vld [vmem:[#allocation2 + $0xbb] sm:$0xff]  ;;  %v1703_v17 = vld [vmem:[#allocation2 + $0xcc] sm:$0xff] }
  0xfa   : > { %4257 = vmatmul.mubr.bf16.gmra.mxu1 %v6848_v62  ;;  %4677 = vmatprep.subr.bf16.mxu0 %v7336_v0  ;;  %1463 = vst [vmem:[#allocation3 + $0x4f8] sm:$0xf] %v6336_v49  ;;  %v6445_v62 = vpack.c.bf16 %v2112_v60, %v2112_v60  ;;  %v6452_v40 = vpack.c.bf16 %v2119_v36, %v2119_v36  ;;  %v1483_v49 = vld [vmem:[#allocation2 + $0xab] sm:$0xff]  ;;  %1877 = vst [vmem:[#allocation3 + $0x278] sm:$0xf] %v6390_v37  ;;  %v1701_v5 = vld [vmem:[#allocation2 + $0xbc] sm:$0xff] }
  0xfb   : > { %4264 = vmatprep.mubr.bf16.mxu1 %v6853_v7  ;;  %1654 = vst [vmem:[#allocation3 + $0x178] sm:$0xf] %v6347_v50  ;;  %1655 = vst [vmem:[#allocation3 + $0x19c] sm:$0xf] %v6348_v47  ;;  %v1692_v7 = vld [vmem:[#allocation2 + $0x74] sm:$0xff]  ;;  %v6356_v50 = vpack.c.bf16 %v1483_v49, %v1483_v49  ;;  %v6391_v45 = vpack.c.bf16 %v1698_v42, %v1698_v42  ;;  %v6358_v6 = vpack.c.bf16 %v1485_v61, %v1485_v61  ;;  %v2123_v8 = vld [vmem:[#allocation2 + $0x7d] sm:$0xff] }
  0xfc   : > { %2292 = vst [vmem:[#allocation3 + $0x1c] sm:$0xf] %v6445_v62  ;;  %v6887_v47 = vld [vmem:[#allocation3 + $0x4c8] ss:$36 sps:$4 sm:$0xff]   ;;  %2298 = vst [vmem:[#allocation3 + $0xf4] sm:$0xf] %v6451_v39  ;;  %v6394_v51 = vpack.c.bf16 %v1701_v5, %v1701_v5  ;;  %v6456_v13 = vpack.c.bf16 %v2123_v8, %v2123_v8 }
  0xfd   : > { %4678 = vmatpush2.bf16.msra.mxu0 %v6876_v1  ;;  %v6385_v1 = vpack.c.bf16 %v1692_v7, %v1692_v7  ;;  %2299 = vst [vmem:[#allocation3 + $0x118] sm:$0xf] %v6452_v40  ;;  %2091 = vst [vmem:[#allocation3 + $0x234] sm:$0xf] %v6390_v37  ;;  %v6875_v60 = vld [vmem:[#allocation3 + $0x2d8] ss:$36 sps:$4 sm:$0xff]   ;;  %v6393_v7 = vpack.c.bf16 %v1700_v63, %v1700_v63 }
  0xfe   : > { %4679 = vmatprep.subr.bf16.mxu0 %v7336_v0  ;;  %1663 = vst [vmem:[#allocation3 + $0x2bc] sm:$0xf] %v6356_v50  ;;  %1878 = vst [vmem:[#allocation3 + $0x29c] sm:$0xf] %v6391_v45  ;;  %v2122_v56 = vld [vmem:[#allocation2 + $0x75] sm:$0xff]  ;;  %v1702_v27 = vld [vmem:[#allocation2 + $0xc4] sm:$0xff] }
  0xff   : > { %1872 = vst [vmem:[#allocation3 + $0x1c4] sm:$0xf] %v6385_v1  ;;  %2086 = vst [vmem:[#allocation3 + $0x180] sm:$0xf] %v6385_v1  ;;  %v1486_v1 = vld [vmem:[#allocation2 + $0xc3] sm:$0xff]  ;;  %v6455_v9 = vpack.c.bf16 %v2122_v56, %v2122_v56  ;;  %v1491_v39 = vld [vmem:[#allocation2 + $0xeb] sm:$0xff] }
 0x100   : > { %4378 = vmatmul.mubr.bf16.gmra.mxu0 %v6836_v57  ;;  %v6877_v57 = vld [vmem:[#allocation3 + $0x484] ss:$36 sps:$4 sm:$0xff]   ;;  %2092 = vst [vmem:[#allocation3 + $0x258] sm:$0xf] %v6391_v45  ;;  %1879 = vst [vmem:[#allocation3 + $0x2c0] sm:$0xf] %v6392_v48  ;;  %v6359_v26 = vpack.c.bf16 %v1486_v1, %v1486_v1  ;;  %v6364_v49 = vpack.c.bf16 %v1491_v39, %v1491_v39 }
 0x101   : > { %4385 = vmatprep.mubr.bf16.mxu0 %v6842_v14  ;;  %4680 = vmatpush2.bf16.msra.mxu0 %v6886_v15  ;;  %v6351_v14 = vpack.c.bf16 %v1478_v3, %v1478_v3  ;;  %v6859_v15 = vld [vmem:[#allocation3 + $0x248] ss:$36 sps:$4 sm:$0xff]   ;;  %2093 = vst [vmem:[#allocation3 + $0x27c] sm:$0xf] %v6392_v48  ;;  %1665 = vst [vmem:[#allocation3 + $0x304] sm:$0xf] %v6358_v6  ;;  %v6395_v3 = vpack.c.bf16 %v1702_v27, %v1702_v27 }
 0x102   : > { %4265 = vmatmul.mubr.bf16.gmra.mxu1 %v6855_v21  ;;  %4681 = vmatprep.subr.bf16.mxu0 %v7336_v0  ;;  %v6352_v21 = vpack.c.bf16 %v1479_v16, %v1479_v16  ;;  %1880 = vst [vmem:[#allocation3 + $0x2e4] sm:$0xf] %v6393_v7  ;;  %1881 = vst [vmem:[#allocation3 + $0x308] sm:$0xf] %v6394_v51  ;;  %v7763_v16 = vld [vmem:[#allocation8 + $0x230] sm:$0xff]   ;;  %v2127_v33 = vld [vmem:[#allocation2 + $0x9d] sm:$0xff] }
 0x103   : > { %4272 = vmatprep.mubr.bf16.mxu1 %v6861_v22  ;;  %1658 = vst [vmem:[#allocation3 + $0x208] sm:$0xf] %v6351_v14  ;;  %v1695_v22 = vld [vmem:[#allocation2 + $0x8c] sm:$0xff]  ;;  %2094 = vst [vmem:[#allocation3 + $0x2a0] sm:$0xf] %v6393_v7  ;;  %v6460_v36 = vpack.c.bf16 %v2127_v33, %v2127_v33  ;;  %v1490_v37 = vld [vmem:[#allocation2 + $0xe3] sm:$0xff] }
 0x104   : > { %v6388_v4 = vpack.c.bf16 %v1695_v22, %v1695_v22  ;;  %1659 = vst [vmem:[#allocation3 + $0x22c] sm:$0xf] %v6352_v21  ;;  %2095 = vst [vmem:[#allocation3 + $0x2c4] sm:$0xf] %v6394_v51  ;;  %v6892_v14 = vld [vmem:[#allocation3 + $0x10] ss:$36 sps:$4 sm:$0xff]  }
 0x105   : > { %4682 = vmatpush2.bf16.msra.mxu0 %v6895_v11  ;;  %v2117_v11 = vld [vmem:[#allocation2 + $0x4d] sm:$0xff]  ;;  %2302 = vst [vmem:[#allocation3 + $0x184] sm:$0xf] %v6455_v9  ;;  %2303 = vst [vmem:[#allocation3 + $0x1a8] sm:$0xf] %v6456_v13  ;;  %v2124_v21 = vld [vmem:[#allocation2 + $0x85] sm:$0xff] }
 0x106   : > { %4683 = vmatprep.subr.bf16.mxu0 %v7336_v0  ;;  %v6450_v28 = vpack.c.bf16 %v2117_v11, %v2117_v11  ;;  %1875 = vst [vmem:[#allocation3 + $0x230] sm:$0xf] %v6388_v4  ;;  %2089 = vst [vmem:[#allocation3 + $0x1ec] sm:$0xf] %v6388_v4  ;;  %v2125_v22 = vld [vmem:[#allocation2 + $0x8d] sm:$0xff]  ;;  %v6457_v4 = vpack.c.bf16 %v2124_v21, %v2124_v21  ;;  %v1706_v40 = vld [vmem:[#allocation2 + $0xe4] sm:$0xff] }
 0x107   : > { %1666 = vst [vmem:[#allocation3 + $0x328] sm:$0xf] %v6359_v26  ;;  %1882 = vst [vmem:[#allocation3 + $0x32c] sm:$0xf] %v6395_v3  ;;  %v6883_v23 = vld [vmem:[#allocation3 + $0x320] ss:$36 sps:$4 sm:$0xff]  }
 0x108   : > { %4386 = vmatmul.mubr.bf16.gmra.mxu0 %v6844_v18  ;;  %v6884_v18 = vld [vmem:[#allocation3 + $0x4cc] ss:$36 sps:$4 sm:$0xff]   ;;  %2297 = vst [vmem:[#allocation3 + $0xd0] sm:$0xf] %v6450_v28  ;;  %2096 = vst [vmem:[#allocation3 + $0x2e8] sm:$0xf] %v6395_v3 }
 0x109   : > { %4393 = vmatprep.mubr.bf16.mxu0 %v6849_v19  ;;  %4684 = vmatpush2.bf16.msra.mxu0 %v6903_v30  ;;  %v1480_v19 = vld [vmem:[#allocation2 + $0x93] sm:$0xff]  ;;  %2304 = vst [vmem:[#allocation3 + $0x1cc] sm:$0xf] %v6457_v4  ;;  %v2128_v50 = vld [vmem:[#allocation2 + $0xa5] sm:$0xff]  ;;  %2307 = vst [vmem:[#allocation3 + $0x238] sm:$0xf] %v6460_v36 }
 0x10a   : > { %4273 = vmatmul.mubr.bf16.gmra.mxu1 %v6863_v25  ;;  %4685 = vmatprep.subr.bf16.mxu0 %v7336_v0  ;;  %v6353_v29 = vpack.c.bf16 %v1480_v19, %v1480_v19  ;;  %v1481_v25 = vld [vmem:[#allocation2 + $0x9b] sm:$0xff]  ;;  %v6907_v28 = vld [vmem:[#allocation3 + $0xa4] ss:$36 sps:$4 sm:$0xff]   ;;  %v6461_v48 = vpack.c.bf16 %v2128_v50, %v2128_v50  ;;  %1671 = vst [vmem:[#allocation3 + $0x3dc] sm:$0xf] %v6364_v49  ;;  %v1494_v9 = vld [vmem:[#allocation2 + $0x103] sm:$0xff] }
 0x10b   : > { %4280 = vmatprep.mubr.bf16.mxu1 %v6869_v41  ;;  %v1696_v30 = vld [vmem:[#allocation2 + $0x94] sm:$0xff]  ;;  %v6354_v32 = vpack.c.bf16 %v1481_v25, %v1481_v25  ;;  %v1482_v41 = vld [vmem:[#allocation2 + $0xa3] sm:$0xff]  ;;  %v1707_v42 = vld [vmem:[#allocation2 + $0xec] sm:$0xff]  ;;  %v6367_v26 = vpack.c.bf16 %v1494_v9, %v1494_v9 }
 0x10c   : > { %1660 = vst [vmem:[#allocation3 + $0x250] sm:$0xf] %v6353_v29  ;;  %v6389_v34 = vpack.c.bf16 %v1696_v30, %v1696_v30  ;;  %v6355_v43 = vpack.c.bf16 %v1482_v41, %v1482_v41  ;;  %v6888_v11 = vld [vmem:[#allocation3 + $0x36c] ss:$36 sps:$4 sm:$0xff]   ;;  %v1705_v30 = vld [vmem:[#allocation2 + $0xdc] sm:$0xff]  ;;  %v6363_v41 = vpack.c.bf16 %v1490_v37, %v1490_v37  ;;  %v7778_v6 = vld [vmem:[#allocation8 + $0x210] sm:$0xff]  }
 0x10d   : > { %4686 = vmatpush2.bf16.msra.mxu0 %v6910_v46  ;;  %1661 = vst [vmem:[#allocation3 + $0x274] sm:$0xf] %v6354_v32  ;;  %v2120_v46 = vld [vmem:[#allocation2 + $0x65] sm:$0xff]  ;;  %v1488_v19 = vld [vmem:[#allocation2 + $0xd3] sm:$0xff]  ;;  %v1489_v29 = vld [vmem:[#allocation2 + $0xdb] sm:$0xff] }
 0x10e   : > { %4687 = vmatprep.subr.bf16.mxu0 %v7336_v0  ;;  %1876 = vst [vmem:[#allocation3 + $0x254] sm:$0xf] %v6389_v34  ;;  %2090 = vst [vmem:[#allocation3 + $0x210] sm:$0xf] %v6389_v34  ;;  %v6453_v52 = vpack.c.bf16 %v2120_v46, %v2120_v46  ;;  %v6362_v25 = vpack.c.bf16 %v1489_v29, %v1489_v29  ;;  %v2126_v32 = vld [vmem:[#allocation2 + $0x95] sm:$0xff]  ;;  %v6398_v34 = vpack.c.bf16 %v1705_v30, %v1705_v30  ;;  %v2129_v44 = vld [vmem:[#allocation2 + $0xad] sm:$0xff] }
 0x10f   : > { %1662 = vst [vmem:[#allocation3 + $0x298] sm:$0xf] %v6355_v43  ;;  %v6459_v35 = vpack.c.bf16 %v2126_v32, %v2126_v32  ;;  %v6399_v43 = vpack.c.bf16 %v1706_v40, %v1706_v40  ;;  %v6890_v45 = vld [vmem:[#allocation3 + $0x368] ss:$36 sps:$4 sm:$0xff]   ;;  %v6896_v46 = vld [vmem:[#allocation3 + $0x3b4] ss:$36 sps:$4 sm:$0xff]  }
 0x110   : > { %4394 = vmatmul.mubr.bf16.gmra.mxu0 %v6852_v53  ;;  %v6894_v53 = vld [vmem:[#allocation3 + $0x14] ss:$36 sps:$4 sm:$0xff]   ;;  %2300 = vst [vmem:[#allocation3 + $0x13c] sm:$0xf] %v6453_v52  ;;  %1669 = vst [vmem:[#allocation3 + $0x394] sm:$0xf] %v6362_v25  ;;  %v6462_v52 = vpack.c.bf16 %v2129_v44, %v2129_v44 }
 0x111   : > { %4401 = vmatprep.mubr.bf16.mxu0 %v6857_v54  ;;  %4688 = vmatpush2.bf16.msra.mxu0 %v6920_v59  ;;  %v2121_v54 = vld [vmem:[#allocation2 + $0x6d] sm:$0xff]  ;;  %1885 = vst [vmem:[#allocation3 + $0x398] sm:$0xf] %v6398_v34  ;;  %2306 = vst [vmem:[#allocation3 + $0x214] sm:$0xf] %v6459_v35  ;;  %v1709_v5 = vld [vmem:[#allocation2 + $0xfc] sm:$0xff] }
 0x112   : > { %4281 = vmatmul.mubr.bf16.gmra.mxu1 %v6871_v55  ;;  %4689 = vmatprep.subr.bf16.mxu0 %v7336_v0  ;;  %v6449_v0 = vpack.c.bf16 %v2116_v10, %v2116_v10  ;;  %v6454_v55 = vpack.c.bf16 %v2121_v54, %v2121_v54  ;;  %v1484_v59 = vld [vmem:[#allocation2 + $0xb3] sm:$0xff]  ;;  %v6458_v10 = vpack.c.bf16 %v2125_v22, %v2125_v22  ;;  %v2131_v8 = vld [vmem:[#allocation2 + $0xbd] sm:$0xff]  ;;  %v1495_v13 = vld [vmem:[#allocation2 + $0x10b] sm:$0xff] }
 0x113   : > { %4288 = vmatprep.mubr.bf16.mxu1 %v6877_v57  ;;  %v6357_v62 = vpack.c.bf16 %v1484_v59, %v1484_v59  ;;  %v1487_v57 = vld [vmem:[#allocation2 + $0xcb] sm:$0xff]  ;;  %2099 = vst [vmem:[#allocation3 + $0x354] sm:$0xf] %v6398_v34  ;;  %1670 = vst [vmem:[#allocation3 + $0x3b8] sm:$0xf] %v6363_v41  ;;  %v1492_v59 = vld [vmem:[#allocation2 + $0xf3] sm:$0xff]  ;;  %v6402_v51 = vpack.c.bf16 %v1709_v5, %v1709_v5  ;;  %v6368_v27 = vpack.c.bf16 %v1495_v13, %v1495_v13 }
 0x114   : > { %2296 = vst [vmem:[#allocation3 + $0xac] sm:$0xf] %v6449_v0  ;;  %2301 = vst [vmem:[#allocation3 + $0x160] sm:$0xf] %v6454_v55  ;;  %v6902_v0 = vld [vmem:[#allocation3 + $0x58] ss:$36 sps:$4 sm:$0xff]   ;;  %v6365_v61 = vpack.c.bf16 %v1492_v59, %v1492_v59 }
 0x115   : > { %4690 = vmatpush2.bf16.msra.mxu0 %v6928_v2  ;;  %1664 = vst [vmem:[#allocation3 + $0x2e0] sm:$0xf] %v6357_v62  ;;  %v6360_v2 = vpack.c.bf16 %v1487_v57, %v1487_v57  ;;  %2305 = vst [vmem:[#allocation3 + $0x1f0] sm:$0xf] %v6458_v10  ;;  %v7775_v54 = vld [vmem:[#allocation8 + $0x218] sm:$0xff]   ;;  %v6464_v57 = vpack.c.bf16 %v2131_v8, %v2131_v8  ;;  %v7788_v35 = vld [vmem:[#allocation8 + $0x200] sm:$0xff]  }
 0x116   : > { %6596 = vmatprep.subr.bf16.mxu0 %v7750_v38  ;;  %1886 = vst [vmem:[#allocation3 + $0x3bc] sm:$0xf] %v6399_v43  ;;  %2100 = vst [vmem:[#allocation3 + $0x378] sm:$0xf] %v6399_v43  ;;  %v6915_v55 = vld [vmem:[#allocation3 + $0xec] ss:$36 sps:$4 sm:$0xff]  }
 0x117   : > { %1667 = vst [vmem:[#allocation3 + $0x34c] sm:$0xf] %v6360_v2  ;;  %2308 = vst [vmem:[#allocation3 + $0x25c] sm:$0xf] %v6461_v48  ;;  %v1708_v63 = vld [vmem:[#allocation2 + $0xf4] sm:$0xff]  ;;  %v1711_v2 = vld [vmem:[#allocation2 + $0x10c] sm:$0xff] }
 0x118   : > { %4402 = vmatmul.mubr.bf16.gmra.mxu0 %v6859_v15  ;;  %v6900_v15 = vld [vmem:[#allocation3 + $0x5c] ss:$36 sps:$4 sm:$0xff]   ;;  %2309 = vst [vmem:[#allocation3 + $0x280] sm:$0xf] %v6462_v52  ;;  %v6401_v7 = vpack.c.bf16 %v1708_v63, %v1708_v63  ;;  %v2130_v56 = vld [vmem:[#allocation2 + $0xb5] sm:$0xff]  ;;  %v2133_v4 = vld [vmem:[#allocation2 + $0xcd] sm:$0xff] }
 0x119   : > { %4409 = vmatprep.mubr.bf16.mxu0 %v6865_v24  ;;  %v6396_v24 = vpack.c.bf16 %v1703_v17, %v1703_v17  ;;  %1672 = vst [vmem:[#allocation3 + $0x400] sm:$0xf] %v6365_v61  ;;  %v6463_v1 = vpack.c.bf16 %v2130_v56, %v2130_v56  ;;  %1889 = vst [vmem:[#allocation3 + $0x428] sm:$0xf] %v6402_v51  ;;  %v7783_v17 = vld [vmem:[#allocation8 + $0x208] sm:$0xff]   ;;  %v1496_v10 = vld [vmem:[#allocation2 + $0x113] sm:$0xff] }
 0x11a   : > { %4289 = vmatmul.mubr.bf16.gmra.mxu1 %v6879_v12  ;;  %v7767_v12 = vld [vmem:[#allocation8 + $0x228] sm:$0xff]   ;;  %1888 = vst [vmem:[#allocation3 + $0x404] sm:$0xf] %v6401_v7  ;;  %2102 = vst [vmem:[#allocation3 + $0x3c0] sm:$0xf] %v6401_v7  ;;  %v1712_v30 = vld [vmem:[#allocation2 + $0x114] sm:$0xff] }
 0x11b   : > { %4296 = vmatprep.mubr.bf16.mxu1 %v6884_v18  ;;  %1883 = vst [vmem:[#allocation3 + $0x350] sm:$0xf] %v6396_v24  ;;  %2097 = vst [vmem:[#allocation3 + $0x30c] sm:$0xf] %v6396_v24  ;;  %v7769_v18 = vld [vmem:[#allocation8 + $0x220] sm:$0xff]   ;;  %v2132_v24 = vld [vmem:[#allocation2 + $0xc5] sm:$0xff]  ;;  %v6405_v33 = vpack.c.bf16 %v1712_v30, %v1712_v30 }
 0x11c   : > { %2103 = vst [vmem:[#allocation3 + $0x3e4] sm:$0xf] %v6402_v51  ;;  %2310 = vst [vmem:[#allocation3 + $0x2a4] sm:$0xf] %v6463_v1  ;;  %v6904_v21 = vld [vmem:[#allocation3 + $0x3fc] ss:$36 sps:$4 sm:$0xff]  }
 0x11d   : > { %2311 = vst [vmem:[#allocation3 + $0x2c8] sm:$0xf] %v6464_v57  ;;  %1674 = vst [vmem:[#allocation3 + $0x448] sm:$0xf] %v6367_v26  ;;  %v6917_v22 = vld [vmem:[#allocation3 + $0xe8] ss:$36 sps:$4 sm:$0xff]  }
 0x11e   : > { %1675 = vst [vmem:[#allocation3 + $0x46c] sm:$0xf] %v6368_v27  ;;  %v6906_v29 = vld [vmem:[#allocation3 + $0x3f8] ss:$36 sps:$4 sm:$0xff]   ;;  %v6924_v25 = vld [vmem:[#allocation3 + $0x130] ss:$36 sps:$4 sm:$0xff]  }
 0x11f   : > { %v6929_v32 = vld [vmem:[#allocation3 + $0x17c] ss:$36 sps:$4 sm:$0xff]   ;;  %v2134_v36 = vld [vmem:[#allocation2 + $0xd5] sm:$0xff]  ;;  %1892 = vst [vmem:[#allocation3 + $0x494] sm:$0xf] %v6405_v33  ;;  %v1715_v50 = vld [vmem:[#allocation2 + $0x12c] sm:$0xff] }
 0x120   : > { %4410 = vmatmul.mubr.bf16.gmra.mxu0 %v6867_v20  ;;  %v1704_v20 = vld [vmem:[#allocation2 + $0xd4] sm:$0xff]  ;;  %v2135_v37 = vld [vmem:[#allocation2 + $0xdd] sm:$0xff]  ;;  %v6467_v40 = vpack.c.bf16 %v2134_v36, %v2134_v36  ;;  %v1499_v49 = vld [vmem:[#allocation2 + $0x12b] sm:$0xff]  ;;  %2106 = vst [vmem:[#allocation3 + $0x450] sm:$0xf] %v6405_v33 }
 0x121   : > { %4417 = vmatprep.mubr.bf16.mxu0 %v6873_v31  ;;  %v6397_v31 = vpack.c.bf16 %v1704_v20, %v1704_v20  ;;  %v1498_v39 = vld [vmem:[#allocation2 + $0x123] sm:$0xff]  ;;  %v6468_v41 = vpack.c.bf16 %v2135_v37, %v2135_v37  ;;  %v6372_v44 = vpack.c.bf16 %v1499_v49, %v1499_v49  ;;  %v2137_v48 = vld [vmem:[#allocation2 + $0xed] sm:$0xff]  ;;  %v2138_v56 = vld [vmem:[#allocation2 + $0xf5] sm:$0xff] }
 0x122   : > { %4297 = vmatmul.mubr.bf16.gmra.mxu1 %v6887_v47  ;;  %v6400_v47 = vpack.c.bf16 %v1707_v42, %v1707_v42  ;;  %v6371_v42 = vpack.c.bf16 %v1498_v39, %v1498_v39  ;;  %v1714_v43 = vld [vmem:[#allocation2 + $0x124] sm:$0xff]  ;;  %2314 = vst [vmem:[#allocation3 + $0x334] sm:$0xf] %v6467_v40  ;;  %v2337_v61 = vld [vmem:[#allocation2 + $0x6e] sm:$0xff]  ;;  %v6471_v9 = vpack.c.bf16 %v2138_v56, %v2138_v56  ;;  %v2342_v27 = vld [vmem:[#allocation2 + $0x96] sm:$0xff] }
 0x123   : > { %4514 = vmatprep.mubr.bf16.mxu1 %v6894_v53  ;;  %1884 = vst [vmem:[#allocation3 + $0x374] sm:$0xf] %v6397_v31  ;;  %2098 = vst [vmem:[#allocation3 + $0x330] sm:$0xf] %v6397_v31  ;;  %v6909_v53 = vld [vmem:[#allocation3 + $0xa0] ss:$36 sps:$4 sm:$0xff]   ;;  %v6490_v5 = vpack.c.bf16 %v2337_v61, %v2337_v61 }
 0x124   : > { %1887 = vst [vmem:[#allocation3 + $0x3e0] sm:$0xf] %v6400_v47  ;;  %2101 = vst [vmem:[#allocation3 + $0x39c] sm:$0xf] %v6400_v47  ;;  %v1713_v31 = vld [vmem:[#allocation2 + $0x11c] sm:$0xff]  ;;  %v2136_v47 = vld [vmem:[#allocation2 + $0xe5] sm:$0xff] }
 0x125   : > { %v6406_v34 = vpack.c.bf16 %v1713_v31, %v1713_v31  ;;  %v2336_v52 = vld [vmem:[#allocation2 + $0x66] sm:$0xff]  ;;  %2315 = vst [vmem:[#allocation3 + $0x358] sm:$0xf] %v6468_v41  ;;  %1678 = vst [vmem:[#allocation3 + $0x4d8] sm:$0xf] %v6371_v42  ;;  %v2339_v7 = vld [vmem:[#allocation2 + $0x7e] sm:$0xff] }
 0x126   : > { %v6489_v59 = vpack.c.bf16 %v2336_v52, %v2336_v52  ;;  %1679 = vst [vmem:[#allocation3 + $0x4fc] sm:$0xf] %v6372_v44  ;;  %v6918_v63 = vld [vmem:[#allocation3 + $0x48c] ss:$36 sps:$4 sm:$0xff]   ;;  %v2139_v8 = vld [vmem:[#allocation2 + $0xfd] sm:$0xff]  ;;  %v6492_v1 = vpack.c.bf16 %v2339_v7, %v2339_v7  ;;  %v2340_v57 = vld [vmem:[#allocation2 + $0x86] sm:$0xff] }
 0x127   : > { %1893 = vst [vmem:[#allocation3 + $0x4b8] sm:$0xf] %v6406_v34  ;;  %2107 = vst [vmem:[#allocation3 + $0x474] sm:$0xf] %v6406_v34  ;;  %v6472_v13 = vpack.c.bf16 %v2139_v8, %v2139_v8  ;;  %v2341_v26 = vld [vmem:[#allocation2 + $0x8e] sm:$0xff]  ;;  %v2346_v39 = vld [vmem:[#allocation2 + $0xb6] sm:$0xff] }
 0x128   : > { %4418 = vmatmul.mubr.bf16.gmra.mxu0 %v6875_v60  ;;  %v1493_v60 = vld [vmem:[#allocation2 + $0xfb] sm:$0xff]  ;;  %2516 = vst [vmem:[#allocation3 + $0x140] sm:$0xf] %v6489_v59  ;;  %2517 = vst [vmem:[#allocation3 + $0x164] sm:$0xf] %v6490_v5  ;;  %v2145_v5 = vld [vmem:[#allocation2 + $0x12d] sm:$0xff] }
 0x129   : > { %4425 = vmatprep.mubr.bf16.mxu0 %v6880_v58  ;;  %v6366_v62 = vpack.c.bf16 %v1493_v60, %v1493_v60  ;;  %v1710_v58 = vld [vmem:[#allocation2 + $0x104] sm:$0xff]  ;;  %2519 = vst [vmem:[#allocation3 + $0x1ac] sm:$0xf] %v6492_v1  ;;  %2318 = vst [vmem:[#allocation3 + $0x3c4] sm:$0xf] %v6471_v9  ;;  %v2142_v41 = vld [vmem:[#allocation2 + $0x115] sm:$0xff]  ;;  %v6478_v8 = vpack.c.bf16 %v2145_v5, %v2145_v5 }
 0x12a   : > { %4515 = vmatmul.mubr.bf16.vlgmr.msra.gmra.mxu1 %v6892_v14  ;;  %v6403_v3 = vpack.c.bf16 %v1710_v58, %v1710_v58  ;;  %v6404_v14 = vpack.c.bf16 %v1711_v2, %v1711_v2  ;;  %v6913_v60 = vld [vmem:[#allocation3 + $0x440] ss:$36 sps:$4 sm:$0xff]   ;;  %v6493_v58 = vpack.c.bf16 %v2340_v57, %v2340_v57  ;;  %v6494_v2 = vpack.c.bf16 %v2341_v26, %v2341_v26  ;;  %v6927_v33 = vld [vmem:[#allocation3 + $0x4d0] ss:$36 sps:$4 sm:$0xff]   ;;  %v6944_v37 = vld [vmem:[#allocation3 + $0x208] ss:$36 sps:$4 sm:$0xff]  }
 0x12b   : > { %6656 = vmatpush3.bf16.msra.mxu1 %v7750_v38  ;;  %4522 = vmatprep.mubr.bf16.mxu1 %v6900_v15  ;;  %v6361_v38 = vpack.c.bf16 %v1488_v19, %v1488_v19  ;;  %1673 = vst [vmem:[#allocation3 + $0x424] sm:$0xf] %v6366_v62  ;;  %v6898_v15 = vld [vmem:[#allocation3 + $0x3b0] ss:$36 sps:$4 sm:$0xff]   ;;  %2319 = vst [vmem:[#allocation3 + $0x3e8] sm:$0xf] %v6472_v13 }
 0x12c   : > { %6649 = vmatprep.subr.bf16.mxu1 %v7763_v16  ;;  %1890 = vst [vmem:[#allocation3 + $0x44c] sm:$0xf] %v6403_v3  ;;  %1891 = vst [vmem:[#allocation3 + $0x470] sm:$0xf] %v6404_v14  ;;  %v1497_v19 = vld [vmem:[#allocation2 + $0x11b] sm:$0xff]  ;;  %v2353_v56 = vld [vmem:[#allocation2 + $0xee] sm:$0xff] }
 0x12d   : > { %1668 = vst [vmem:[#allocation3 + $0x370] sm:$0xf] %v6361_v38  ;;  %2104 = vst [vmem:[#allocation3 + $0x408] sm:$0xf] %v6403_v3  ;;  %v6370_v20 = vpack.c.bf16 %v1497_v19, %v1497_v19  ;;  %v6911_v38 = vld [vmem:[#allocation3 + $0x444] ss:$36 sps:$4 sm:$0xff]   ;;  %v6506_v9 = vpack.c.bf16 %v2353_v56, %v2353_v56 }
 0x12e   : > { %2105 = vst [vmem:[#allocation3 + $0x42c] sm:$0xf] %v6404_v14  ;;  %v2338_v62 = vld [vmem:[#allocation2 + $0x76] sm:$0xff]  ;;  %v2343_v3 = vld [vmem:[#allocation2 + $0x9e] sm:$0xff]  ;;  %v6495_v14 = vpack.c.bf16 %v2342_v27, %v2342_v27  ;;  %2520 = vst [vmem:[#allocation3 + $0x1d0] sm:$0xf] %v6493_v58 }
 0x12f   : > { %6657 = vmatpush3.bf16.msra.mxu1 %v7763_v16  ;;  %1677 = vst [vmem:[#allocation3 + $0x4b4] sm:$0xf] %v6370_v20  ;;  %v6491_v51 = vpack.c.bf16 %v2338_v62, %v2338_v62  ;;  %2521 = vst [vmem:[#allocation3 + $0x1f4] sm:$0xf] %v6494_v2  ;;  %v6925_v20 = vld [vmem:[#allocation3 + $0x4d4] ss:$36 sps:$4 sm:$0xff]  }
 0x130   : > { %4426 = vmatmul.mubr.bf16.gmra.mxu0 %v6883_v23  ;;  %6650 = vmatprep.subr.bf16.mxu1 %v7767_v12  ;;  %v6922_v23 = vld [vmem:[#allocation3 + $0x134] ss:$36 sps:$4 sm:$0xff]   ;;  %2522 = vst [vmem:[#allocation3 + $0x218] sm:$0xf] %v6495_v14  ;;  %v6935_v34 = vld [vmem:[#allocation3 + $0x1c] ss:$36 sps:$4 sm:$0xff]  }
 0x131   : > { %4433 = vmatprep.mubr.bf16.mxu0 %v6888_v11  ;;  %v6465_v11 = vpack.c.bf16 %v2132_v24, %v2132_v24  ;;  %2518 = vst [vmem:[#allocation3 + $0x188] sm:$0xf] %v6491_v51  ;;  %v2347_v40 = vld [vmem:[#allocation2 + $0xbe] sm:$0xff]  ;;  %v2352_v51 = vld [vmem:[#allocation2 + $0xe6] sm:$0xff]  ;;  %v2354_v13 = vld [vmem:[#allocation2 + $0xf6] sm:$0xff] }
 0x132   : > { %4523 = vmatmul.mubr.bf16.gmra.mxu1 %v6902_v0  ;;  %v6466_v0 = vpack.c.bf16 %v2133_v4, %v2133_v4  ;;  %v6949_v42 = vld [vmem:[#allocation3 + $0x254] ss:$36 sps:$4 sm:$0xff]   ;;  %v6505_v1 = vpack.c.bf16 %v2352_v51, %v2352_v51  ;;  %v6507_v27 = vpack.c.bf16 %v2354_v13, %v2354_v13  ;;  %2325 = vst [vmem:[#allocation3 + $0x4c0] sm:$0xf] %v6478_v8  ;;  %2533 = vst [vmem:[#allocation3 + $0x3a4] sm:$0xf] %v6506_v9 }
 0x133   : > { %4530 = vmatprep.mubr.bf16.mxu1 %v6907_v28  ;;  %6658 = vmatpush3.bf16.msra.mxu1 %v7767_v12  ;;  %v6369_v28 = vpack.c.bf16 %v1496_v10, %v1496_v10  ;;  %2312 = vst [vmem:[#allocation3 + $0x2ec] sm:$0xf] %v6465_v11  ;;  %v6936_v10 = vld [vmem:[#allocation3 + $0x1c4] ss:$36 sps:$4 sm:$0xff]   ;;  %v2143_v44 = vld [vmem:[#allocation2 + $0x11d] sm:$0xff] }
 0x134   : > { %6651 = vmatprep.subr.bf16.mxu1 %v7769_v18  ;;  %2313 = vst [vmem:[#allocation3 + $0x310] sm:$0xf] %v6466_v0  ;;  %v2344_v11 = vld [vmem:[#allocation2 + $0xa6] sm:$0xff]  ;;  %v2345_v0 = vld [vmem:[#allocation2 + $0xae] sm:$0xff]  ;;  %v2351_v59 = vld [vmem:[#allocation2 + $0xde] sm:$0xff] }
 0x135   : > { %1676 = vst [vmem:[#allocation3 + $0x490] sm:$0xf] %v6369_v28  ;;  %v6497_v28 = vpack.c.bf16 %v2344_v11, %v2344_v11  ;;  %v6498_v19 = vpack.c.bf16 %v2345_v0, %v2345_v0  ;;  %v2355_v57 = vld [vmem:[#allocation2 + $0xfe] sm:$0xff]  ;;  %2532 = vst [vmem:[#allocation3 + $0x380] sm:$0xf] %v6505_v1  ;;  %v2332_v9 = vld [vmem:[#allocation2 + $0x46] sm:$0xff] }
 0x136   : > { %v6508_v58 = vpack.c.bf16 %v2355_v57, %v2355_v57  ;;  %2534 = vst [vmem:[#allocation3 + $0x3c8] sm:$0xf] %v6507_v27  ;;  %v1931_v14 = vld [vmem:[#allocation2 + $0x13c] sm:$0xff]  ;;  %v2333_v13 = vld [vmem:[#allocation2 + $0x4e] sm:$0xff]  ;;  %v6485_v27 = vpack.c.bf16 %v2332_v9, %v2332_v9 }
 0x137   : > { %6659 = vmatpush3.bf16.msra.mxu1 %v7769_v18  ;;  %2524 = vst [vmem:[#allocation3 + $0x260] sm:$0xf] %v6497_v28  ;;  %2525 = vst [vmem:[#allocation3 + $0x284] sm:$0xf] %v6498_v19  ;;  %v6951_v28 = vld [vmem:[#allocation3 + $0x250] ss:$36 sps:$4 sm:$0xff]  }
 0x138   : > { %4434 = vmatmul.mubr.bf16.gmra.mxu0 %v6890_v45  ;;  %6652 = vmatprep.subr.bf16.mxu1 %v7775_v54  ;;  %v6407_v45 = vpack.c.bf16 %v1714_v43, %v1714_v43  ;;  %v6499_v43 = vpack.c.bf16 %v2346_v39, %v2346_v39  ;;  %2535 = vst [vmem:[#allocation3 + $0x3ec] sm:$0xf] %v6508_v58  ;;  %v6957_v39 = vld [vmem:[#allocation3 + $0x298] ss:$36 sps:$4 sm:$0xff]   ;;  %v6948_v57 = vld [vmem:[#allocation3 + $0xa8] ss:$36 sps:$4 sm:$0xff]  }
 0x139   : > { %4441 = vmatprep.mubr.bf16.mxu0 %v6896_v46  ;;  %v6408_v46 = vpack.c.bf16 %v1715_v50, %v1715_v50  ;;  %v6500_v50 = vpack.c.bf16 %v2347_v40, %v2347_v40  ;;  %v2363_v51 = vld [vmem:[#allocation2 + $0x13e] sm:$0xff]  ;;  %v6486_v58 = vpack.c.bf16 %v2333_v13, %v2333_v13  ;;  %2512 = vst [vmem:[#allocation3 + $0xb0] sm:$0xf] %v6485_v27  ;;  %v6994_v13 = vld [vmem:[#allocation3 + $0x448] ss:$36 sps:$4 sm:$0xff]  }
 0x13a   : > { %4531 = vmatmul.mubr.bf16.gmra.mxu1 %v6909_v53  ;;  %v6469_v53 = vpack.c.bf16 %v2136_v47, %v2136_v47  ;;  %1894 = vst [vmem:[#allocation3 + $0x4dc] sm:$0xf] %v6407_v45  ;;  %2108 = vst [vmem:[#allocation3 + $0x498] sm:$0xf] %v6407_v45  ;;  %v6475_v45 = vpack.c.bf16 %v2142_v41, %v2142_v41  ;;  %v2349_v47 = vld [vmem:[#allocation2 + $0xce] sm:$0xff]  ;;  %v6516_v1 = vpack.c.bf16 %v2363_v51, %v2363_v51 }
 0x13b   : > { %4538 = vmatprep.mubr.bf16.mxu1 %v6915_v55  ;;  %6660 = vmatpush3.bf16.msra.mxu1 %v7775_v54  ;;  %v6470_v55 = vpack.c.bf16 %v2137_v48, %v2137_v48  ;;  %1895 = vst [vmem:[#allocation3 + $0x500] sm:$0xf] %v6408_v46  ;;  %2109 = vst [vmem:[#allocation3 + $0x4bc] sm:$0xf] %v6408_v46  ;;  %v2348_v46 = vld [vmem:[#allocation2 + $0xc6] sm:$0xff]  ;;  %v6476_v48 = vpack.c.bf16 %v2143_v44, %v2143_v44  ;;  %v2359_v44 = vld [vmem:[#allocation2 + $0x11e] sm:$0xff] }
 0x13c   : > { %6653 = vmatprep.subr.bf16.mxu1 %v7778_v6  ;;  %2316 = vst [vmem:[#allocation3 + $0x37c] sm:$0xf] %v6469_v53  ;;  %v6501_v52 = vpack.c.bf16 %v2348_v46, %v2348_v46  ;;  %v6502_v53 = vpack.c.bf16 %v2349_v47, %v2349_v47  ;;  %2526 = vst [vmem:[#allocation3 + $0x2a8] sm:$0xf] %v6499_v43  ;;  %v6964_v41 = vld [vmem:[#allocation3 + $0x2e4] ss:$36 sps:$4 sm:$0xff]  }
 0x13d   : > { %2317 = vst [vmem:[#allocation3 + $0x3a0] sm:$0xf] %v6470_v55  ;;  %v2350_v55 = vld [vmem:[#allocation2 + $0xd6] sm:$0xff]  ;;  %2527 = vst [vmem:[#allocation3 + $0x2cc] sm:$0xf] %v6500_v50  ;;  %v2328_v46 = vld [vmem:[#allocation2 + $0x26] sm:$0xff] }
 0x13e   : > { %2322 = vst [vmem:[#allocation3 + $0x454] sm:$0xf] %v6475_v45  ;;  %v6503_v62 = vpack.c.bf16 %v2350_v55, %v2350_v55  ;;  %2323 = vst [vmem:[#allocation3 + $0x478] sm:$0xf] %v6476_v48  ;;  %v2358_v43 = vld [vmem:[#allocation2 + $0x116] sm:$0xff]  ;;  %v2329_v47 = vld [vmem:[#allocation2 + $0x2e] sm:$0xff] }
 0x13f   : > { %6661 = vmatpush3.bf16.msra.mxu1 %v7778_v6  ;;  %2528 = vst [vmem:[#allocation3 + $0x2f0] sm:$0xf] %v6501_v52  ;;  %2529 = vst [vmem:[#allocation3 + $0x314] sm:$0xf] %v6502_v53  ;;  %v6511_v45 = vpack.c.bf16 %v2358_v43, %v2358_v43  ;;  %v6481_v52 = vpack.c.bf16 %v2328_v46, %v2328_v46  ;;  %v6482_v53 = vpack.c.bf16 %v2329_v47, %v2329_v47  ;;  %v2330_v55 = vld [vmem:[#allocation2 + $0x36] sm:$0xff] }
 0x140   : > { %4442 = vmatmul.mubr.bf16.gmra.mxu0 %v6898_v15  ;;  %6654 = vmatprep.subr.bf16.mxu1 %v7783_v17  ;;  %v2140_v15 = vld [vmem:[#allocation2 + $0x105] sm:$0xff]  ;;  %2530 = vst [vmem:[#allocation3 + $0x338] sm:$0xf] %v6503_v62  ;;  %2543 = vst [vmem:[#allocation3 + $0x50c] sm:$0xf] %v6516_v1 }
 0x141   : > { %4449 = vmatprep.mubr.bf16.mxu0 %v6904_v21  ;;  %v2141_v21 = vld [vmem:[#allocation2 + $0x10d] sm:$0xff]  ;;  %v6473_v24 = vpack.c.bf16 %v2140_v15, %v2140_v15  ;;  %v2146_v15 = vld [vmem:[#allocation2 + $0x135] sm:$0xff]  ;;  %2538 = vst [vmem:[#allocation3 + $0x458] sm:$0xf] %v6511_v45  ;;  %2508 = vst [vmem:[#allocation3 + $0x20] sm:$0xf] %v6481_v52 }
 0x142   : > { %4539 = vmatmul.mubr.bf16.gmra.mxu1 %v6917_v22  ;;  %v6931_v22 = vld [vmem:[#allocation3 + $0x178] ss:$36 sps:$4 sm:$0xff]   ;;  %v6474_v4 = vpack.c.bf16 %v2141_v21, %v2141_v21  ;;  %2509 = vst [vmem:[#allocation3 + $0x44] sm:$0xf] %v6482_v53  ;;  %2513 = vst [vmem:[#allocation3 + $0xd4] sm:$0xf] %v6486_v58 }
 0x143   : > { %4546 = vmatprep.mubr.bf16.mxu1 %v6922_v23  ;;  %6662 = vmatpush3.bf16.msra.mxu1 %v7783_v17  ;;  %v6496_v23 = vpack.c.bf16 %v2343_v3, %v2343_v3  ;;  %2320 = vst [vmem:[#allocation3 + $0x40c] sm:$0xf] %v6473_v24  ;;  %v1930_v3 = vld [vmem:[#allocation2 + $0x134] sm:$0xff]  ;;  %v6933_v21 = vld [vmem:[#allocation3 + $0x18] ss:$36 sps:$4 sm:$0xff]  }
 0x144   : > { %6655 = vmatprep.subr.bf16.mxu1 %v7788_v35  ;;  %2321 = vst [vmem:[#allocation3 + $0x430] sm:$0xf] %v6474_v4  ;;  %v2147_v24 = vld [vmem:[#allocation2 + $0x13d] sm:$0xff]  ;;  %v6479_v4 = vpack.c.bf16 %v2146_v15, %v2146_v15  ;;  %v6971_v43 = vld [vmem:[#allocation3 + $0x1cc] ss:$36 sps:$4 sm:$0xff]  }
 0x145   : > { %2523 = vst [vmem:[#allocation3 + $0x23c] sm:$0xf] %v6496_v23  ;;  %v6444_v23 = vpack.c.bf16 %v1931_v14, %v1931_v14  ;;  %v6480_v0 = vpack.c.bf16 %v2147_v24, %v2147_v24  ;;  %v6952_v14 = vld [vmem:[#allocation3 + $0xf4] ss:$36 sps:$4 sm:$0xff]   ;;  %v6989_v46 = vld [vmem:[#allocation3 + $0x404] ss:$36 sps:$4 sm:$0xff]  }
 0x146   : > { %2326 = vst [vmem:[#allocation3 + $0x4e4] sm:$0xf] %v6479_v4  ;;  %v6970_v4 = vld [vmem:[#allocation3 + $0x32c] ss:$36 sps:$4 sm:$0xff]   ;;  %v6978_v52 = vld [vmem:[#allocation3 + $0x214] ss:$36 sps:$4 sm:$0xff]  }
 0x147   : > { %6663 = vmatpush3.bf16.msra.mxu1 %v7788_v35  ;;  %2111 = vst [vmem:[#allocation3 + $0x504] sm:$0xf] %v6444_v23  ;;  %2327 = vst [vmem:[#allocation3 + $0x508] sm:$0xf] %v6480_v0  ;;  %v6962_v23 = vld [vmem:[#allocation3 + $0x2e0] ss:$36 sps:$4 sm:$0xff]  }
 0x148   : > { %4450 = vmatmul.mubr.bf16.gmra.mxu0 %v6906_v29  ;;  %v6921_v29 = vld [vmem:[#allocation3 + $0x488] ss:$36 sps:$4 sm:$0xff]   ;;  %v6954_v0 = vld [vmem:[#allocation3 + $0xf0] ss:$36 sps:$4 sm:$0xff]  }
 0x149   : > { %4457 = vmatprep.mubr.bf16.mxu0 %v6911_v38  ;;  %v6938_v38 = vld [vmem:[#allocation3 + $0x1c0] ss:$36 sps:$4 sm:$0xff]   ;;  %v6980_v51 = vld [vmem:[#allocation3 + $0x210] ss:$36 sps:$4 sm:$0xff]  }
 0x14a   : > { %4547 = vmatmul.mubr.bf16.gmra.mxu1 %v6924_v25  ;;  %v6942_v25 = vld [vmem:[#allocation3 + $0x20c] ss:$36 sps:$4 sm:$0xff]  }
 0x14b   : > { %4554 = vmatprep.mubr.bf16.mxu1 %v6929_v32 }
 0x150   : > { %4458 = vmatmul.mubr.bf16.gmra.mxu0 %v6913_v60  ;;  %v2144_v60 = vld [vmem:[#allocation2 + $0x125] sm:$0xff] }
 0x151   : > { %4465 = vmatprep.mubr.bf16.mxu0 %v6918_v63  ;;  %v6504_v63 = vpack.c.bf16 %v2351_v59, %v2351_v59  ;;  %v6477_v7 = vpack.c.bf16 %v2144_v60, %v2144_v60  ;;  %v2331_v59 = vld [vmem:[#allocation2 + $0x3e] sm:$0xff]  ;;  %v2360_v60 = vld [vmem:[#allocation2 + $0x126] sm:$0xff] }
 0x152   : > { %4555 = vmatmul.mubr.bf16.gmra.mxu1 %v6931_v22  ;;  %v6443_v22 = vpack.c.bf16 %v1930_v3, %v1930_v3  ;;  %v6484_v62 = vpack.c.bf16 %v2331_v59, %v2331_v59  ;;  %v6513_v5 = vpack.c.bf16 %v2360_v60, %v2360_v60  ;;  %v2335_v3 = vld [vmem:[#allocation2 + $0x5e] sm:$0xff]  ;;  %v6996_v60 = vld [vmem:[#allocation3 + $0x44c] ss:$36 sps:$4 sm:$0xff]  }
 0x153   : > { %4562 = vmatprep.mubr.bf16.mxu1 %v6936_v10  ;;  %2531 = vst [vmem:[#allocation3 + $0x35c] sm:$0xf] %v6504_v63  ;;  %2324 = vst [vmem:[#allocation3 + $0x49c] sm:$0xf] %v6477_v7  ;;  %v6939_v10 = vld [vmem:[#allocation3 + $0x64] ss:$36 sps:$4 sm:$0xff]  }
 0x154   : > { %2110 = vst [vmem:[#allocation3 + $0x4e0] sm:$0xf] %v6443_v22  ;;  %v2361_v63 = vld [vmem:[#allocation2 + $0x12e] sm:$0xff]  ;;  %v2362_v7 = vld [vmem:[#allocation2 + $0x136] sm:$0xff]  ;;  %2511 = vst [vmem:[#allocation3 + $0x8c] sm:$0xf] %v6484_v62  ;;  %v6488_v22 = vpack.c.bf16 %v2335_v3, %v2335_v3 }
 0x155   : > { %v6515_v8 = vpack.c.bf16 %v2362_v7, %v2362_v7  ;;  %2540 = vst [vmem:[#allocation3 + $0x4a0] sm:$0xf] %v6513_v5 }
 0x156   : > { %2515 = vst [vmem:[#allocation3 + $0x11c] sm:$0xf] %v6488_v22 }
 0x157   : > { %2542 = vst [vmem:[#allocation3 + $0x4e8] sm:$0xf] %v6515_v8  ;;  %v6984_v8 = vld [vmem:[#allocation3 + $0x25c] ss:$36 sps:$4 sm:$0xff]  }
 0x158   : > { %4466 = vmatmul.mubr.bf16.gmra.mxu0 %v6921_v29  ;;  %v7792_v30 = vpop.f32.mrf.mxu0  ;;  %v6955_v29 = vld [vmem:[#allocation3 + $0x29c] ss:$36 sps:$4 sm:$0xff]  }
 0x159   : > { %4473 = vmatprep.mubr.bf16.mxu0 %v6925_v20  ;;  %v7794_v31 = vpop.f32.mrf.mxu1  ;;  %v7178_v20 = vld [vmem:[#allocation8 + $0x238] sm:$0xff]  }
 0x15a   : > { %v6595_v32 = vpop.f32.mrf.mxu0  ;;  %4563 = vmatmul.mubr.bf16.gmra.mxu1 %v6938_v38 }
 0x15b   : > { %v4164_v36 = vpop.f32.mrf.mxu1  ;;  %4570 = vmatprep.mubr.bf16.mxu1 %v6942_v25  ;;  %v2356_v32 = vld [vmem:[#allocation2 + $0x106] sm:$0xff] }
 0x15c   : > { %v6946_v36 = vld [vmem:[#allocation3 + $0xac] ss:$36 sps:$4 sm:$0xff]  }
 0x15d   : > { %v7796_v49 = vpop.f32.mrf.mxu1 }
 0x15f   : > { %v4167_v61 = vpop.f32.mrf.mxu1 }
 0x160   : > { %4474 = vmatmul.mubr.bf16.gmra.mxu0 %v6927_v33  ;;  %v6941_v33 = vld [vmem:[#allocation3 + $0x60] ss:$36 sps:$4 sm:$0xff]   ;;  %v6483_v61 = vpack.c.bf16 %v2330_v55, %v2330_v55 }
 0x161   : > { %4691 = vmatprep.mubr.bf16.mxu0 %v6935_v34  ;;  %v7798_v26 = vpop.f32.mrf.mxu1  ;;  %v6509_v34 = vpack.c.bf16 %v2356_v32, %v2356_v32  ;;  %v6987_v55 = vld [vmem:[#allocation3 + $0x400] ss:$36 sps:$4 sm:$0xff]  }
 0x162   : > { %4571 = vmatmul.mubr.bf16.gmra.mxu1 %v6944_v37  ;;  %2510 = vst [vmem:[#allocation3 + $0x68] sm:$0xf] %v6483_v61 }
 0x163   : > { %v4172_v2 = vpop.f32.mrf.mxu1  ;;  %4578 = vmatprep.mubr.bf16.mxu1 %v6949_v42  ;;  %2536 = vst [vmem:[#allocation3 + $0x410] sm:$0xf] %v6509_v34  ;;  %v2357_v42 = vld [vmem:[#allocation2 + $0x10e] sm:$0xff] }
 0x164   : > { %v6510_v50 = vpack.c.bf16 %v2357_v42, %v2357_v42  ;;  %v2334_v2 = vld [vmem:[#allocation2 + $0x56] sm:$0xff]  ;;  %v6965_v34 = vld [vmem:[#allocation3 + $0x184] ss:$36 sps:$4 sm:$0xff]  }
 0x165   : > { %v7800_v11 = vpop.f32.mrf.mxu1  ;;  %v6967_v42 = vld [vmem:[#allocation3 + $0x180] ss:$36 sps:$4 sm:$0xff]  }
 0x166   : > { %2537 = vst [vmem:[#allocation3 + $0x434] sm:$0xf] %v6510_v50 }
 0x167   : > { %v4175_v19 = vpop.f32.mrf.mxu1 }
 0x168   : > { %4692 = vmatmul.mubr.bf16.vlgmr.msra.gmra.mxu0 %v6933_v21  ;;  %v6487_v21 = vpack.c.bf16 %v2334_v2, %v2334_v2 }
 0x169   : > { %6597 = vmatpush3.bf16.msra.mxu0 %v7178_v20  ;;  %4699 = vmatprep.mubr.bf16.mxu0 %v6939_v10  ;;  %v7802_v38 = vpop.f32.mrf.mxu1 }
 0x16a   : > { %6598 = vmatprep.subr.bf16.mxu0 %v7763_v16  ;;  %4579 = vmatmul.mubr.bf16.gmra.mxu1 %v6951_v28  ;;  %2514 = vst [vmem:[#allocation3 + $0xf8] sm:$0xf] %v6487_v21  ;;  %v6958_v28 = vld [vmem:[#allocation3 + $0x13c] ss:$36 sps:$4 sm:$0xff]  }
 0x16b   : > { %v4180_v25 = vpop.f32.mrf.mxu1  ;;  %4586 = vmatprep.mubr.bf16.mxu1 %v6955_v29  ;;  %v6968_v29 = vld [vmem:[#allocation3 + $0x328] ss:$36 sps:$4 sm:$0xff]  }
 0x16c   : > { %v6977_v25 = vld [vmem:[#allocation3 + $0x374] ss:$36 sps:$4 sm:$0xff]  }
 0x16d   : > { %6599 = vmatpush3.bf16.msra.mxu0 %v7763_v16  ;;  %v7806_v37 = vpop.f32.mrf.mxu1  ;;  %v6512_v16 = vpack.c.bf16 %v2359_v44, %v2359_v44  ;;  %v6981_v44 = vld [vmem:[#allocation3 + $0x3b8] ss:$36 sps:$4 sm:$0xff]  }
 0x16e   : > { %6600 = vmatprep.subr.bf16.mxu0 %v7767_v12 }
 0x16f   : > { %v4183_v40 = vpop.f32.mrf.mxu1  ;;  %2539 = vst [vmem:[#allocation3 + $0x47c] sm:$0xf] %v6512_v16  ;;  %v6973_v16 = vld [vmem:[#allocation3 + $0x1c8] ss:$36 sps:$4 sm:$0xff]  }
 0x170   : > { %4700 = vmatmul.mubr.bf16.gmra.mxu0 %v6941_v33  ;;  %v6960_v33 = vld [vmem:[#allocation3 + $0x138] ss:$36 sps:$4 sm:$0xff]  }
 0x171   : > { %4707 = vmatprep.mubr.bf16.mxu0 %v6946_v36  ;;  %v7809_v48 = vpop.f32.mrf.mxu1  ;;  %6601 = vmatpush3.bf16.msra.mxu0 %v7767_v12  ;;  %v6514_v12 = vpack.c.bf16 %v2361_v63, %v2361_v63  ;;  %v6983_v40 = vld [vmem:[#allocation3 + $0x3bc] ss:$36 sps:$4 sm:$0xff]  }
 0x172   : > { %4587 = vmatmul.mubr.bf16.gmra.mxu1 %v6957_v39  ;;  %6602 = vmatprep.subr.bf16.mxu0 %v7769_v18 }
 0x173   : > { %v4188_v56 = vpop.f32.mrf.mxu1  ;;  %4594 = vmatprep.mubr.bf16.mxu1 %v6964_v41  ;;  %2541 = vst [vmem:[#allocation3 + $0x4c4] sm:$0xf] %v6514_v12 }
 0x175   : > { %v7813_v15 = vpop.f32.mrf.mxu1  ;;  %6603 = vmatpush3.bf16.msra.mxu0 %v7769_v18 }
 0x176   : > { %6604 = vmatprep.subr.bf16.mxu0 %v7775_v54 }
 0x177   : > { %v4191_v24 = vpop.f32.mrf.mxu1 }
 0x178   : > { %4708 = vmatmul.mubr.bf16.gmra.mxu0 %v6948_v57  ;;  %v7002_v57 = vld [vmem:[#allocation3 + $0x494] ss:$36 sps:$4 sm:$0xff]  }
 0x179   : > { %4715 = vmatprep.mubr.bf16.mxu0 %v6952_v14  ;;  %v7817_v10 = vpop.f32.mrf.mxu1  ;;  %6605 = vmatpush3.bf16.msra.mxu0 %v7775_v54  ;;  %v6986_v14 = vld [vmem:[#allocation3 + $0x258] ss:$36 sps:$4 sm:$0xff]  }
 0x17a   : > { %4595 = vmatmul.mubr.bf16.gmra.mxu1 %v6962_v23  ;;  %6606 = vmatprep.subr.bf16.mxu0 %v7778_v6  ;;  %v6993_v23 = vld [vmem:[#allocation3 + $0x2a4] ss:$36 sps:$4 sm:$0xff]  }
 0x17b   : > { %v4196_v18 = vpop.f32.mrf.mxu1  ;;  %4602 = vmatprep.mubr.bf16.mxu1 %v6970_v4 }
 0x17c   : > { %v7000_v18 = vld [vmem:[#allocation3 + $0x490] ss:$36 sps:$4 sm:$0xff]  }
 0x17d   : > { %v7821_v19 = vpop.f32.mrf.mxu1  ;;  %6607 = vmatpush3.bf16.msra.mxu0 %v7778_v6  ;;  %v6975_v6 = vld [vmem:[#allocation3 + $0x370] ss:$36 sps:$4 sm:$0xff]  }
 0x17e   : > { %6608 = vmatprep.subr.bf16.mxu0 %v7783_v17 }
 0x17f   : > { %v4199_v20 = vpop.f32.mrf.mxu1 }
 0x180   : > { %4716 = vmatmul.mubr.bf16.gmra.mxu0 %v6954_v0  ;;  %v7009_v0 = vld [vmem:[#allocation3 + $0x4dc] ss:$36 sps:$4 sm:$0xff]  }
 0x181   : > { %4723 = vmatprep.mubr.bf16.mxu0 %v6958_v28  ;;  %v7825_v32 = vpop.f32.mrf.mxu1  ;;  %6609 = vmatpush3.bf16.msra.mxu0 %v7783_v17 }
 0x182   : > { %4603 = vmatmul.mubr.bf16.gmra.mxu1 %v6968_v29  ;;  %6610 = vmatprep.subr.bf16.mxu0 %v7788_v35 }
 0x183   : > { %v4204_v54 = vpop.f32.mrf.mxu1  ;;  %4610 = vmatprep.mubr.bf16.mxu1 %v6977_v25 }
 0x184   : > { %v6991_v54 = vld [vmem:[#allocation3 + $0x2a0] ss:$36 sps:$4 sm:$0xff]  }
 0x185   : > { %v7829_v36 = vpop.f32.mrf.mxu1  ;;  %6611 = vmatpush3.bf16.msra.mxu0 %v7788_v35 }
 0x187   : > { %v4207_v39 = vpop.f32.mrf.mxu1 }
 0x188   : > { %4724 = vmatmul.mubr.bf16.gmra.mxu0 %v6960_v33 }
 0x189   : > { %4731 = vmatprep.mubr.bf16.mxu0 %v6965_v34  ;;  %v7832_v41 = vpop.f32.mrf.mxu1 }
 0x18a   : > { %4611 = vmatmul.mubr.bf16.gmra.mxu1 %v6975_v6  ;;  %v6999_v6 = vld [vmem:[#allocation3 + $0x2ec] ss:$36 sps:$4 sm:$0xff]  }
 0x18b   : > { %v4212_v17 = vpop.f32.mrf.mxu1  ;;  %4618 = vmatprep.mubr.bf16.mxu1 %v6983_v40 }
 0x18c   : > { %v7007_v17 = vld [vmem:[#allocation3 + $0x4d8] ss:$36 sps:$4 sm:$0xff]  }
 0x18d   : > { %v7834_v50 = vpop.f32.mrf.mxu1 }
 0x18f   : > { %v4215_v45 = vpop.f32.mrf.mxu1 }
 0x190   : > { %4732 = vmatmul.mubr.bf16.gmra.mxu0 %v6967_v42  ;;  %v7013_v42 = vld [vmem:[#allocation3 + $0x140] ss:$36 sps:$4 sm:$0xff]  }
 0x191   : > { %4739 = vmatprep.mubr.bf16.mxu0 %v6971_v43  ;;  %v7836_v35 = vpop.f32.mrf.mxu1 }
 0x192   : > { %4619 = vmatmul.mubr.bf16.gmra.mxu1 %v6981_v44 }
 0x193   : > { %v4220_v47 = vpop.f32.mrf.mxu1  ;;  %4626 = vmatprep.mubr.bf16.mxu1 %v6989_v46 }
 0x194   : > { %v6997_v47 = vld [vmem:[#allocation3 + $0x2e8] ss:$36 sps:$4 sm:$0xff]  }
 0x195   : > { %v7838_v53 = vpop.f32.mrf.mxu1 }
 0x197   : > { %v4223_v59 = vpop.f32.mrf.mxu1 }
 0x198   : > { %v4339_v61 = vpop.f32.mrf.mxu0  ;;  %4740 = vmatmul.mubr.bf16.gmra.mxu0 %v6973_v16 }
 0x199   : > { %v7841_v62 = vadd.f32 %v4339_v61, %v7794_v31  ;;  %4747 = vmatprep.mubr.bf16.mxu0 %v6978_v52  ;;  %v7014_v61 = vld [vmem:[#allocation3 + $0x188] ss:$36 sps:$4 sm:$0xff]  }
 0x19a   : > { %v4341_v63 = vpop.f32.mrf.mxu0  ;;  %v7843_v5 = vpop.f32.mrf.mxu1  ;;  %4627 = vmatmul.mubr.bf16.gmra.mxu1 %v6987_v55  ;;  %v7006_v55 = vld [vmem:[#allocation3 + $0x334] ss:$36 sps:$4 sm:$0xff]  }
 0x19b   : > { %4634 = vmatprep.mubr.bf16.mxu1 %v6996_v60  ;;  %v7018_v63 = vld [vmem:[#allocation3 + $0x1d0] ss:$36 sps:$4 sm:$0xff]  }
 0x19c   : > { %v4342_v7 = vpop.f32.mrf.mxu0  ;;  %v4228_v56 = vpop.f32.mrf.mxu1 }
 0x19d   : > { %v7846_v12 = vadd.f32 %v4342_v7, %v7796_v49 }
 0x19e   : > { %v4344_v1 = vpop.f32.mrf.mxu0  ;;  %v7848_v9 = vpop.f32.mrf.mxu1 }
 0x19f   : > { %v7004_v1 = vld [vmem:[#allocation3 + $0x330] ss:$36 sps:$4 sm:$0xff]  }
 0x1a0   : > { %v4347_v31 = vpop.f32.mrf.mxu0  ;;  %4748 = vmatmul.mubr.bf16.gmra.mxu0 %v6980_v51  ;;  %v4231_v27 = vpop.f32.mrf.mxu1 }
 0x1a1   : > { %v7851_v58 = vadd.f32 %v4347_v31, %v7798_v26  ;;  %4755 = vmatprep.mubr.bf16.mxu0 %v6984_v8  ;;  %v7012_v31 = vld [vmem:[#allocation3 + $0x37c] ss:$36 sps:$4 sm:$0xff]  }
 0x1a2   : > { %v4349_v2 = vpop.f32.mrf.mxu0  ;;  %v7853_v3 = vpop.f32.mrf.mxu1  ;;  %4635 = vmatmul.mubr.bf16.gmra.mxu1 %v6994_v13 }
 0x1a3   : > { %4642 = vmatprep.mubr.bf16.mxu1 %v7002_v57 }
 0x1a4   : > { %v4350_v49 = vpop.f32.mrf.mxu0  ;;  %v4236_v21 = vpop.f32.mrf.mxu1 }
 0x1a5   : > { %v7856_v22 = vadd.f32 %v4350_v49, %v7800_v11  ;;  %v7019_v49 = vld [vmem:[#allocation3 + $0x218] ss:$36 sps:$4 sm:$0xff]  }
 0x1a6   : > { %v4352_v24 = vpop.f32.mrf.mxu0  ;;  %v7858_v4 = vpop.f32.mrf.mxu1 }
 0x1a8   : > { %v4355_v26 = vpop.f32.mrf.mxu0  ;;  %4756 = vmatmul.mubr.bf16.gmra.mxu0 %v6986_v14  ;;  %v4239_v28 = vpop.f32.mrf.mxu1  ;;  %v7023_v14 = vld [vmem:[#allocation3 + $0x260] ss:$36 sps:$4 sm:$0xff]  }
 0x1a9   : > { %v7861_v29 = vadd.f32 %v4355_v26, %v7802_v38  ;;  %4763 = vmatprep.mubr.bf16.mxu0 %v6993_v23 }
 0x1aa   : > { %v4357_v20 = vpop.f32.mrf.mxu0  ;;  %v7863_v25 = vpop.f32.mrf.mxu1  ;;  %4643 = vmatmul.mubr.bf16.gmra.mxu1 %v7000_v18 }
 0x1ab   : > { %4650 = vmatprep.mubr.bf16.mxu1 %v7009_v0  ;;  %v7010_v0 = vld [vmem:[#allocation3 + $0x378] ss:$36 sps:$4 sm:$0xff]   ;;  %v7017_v20 = vld [vmem:[#allocation3 + $0x3c4] ss:$36 sps:$4 sm:$0xff]  }
 0x1ac   : > { %v4358_v11 = vpop.f32.mrf.mxu0  ;;  %v4244_v33 = vpop.f32.mrf.mxu1 }
 0x1ad   : > { %v7866_v34 = vadd.f32 %v4358_v11, %v7806_v37  ;;  %v7024_v33 = vld [vmem:[#allocation3 + $0x2a8] ss:$36 sps:$4 sm:$0xff]  }
 0x1ae   : > { %v4360_v39 = vpop.f32.mrf.mxu0  ;;  %v7868_v40 = vpop.f32.mrf.mxu1 }
 0x1b0   : > { %v4363_v38 = vpop.f32.mrf.mxu0  ;;  %4764 = vmatmul.mubr.bf16.gmra.mxu0 %v6991_v54  ;;  %v4247_v43 = vpop.f32.mrf.mxu1 }
 0x1b1   : > { %v7871_v44 = vadd.f32 %v4363_v38, %v7809_v48  ;;  %4771 = vmatprep.mubr.bf16.mxu0 %v6999_v6  ;;  %v7028_v6 = vld [vmem:[#allocation3 + $0x2f0] ss:$36 sps:$4 sm:$0xff]   ;;  %v7015_v43 = vld [vmem:[#allocation3 + $0x3c0] ss:$36 sps:$4 sm:$0xff]  }
 0x1b2   : > { %v4365_v45 = vpop.f32.mrf.mxu0  ;;  %v7873_v46 = vpop.f32.mrf.mxu1  ;;  %4651 = vmatmul.mubr.bf16.gmra.mxu1 %v7007_v17 }
 0x1b3   : > { %6620 = vmatprep.mubr.bf16.mxu1 %v7013_v42 }
 0x1b4   : > { %v4366_v37 = vpop.f32.mrf.mxu0  ;;  %v4252_v16 = vpop.f32.mrf.mxu1 }
 0x1b5   : > { %v7876_v52 = vadd.f32 %v4366_v37, %v7813_v15 }
 0x1b6   : > { %v4368_v59 = vpop.f32.mrf.mxu0  ;;  %v7878_v60 = vpop.f32.mrf.mxu1 }
 0x1b7   : > { %v7029_v59 = vld [vmem:[#allocation3 + $0x338] ss:$36 sps:$4 sm:$0xff]  }
 0x1b8   : > { %v4371_v48 = vpop.f32.mrf.mxu0  ;;  %4772 = vmatmul.mubr.bf16.gmra.mxu0 %v6997_v47  ;;  %v4255_v7 = vpop.f32.mrf.mxu1  ;;  %v7022_v47 = vld [vmem:[#allocation3 + $0x40c] ss:$36 sps:$4 sm:$0xff]  }
 0x1b9   : > { %v7881_v51 = vadd.f32 %v4371_v48, %v7817_v10  ;;  %4779 = vmatprep.mubr.bf16.mxu0 %v7006_v55 }
 0x1ba   : > { %v4373_v56 = vpop.f32.mrf.mxu0  ;;  %v7883_v8 = vpop.f32.mrf.mxu1  ;;  %6621 = vmatmul.mubr.bf16.vlgmr.msra.gmra.mxu1 %v7014_v61  ;;  %v7033_v61 = vld [vmem:[#allocation3 + $0x380] ss:$36 sps:$4 sm:$0xff]  }
 0x1bb   : > { %6624 = vmatprep.mubr.bf16.mxu1 %v7018_v63 }
 0x1bc   : > { %v4374_v15 = vpop.f32.mrf.mxu0  ;;  %v4260_v13 = vpop.f32.mrf.mxu1 }
 0x1bd   : > { %v7886_v57 = vadd.f32 %v4374_v15, %v7821_v19  ;;  %v7020_v15 = vld [vmem:[#allocation3 + $0x408] ss:$36 sps:$4 sm:$0xff]  }
 0x1be   : > { %v4376_v27 = vpop.f32.mrf.mxu0  ;;  %v7888_v2 = vpop.f32.mrf.mxu1 }
 0x1c0   : > { %v4379_v10 = vpop.f32.mrf.mxu0  ;;  %4780 = vmatmul.mubr.bf16.gmra.mxu0 %v7004_v1  ;;  %v4263_v21 = vpop.f32.mrf.mxu1 }
 0x1c1   : > { %v7891_v23 = vadd.f32 %v4379_v10, %v7825_v32  ;;  %4787 = vmatprep.mubr.bf16.mxu0 %v7012_v31  ;;  %v7027_v31 = vld [vmem:[#allocation3 + $0x454] ss:$36 sps:$4 sm:$0xff]  }
 0x1c2   : > { %v4381_v24 = vpop.f32.mrf.mxu0  ;;  %v7893_v18 = vpop.f32.mrf.mxu1  ;;  %6625 = vmatmul.mubr.bf16.gmra.mxu1 %v7019_v49  ;;  %v7038_v10 = vld [vmem:[#allocation3 + $0x410] ss:$36 sps:$4 sm:$0xff]  }
 0x1c3   : > { %6628 = vmatprep.mubr.bf16.mxu1 %v7023_v14  ;;  %v7034_v14 = vld [vmem:[#allocation3 + $0x3c8] ss:$36 sps:$4 sm:$0xff]  }
 0x1c4   : > { %v4382_v19 = vpop.f32.mrf.mxu0  ;;  %v4268_v26 = vpop.f32.mrf.mxu1 }
 0x1c5   : > { %v7896_v28 = vadd.f32 %v4382_v19, %v7829_v36  ;;  %v7025_v26 = vld [vmem:[#allocation3 + $0x450] ss:$36 sps:$4 sm:$0xff]  }
 0x1c6   : > { %v4384_v11 = vpop.f32.mrf.mxu0  ;;  %v7898_v54 = vpop.f32.mrf.mxu1 }
 0x1c8   : > { %v4387_v32 = vpop.f32.mrf.mxu0  ;;  %4788 = vmatmul.mubr.bf16.gmra.mxu0 %v7010_v0  ;;  %v4271_v39 = vpop.f32.mrf.mxu1 }
 0x1c9   : > { %v7901_v17 = vadd.f32 %v4387_v32, %v7832_v41  ;;  %4795 = vmatprep.mubr.bf16.mxu0 %v7017_v20  ;;  %v7039_v39 = vld [vmem:[#allocation3 + $0x458] ss:$36 sps:$4 sm:$0xff]  }
 0x1ca   : > { %v4389_v42 = vpop.f32.mrf.mxu0  ;;  %v7903_v38 = vpop.f32.mrf.mxu1  ;;  %6629 = vmatmul.mubr.bf16.gmra.mxu1 %v7024_v33  ;;  %v7032_v33 = vld [vmem:[#allocation3 + $0x49c] ss:$36 sps:$4 sm:$0xff]  }
 0x1cb   : > { %6632 = vmatprep.mubr.bf16.mxu1 %v7028_v6  ;;  %v7042_v42 = vld [vmem:[#allocation3 + $0x4a0] ss:$36 sps:$4 sm:$0xff]  }
 0x1cc   : > { %v4390_v36 = vpop.f32.mrf.mxu0  ;;  %v4276_v45 = vpop.f32.mrf.mxu1 }
 0x1cd   : > { %v7906_v37 = vadd.f32 %v4390_v36, %v7834_v50 }
 0x1ce   : > { %v4392_v16 = vpop.f32.mrf.mxu0  ;;  %v7908_v55 = vpop.f32.mrf.mxu1 }
 0x1cf   : > { %v7030_v16 = vld [vmem:[#allocation3 + $0x498] ss:$36 sps:$4 sm:$0xff]  }
 0x1d0   : > { %v4395_v41 = vpop.f32.mrf.mxu0  ;;  %4796 = vmatmul.mubr.bf16.gmra.mxu0 %v7015_v43  ;;  %v4279_v63 = vpop.f32.mrf.mxu1 }
 0x1d1   : > { %v7911_v48 = vadd.f32 %v4395_v41, %v7836_v35  ;;  %4803 = vmatprep.mubr.bf16.mxu0 %v7022_v47  ;;  %v7037_v41 = vld [vmem:[#allocation3 + $0x4e4] ss:$36 sps:$4 sm:$0xff]  }
 0x1d2   : > { %v4397_v7 = vpop.f32.mrf.mxu0  ;;  %v7913_v56 = vpop.f32.mrf.mxu1  ;;  %6633 = vmatmul.mubr.bf16.gmra.mxu1 %v7029_v59 }
 0x1d3   : > { %6636 = vmatprep.mubr.bf16.mxu1 %v7033_v61 }
 0x1d4   : > { %v4398_v50 = vpop.f32.mrf.mxu0  ;;  %v4284_v1 = vpop.f32.mrf.mxu1 }
 0x1d5   : > { %v7916_v13 = vadd.f32 %v4398_v50, %v7838_v53  ;;  %v7043_v50 = vld [vmem:[#allocation3 + $0x4e8] ss:$36 sps:$4 sm:$0xff]  }
 0x1d6   : > { %v4400_v27 = vpop.f32.mrf.mxu0  ;;  %v7918_v49 = vpop.f32.mrf.mxu1 }
 0x1d8   : > { %v4403_v35 = vpop.f32.mrf.mxu0  ;;  %4804 = vmatmul.mubr.bf16.gmra.mxu0 %v7020_v15  ;;  %v4287_v21 = vpop.f32.mrf.mxu1 }
 0x1d9   : > { %v7921_v24 = vadd.f32 %v4403_v35, %v7843_v5  ;;  %4811 = vmatprep.mubr.bf16.mxu0 %v7027_v31 }
 0x1da   : > { %v4405_v19 = vpop.f32.mrf.mxu0  ;;  %v7923_v0 = vpop.f32.mrf.mxu1  ;;  %6637 = vmatmul.mubr.bf16.gmra.mxu1 %v7034_v14 }
 0x1db   : > { %6640 = vmatprep.mubr.bf16.mxu1 %v7038_v10  ;;  %v7035_v10 = vld [vmem:[#allocation3 + $0x4e0] ss:$36 sps:$4 sm:$0xff]  }
 0x1dc   : > { %v4406_v53 = vpop.f32.mrf.mxu0  ;;  %v4292_v20 = vpop.f32.mrf.mxu1  ;;  %v7040_v19 = vld [vmem:[#allocation3 + $0x20] ss:$36 sps:$4 sm:$0xff]  }
 0x1dd   : > { %v7926_v11 = vadd.f32 %v4406_v53, %v7848_v9 }
 0x1de   : > { %v4408_v6 = vpop.f32.mrf.mxu0  ;;  %v7928_v32 = vpop.f32.mrf.mxu1 }
 0x1e0   : > { %v4411_v5 = vpop.f32.mrf.mxu0  ;;  %4812 = vmatmul.mubr.bf16.gmra.mxu0 %v7025_v26  ;;  %v4295_v36 = vpop.f32.mrf.mxu1 }
 0x1e1   : > { %v7931_v43 = vadd.f32 %v4411_v5, %v7853_v3  ;;  %4819 = vmatprep.mubr.bf16.mxu0 %v7032_v33  ;;  %v7041_v5 = vld [vmem:[#allocation3 + $0x68] ss:$36 sps:$4 sm:$0xff]  }
 0x1e2   : > { %v4413_v45 = vpop.f32.mrf.mxu0  ;;  %v7933_v47 = vpop.f32.mrf.mxu1  ;;  %6641 = vmatmul.mubr.bf16.gmra.mxu1 %v7039_v39 }
 0x1e3   : > { %6644 = vmatprep.mubr.bf16.mxu1 %v7042_v42 }
 0x1e4   : > { %v4414_v9 = vpop.f32.mrf.mxu0  ;;  %v4300_v59 = vpop.f32.mrf.mxu1 }
 0x1e5   : > { %v7936_v61 = vadd.f32 %v4414_v9, %v7858_v4 }
 0x1e6   : > { %v4416_v63 = vpop.f32.mrf.mxu0  ;;  %v7938_v7 = vpop.f32.mrf.mxu1 }
 0x1e8   : > { %v4419_v15 = vpop.f32.mrf.mxu0  ;;  %4820 = vmatmul.mubr.bf16.gmra.mxu0 %v7030_v16  ;;  %v4303_v3 = vpop.f32.mrf.mxu1 }
 0x1e9   : > { %v7941_v1 = vadd.f32 %v4419_v15, %v7863_v25  ;;  %4827 = vmatprep.mubr.bf16.mxu0 %v7037_v41  ;;  %v7045_v3 = vld [vmem:[#allocation3 + $0xf8] ss:$36 sps:$4 sm:$0xff]  }
 0x1ea   : > { %v4421_v31 = vpop.f32.mrf.mxu0  ;;  %v4516_v27 = vpop.f32.mrf.mxu1  ;;  %6645 = vmatmul.mubr.bf16.gmra.mxu1 %v7043_v50 }
 0x1eb   : > { %v7944_v14 = vadd.f32 %v4516_v27, %v7841_v62 }
 0x1ec   : > { %v4422_v4 = vpop.f32.mrf.mxu0  ;;  %v4518_v35 = vpop.f32.mrf.mxu1 }
 0x1ed   : > { %v7947_v21 = vadd.f32 %v4422_v4, %v7868_v40 }
 0x1ee   : > { %v4424_v53 = vpop.f32.mrf.mxu0  ;;  %v4519_v26 = vpop.f32.mrf.mxu1 }
 0x1ef   : > { %v7950_v20 = vadd.f32 %v4519_v26, %v7846_v12  ;;  %v7044_v12 = vld [vmem:[#allocation3 + $0xb0] ss:$36 sps:$4 sm:$0xff]  }
 0x1f0   : > { %v4427_v25 = vpop.f32.mrf.mxu0  ;;  %4828 = vmatmul.mubr.bf16.gmra.mxu0 %v7035_v10  ;;  %v4521_v33 = vpop.f32.mrf.mxu1 }
 0x1f1   : > { %v7953_v6 = vadd.f32 %v4427_v25, %v7873_v46  ;;  %6612 = vmatprep.mubr.bf16.mxu0 %v7040_v19 }
 0x1f2   : > { %v4429_v62 = vpop.f32.mrf.mxu0  ;;  %v4524_v39 = vpop.f32.mrf.mxu1 }
 0x1f3   : > { %v7956_v42 = vadd.f32 %v4524_v39, %v7851_v58 }
 0x1f4   : > { %v4430_v40 = vpop.f32.mrf.mxu0  ;;  %v4526_v36 = vpop.f32.mrf.mxu1 }
 0x1f5   : > { %v7959_v45 = vadd.f32 %v4430_v40, %v7878_v60 }
 0x1f6   : > { %v4432_v9 = vpop.f32.mrf.mxu0  ;;  %v4527_v16 = vpop.f32.mrf.mxu1 }
 0x1f7   : > { %v7962_v59 = vadd.f32 %v4527_v16, %v7856_v22 }
 0x1f8   : > { %v4435_v46 = vpop.f32.mrf.mxu0  ;;  %6613 = vmatmul.mubr.bf16.vlgmr.msra.gmra.mxu0 %v7041_v5  ;;  %v4529_v41 = vpop.f32.mrf.mxu1 }
 0x1f9   : > { %v7965_v63 = vadd.f32 %v4435_v46, %v7883_v8  ;;  %6616 = vmatprep.mubr.bf16.mxu0 %v7044_v12 }
 0x1fa   : > { %v4437_v58 = vpop.f32.mrf.mxu0  ;;  %v4532_v50 = vpop.f32.mrf.mxu1 }
 0x1fb   : > { %v7968_v15 = vadd.f32 %v4532_v50, %v7861_v29 }
 0x1fc   : > { %v4438_v60 = vpop.f32.mrf.mxu0  ;;  %v4534_v31 = vpop.f32.mrf.mxu1 }
 0x1fd   : > { %v7971_v27 = vadd.f32 %v4438_v60, %v7888_v2 }
 0x1fe   : > { %v4440_v22 = vpop.f32.mrf.mxu0  ;;  %v4535_v4 = vpop.f32.mrf.mxu1 }
 0x1ff   : > { %v7974_v10 = vadd.f32 %v4535_v4, %v7866_v34 }
 0x200   : > { %v4443_v35 = vpop.f32.mrf.mxu0  ;;  %6617 = vmatmul.mubr.bf16.gmra.mxu0 %v7045_v3  ;;  %v4537_v8 = vpop.f32.mrf.mxu1 }
 0x201   : > { %v7977_v19 = vadd.f32 %v4443_v35, %v7893_v18 }
 0x202   : > { %v4445_v53 = vpop.f32.mrf.mxu0  ;;  %v4540_v29 = vpop.f32.mrf.mxu1 }
 0x203   : > { %v7980_v26 = vadd.f32 %v4540_v29, %v7871_v44 }
 0x204   : > { %v4446_v25 = vpop.f32.mrf.mxu0  ;;  %v4542_v33 = vpop.f32.mrf.mxu1 }
 0x205   : > { %v7983_v2 = vadd.f32 %v4446_v25, %v7898_v54 }
 0x206   : > { %v4448_v62 = vpop.f32.mrf.mxu0  ;;  %v4543_v39 = vpop.f32.mrf.mxu1 }
 0x207   : > { %v7986_v34 = vadd.f32 %v4543_v39, %v7876_v52 }
 0x208   : > { %v4451_v40 = vpop.f32.mrf.mxu0  ;;  %v4545_v5 = vpop.f32.mrf.mxu1 }
 0x209   : > { %v7989_v18 = vadd.f32 %v4451_v40, %v7903_v38 }
 0x20a   : > { %v4453_v36 = vpop.f32.mrf.mxu0  ;;  %v4548_v12 = vpop.f32.mrf.mxu1 }
 0x20b   : > { %v7992_v44 = vadd.f32 %v4548_v12, %v7881_v51 }
 0x20c   : > { %v4454_v9 = vpop.f32.mrf.mxu0  ;;  %v4550_v16 = vpop.f32.mrf.mxu1 }
 0x20d   : > { %v7995_v54 = vadd.f32 %v4454_v9, %v7908_v55 }
 0x20e   : > { %v4456_v46 = vpop.f32.mrf.mxu0  ;;  %v4551_v41 = vpop.f32.mrf.mxu1 }
 0x20f   : > { %v7998_v52 = vadd.f32 %v4551_v41, %v7886_v57 }
 0x210   : > { %v4459_v58 = vpop.f32.mrf.mxu0  ;;  %v4553_v50 = vpop.f32.mrf.mxu1 }
 0x211   : > { %v8001_v38 = vadd.f32 %v4459_v58, %v7913_v56 }
 0x212   : > { %v4461_v60 = vpop.f32.mrf.mxu0  ;;  %v4556_v3 = vpop.f32.mrf.mxu1 }
 0x213   : > { %v8004_v51 = vadd.f32 %v4556_v3, %v7891_v23 }
 0x214   : > { %v4462_v31 = vpop.f32.mrf.mxu0  ;;  %v4558_v22 = vpop.f32.mrf.mxu1 }
 0x215   : > { %v8007_v55 = vadd.f32 %v4462_v31, %v7918_v49 }
 0x216   : > { %v4464_v4 = vpop.f32.mrf.mxu0  ;;  %v4559_v35 = vpop.f32.mrf.mxu1 }
 0x217   : > { %v8010_v57 = vadd.f32 %v4559_v35, %v7896_v28 }
 0x218   : > { %v4467_v8 = vpop.f32.mrf.mxu0  ;;  %v4561_v53 = vpop.f32.mrf.mxu1 }
 0x219   : > { %v8013_v56 = vadd.f32 %v4467_v8, %v7923_v0 }
 0x21a   : > { %v4469_v29 = vpop.f32.mrf.mxu0  ;;  %v4564_v25 = vpop.f32.mrf.mxu1 }
 0x21b   : > { %v8016_v23 = vadd.f32 %v4564_v25, %v7901_v17 }
 0x21c   : > { %v4470_v33 = vpop.f32.mrf.mxu0  ;;  %v4566_v62 = vpop.f32.mrf.mxu1 }
 0x21d   : > { %v8019_v49 = vadd.f32 %v4470_v33, %v7928_v32 }
 0x21e   : > { %v4472_v39 = vpop.f32.mrf.mxu0  ;;  %v4567_v40 = vpop.f32.mrf.mxu1 }
 0x21f   : > { %v8022_v28 = vadd.f32 %v4567_v40, %v7906_v37 }
 0x220   : > { %v4475_v5 = vpop.f32.mrf.mxu0  ;;  %v4569_v36 = vpop.f32.mrf.mxu1 }
 0x221   : > { %v8025_v0 = vadd.f32 %v4475_v5, %v7933_v47 }
 0x222   : > { %v4477_v12 = vpop.f32.mrf.mxu0  ;;  %v4572_v9 = vpop.f32.mrf.mxu1 }
 0x223   : > { %v8028_v17 = vadd.f32 %v4572_v9, %v7911_v48 }
 0x224   : > { %v4478_v16 = vpop.f32.mrf.mxu0  ;;  %v4574_v46 = vpop.f32.mrf.mxu1 }
 0x225   : > { %v8031_v32 = vadd.f32 %v4478_v16, %v7938_v7 }
 0x226   : > { %v4480_v41 = vpop.f32.mrf.mxu0  ;;  %v4575_v58 = vpop.f32.mrf.mxu1 }
 0x227   : > { %v8034_v37 = vadd.f32 %v4575_v58, %v7916_v13 }
 0x228   : > { %v4693_v50 = vpop.f32.mrf.mxu0  ;;  %v4577_v60 = vpop.f32.mrf.mxu1 }
 0x229   : > { %v8037_v47 = vadd.f32 %v4693_v50, %v7944_v14 }
 0x22a   : > { %v4695_v3 = vpop.f32.mrf.mxu0  ;;  %v4580_v31 = vpop.f32.mrf.mxu1 }
 0x22b   : > { %v8040_v48 = vadd.f32 %v4580_v31, %v7921_v24 }
 0x22c   : > { %v4696_v22 = vpop.f32.mrf.mxu0  ;;  %v4582_v4 = vpop.f32.mrf.mxu1 }
 0x22d   : > { %v8043_v7 = vadd.f32 %v4696_v22, %v7950_v20 }
 0x22e   : > { %v4698_v35 = vpop.f32.mrf.mxu0  ;;  %v4583_v8 = vpop.f32.mrf.mxu1 }
 0x22f   : > { %8563 = vst [vmem:[#allocation15_spill] sm:$0xff] %v8043_v7  ;;  %v8046_v13 = vadd.f32 %v4583_v8, %v7926_v11 }
 0x230   : > { %v4701_v53 = vpop.f32.mrf.mxu0  ;;  %v4585_v29 = vpop.f32.mrf.mxu1 }
 0x231   : > { %v8049_v14 = vadd.f32 %v4701_v53, %v7956_v42 }
 0x232   : > { %v4703_v25 = vpop.f32.mrf.mxu0  ;;  %v4588_v33 = vpop.f32.mrf.mxu1 }
 0x233   : > { %v8052_v24 = vadd.f32 %v4588_v33, %v7931_v43 }
 0x234   : > { %v4704_v62 = vpop.f32.mrf.mxu0  ;;  %v4590_v39 = vpop.f32.mrf.mxu1 }
 0x235   : > { %v8055_v20 = vadd.f32 %v4704_v62, %v7962_v59 }
 0x236   : > { %v4706_v40 = vpop.f32.mrf.mxu0  ;;  %v4591_v5 = vpop.f32.mrf.mxu1 }
 0x237   : > { %8564 = vst [vmem:[#allocation16_spill] sm:$0xff] %v8055_v20  ;;  %v8058_v11 = vadd.f32 %v4591_v5, %v7936_v61 }
 0x238   : > { %v4709_v36 = vpop.f32.mrf.mxu0  ;;  %v4593_v12 = vpop.f32.mrf.mxu1 }
 0x239   : > { %v8061_v42 = vadd.f32 %v4709_v36, %v7968_v15 }
 0x23a   : > { %v4711_v9 = vpop.f32.mrf.mxu0  ;;  %v4596_v16 = vpop.f32.mrf.mxu1 }
 0x23b   : > { %8565 = vst [vmem:[#allocation17_spill] sm:$0xff] %v8061_v42  ;;  %v8064_v43 = vadd.f32 %v4596_v16, %v7941_v1 }
 0x23c   : > { %v4712_v46 = vpop.f32.mrf.mxu0  ;;  %v4598_v41 = vpop.f32.mrf.mxu1 }
 0x23d   : > { %v8067_v59 = vadd.f32 %v4712_v46, %v7974_v10 }
 0x23e   : > { %v4714_v58 = vpop.f32.mrf.mxu0  ;;  %v4599_v50 = vpop.f32.mrf.mxu1 }
 0x23f   : > { %8566 = vst [vmem:[#allocation18_spill] sm:$0xff] %v8067_v59  ;;  %v8070_v61 = vadd.f32 %v4599_v50, %v7947_v21 }
 0x240   : > { %v4717_v60 = vpop.f32.mrf.mxu0  ;;  %v4601_v3 = vpop.f32.mrf.mxu1 }
 0x241   : > { %v8073_v15 = vadd.f32 %v4717_v60, %v7980_v26  ;;  %v523_v26 = vld [vmem:[%s8544_s4] sm:$0x1] }
 0x242   : > { %v4719_v31 = vpop.f32.mrf.mxu0  ;;  %v4604_v22 = vpop.f32.mrf.mxu1  ;;  %v591_v40 = vadd.f32 %v7792_v30, %v523_v26 }
 0x243   : > { %8567 = vst [vmem:[#allocation19_spill] sm:$0xff] %v8073_v15  ;;  %v8076_v1 = vadd.f32 %v4604_v22, %v7953_v6 }
 0x244   : > { %v4720_v4 = vpop.f32.mrf.mxu0  ;;  %v4606_v35 = vpop.f32.mrf.mxu1  ;;  %v5595_v16 = vmul.f32 -1.442695, %v591_v40 }
 0x245   : > { %v8079_v10 = vadd.f32 %v4720_v4, %v7986_v34 }
 0x246   : > { %v4722_v8 = vpop.f32.mrf.mxu0  ;;  %v4607_v53 = vpop.f32.mrf.mxu1  ;;  %7046 = vpow2.f32 %v5595_v16 }
 0x247   : > { %8568 = vst [vmem:[#allocation20_spill] sm:$0xff] %v8079_v10  ;;  %v8082_v21 = vadd.f32 %v4607_v53, %v7959_v45 }
 0x248   : > { %v8084_v29 = vpop.f32.mrf.mxu0  ;;  %v4609_v25 = vpop.f32.mrf.mxu1 }
 0x24a   : > { %v4727_v33 = vpop.f32.mrf.mxu0  ;;  %v4612_v6 = vpop.f32.mrf.mxu1 }
 0x24b   : > { %v8090_v62 = vadd.f32 %v4612_v6, %v7965_v63 }
 0x24c   : > { %v8092_v39 = vpop.f32.mrf.mxu0  ;;  %v4614_v34 = vpop.f32.mrf.mxu1 }
 0x24d   : > { %v4729_v7 = vadd.f32 %v8092_v39, %v7998_v52 }
 0x24e   : > { %v4730_v5 = vpop.f32.mrf.mxu0  ;;  %v4615_v45 = vpop.f32.mrf.mxu1 }
 0x24f   : > { %v8096_v36 = vadd.f32 %v4615_v45, %v7971_v27 }
 0x250   : > { %v4733_v12 = vpop.f32.mrf.mxu0  ;;  %v4617_v9 = vpop.f32.mrf.mxu1 }
 0x252   : > { %v4735_v46 = vpop.f32.mrf.mxu0  ;;  %v4620_v41 = vpop.f32.mrf.mxu1 }
 0x253   : > { %v8099_v58 = vadd.f32 %v4620_v41, %v7977_v19 }
 0x254   : > { %v4736_v63 = vpop.f32.mrf.mxu0  ;;  %v4622_v50 = vpop.f32.mrf.mxu1 }
 0x256   : > { %v4738_v60 = vpop.f32.mrf.mxu0  ;;  %v4623_v3 = vpop.f32.mrf.mxu1 }
 0x257   : > { %v8102_v30 = vadd.f32 %v4623_v3, %v7983_v2  ;;  %v7047_v2 = vpop.eup %7046 }
 0x258   : > { %v8104_v31 = vpop.f32.mrf.mxu0  ;;  %v4625_v27 = vpop.f32.mrf.mxu1  ;;  %v597_v9 = vadd.f32 1.0, %v7047_v2 }
 0x259   : > { %v5062_v27 = vlaneseq  ;;  %v4742_v52 = vadd.f32 %v8104_v31, %v8016_v23 }
 0x25a   : > { %v4743_v22 = vpop.f32.mrf.mxu0  ;;  %v4628_v4 = vpop.f32.mrf.mxu1  ;;  %7048 = vrcp.f32 %v597_v9 }
 0x25b   : > { %v8107_v35 = vadd.f32 %v4628_v4, %v7989_v18 }
 0x25c   : > { %v8109_v8 = vpop.f32.mrf.mxu0  ;;  %v4630_v19 = vpop.f32.mrf.mxu1 }
 0x25d   : > { %v4745_v23 = vadd.f32 %v8109_v8, %v8022_v28  ;;  %v5192_v8 = vld [vmem:[%s7512_s15 + $0x50] sm:$0xff] }
 0x25e   : > { %v4746_v53 = vpop.f32.mrf.mxu0  ;;  %v4631_v25 = vpop.f32.mrf.mxu1 }
 0x25f   : > { %v8112_v26 = vadd.f32 %v4631_v25, %v7995_v54  ;;  %v5063_v25 = vshrl.u32 %v5062_v27, 7 }
 0x260   : > { %v4749_v33 = vpop.f32.mrf.mxu0  ;;  %v4633_v6 = vpop.f32.mrf.mxu1 }
 0x261   : > { %v5064_v9 = vsub.s32 0, %v5063_v25  ;;  %v5167_v25 = vld [vmem:[%s7512_s15 + $0x48] sm:$0xff] }
 0x262   : > { %v4751_v34 = vpop.f32.mrf.mxu0  ;;  %v8114_v40 = vpop.f32.mrf.mxu1 }
 0x264   : > { %v8116_v5 = vpop.f32.mrf.mxu0  ;;  %v4638_v45 = vpop.f32.mrf.mxu1 }
 0x266   : > { %v4754_v18 = vpop.f32.mrf.mxu0  ;;  %v8118_v16 = vpop.f32.mrf.mxu1 }
 0x267   : > { %v7049_v18 = vpop.eup %7048 }
 0x268   : > { %v8120_v46 = vpop.f32.mrf.mxu0  ;;  %v4641_v41 = vpop.f32.mrf.mxu1  ;;  %v8136_v59 = vrot.slane %v7049_v18, %v5064_v9  ;;  %v4737_v9 = vadd.f32 %v4736_v63, %v8010_v57  ;;  %v4750_v57 = vadd.f32 %v4749_v33, %v8028_v17  ;;  %v4753_v17 = vadd.f32 %v8116_v5, %v8034_v37 }
 0x269   : > { %v4758_v28 = vadd.f32 %v8120_v46, %v8040_v48 }
 0x26a   : > { %v4759_v50 = vpop.f32.mrf.mxu0  ;;  %v8122_v54 = vpop.f32.mrf.mxu1 }
 0x26c   : > { %v8124_v60 = vpop.f32.mrf.mxu0  ;;  %v4646_v3 = vpop.f32.mrf.mxu1 }
 0x26e   : > { %v4762_v22 = vpop.f32.mrf.mxu0  ;;  %v8126_v4 = vpop.f32.mrf.mxu1 }
 0x270   : > { %v4765_v19 = vpop.f32.mrf.mxu0  ;;  %v4649_v53 = vpop.f32.mrf.mxu1 }
 0x271   : > { %v4734_v53 = vadd.f32 %v4733_v12, %v8004_v51  ;;  %v5171_v12 = vmul.f32 %v5167_v25, %v8136_v59  ;;  %v4766_v5 = vadd.f32 %v4765_v19, %v8052_v24 }
 0x272   : > { %v4767_v6 = vpop.f32.mrf.mxu0  ;;  %v8128_v2 = vpop.f32.mrf.mxu1 }
 0x273   : > { %v8142_v6 = vld [vmem:[%s8542_s2] ss:$0 sm:$0xff] }
 0x274   : > { %v8130_v34 = vpop.f32.mrf.mxu0  ;;  %v4654_v45 = vpop.f32.mrf.mxu1 }
 0x275   : > { %v4726_v45 = vadd.f32 %v8084_v29, %v7992_v44  ;;  %v4769_v19 = vadd.f32 %v8130_v34, %v8058_v11 }
 0x276   : > { %v4770_v41 = vpop.f32.mrf.mxu0  ;;  %v8132_v50 = vpop.f32.mrf.mxu1 }
 0x278   : > { %v8134_v3 = vpop.f32.mrf.mxu0  ;;  %v4657_v22 = vpop.f32.mrf.mxu1 }
 0x27a   : > { %v4775_v27 = vpop.f32.mrf.mxu0  ;;  %v6622_v10 = vpop.f32.mrf.mxu1 }
 0x27b   : > { %v4911_v41 = vadd.f32 %v6622_v10, %v4734_v53  ;;  %v5166_v10 = vld [vmem:[%s7512_s15 + $0x40] sm:$0xff] }
 0x27c   : > { %v8147_v42 = vpop.f32.mrf.mxu0  ;;  %v4902_v22 = vpop.f32.mrf.mxu1 }
 0x27d   : > { %v5169_v51 = vadd.f32 %v8142_v6, %v4911_v41  ;;  %v4903_v18 = vadd.f32 %v4902_v22, %v4726_v45  ;;  %v5170_v41 = vmul.f32 %v5166_v10, %v8136_v59 }
 0x27e   : > { %v4778_v27 = vpop.f32.mrf.mxu0  ;;  %v6623_v15 = vpop.f32.mrf.mxu1 }
 0x27f   : > { %v8154_v20 = vadd.f32 %v5171_v12, %v5169_v51  ;;  %5021 = vst [vmem:[#allocation4 + $0x40] sm:$0xff] %v4903_v18  ;;  %v4914_v44 = vadd.f32 %v6623_v15, %v4737_v9 }
 0x280   : > { %v8157_v29 = vpop.f32.mrf.mxu0  ;;  %v4905_v53 = vpop.f32.mrf.mxu1 }
 0x281   : > { %v6164_v63 = vmul.f32 -1.442695, %v8154_v20  ;;  %5024 = vst [vmem:[#allocation4 + $0x58] sm:$0xff] %v4914_v44  ;;  %v4906_v25 = vadd.f32 %v4905_v53, %v4729_v7 }
 0x282   : > { %v4783_v45 = vpop.f32.mrf.mxu0  ;;  %v6626_v22 = vpop.f32.mrf.mxu1 }
 0x283   : > { %7050 = vpow2.f32 %v6164_v63  ;;  %v5168_v15 = vadd.f32 %v8142_v6, %v4906_v25  ;;  %v4927_v39 = vadd.f32 %v6626_v22, %v4750_v57  ;;  %v5270_v63 = vld [vmem:[%s7512_s15 + $0x80] sm:$0xff]  ;;  %v5219_v25 = vld [vmem:[%s7512_s15 + $0x68] sm:$0xff]  ;;  %v5193_v22 = vld [vmem:[%s7512_s15 + $0x58] sm:$0xff] }
 0x284   : > { %v8165_v9 = vpop.f32.mrf.mxu0  ;;  %v4918_v51 = vpop.f32.mrf.mxu1 }
 0x285   : > { %v8169_v33 = vadd.f32 %v5170_v41, %v5168_v15  ;;  %5027 = vst [vmem:[#allocation4 + $0x70] sm:$0xff] %v4927_v39  ;;  %v4919_v7 = vadd.f32 %v4918_v51, %v4742_v52  ;;  %v5218_v52 = vld [vmem:[%s7512_s15 + $0x60] sm:$0xff]  ;;  %v5274_v39 = vmul.f32 %v5270_v63, %v8136_v59 }
 0x286   : > { %v4786_v12 = vpop.f32.mrf.mxu0  ;;  %v6627_v18 = vpop.f32.mrf.mxu1 }
 0x287   : > { %v6163_v31 = vmul.f32 -1.442695, %v8169_v33  ;;  %5025 = vst [vmem:[#allocation4 + $0x60] sm:$0xff] %v4919_v7  ;;  %v4930_v27 = vadd.f32 %v6627_v18, %v4753_v17  ;;  %v5244_v17 = vld [vmem:[%s7512_s15 + $0x70] sm:$0xff]  ;;  %v5271_v7 = vld [vmem:[%s7512_s15 + $0x88] sm:$0xff]  ;;  %v5196_v12 = vmul.f32 %v5192_v8, %v8136_v59  ;;  %v5223_v18 = vmul.f32 %v5219_v25, %v8136_v59 }
 0x288   : > { %v8174_v44 = vpop.f32.mrf.mxu0  ;;  %v4921_v37 = vpop.f32.mrf.mxu1  ;;  %v5248_v63 = vmul.f32 %v5244_v17, %v8136_v59  ;;  %v4774_v25 = vadd.f32 %v8134_v3, %v8064_v43 }
 0x289   : > { %7052 = vpow2.f32 %v6163_v31  ;;  %5028 = vst [vmem:[#allocation4 + $0x78] sm:$0xff] %v4930_v27  ;;  %v4922_v10 = vadd.f32 %v4921_v37, %v4745_v23  ;;  %v5197_v27 = vmul.f32 %v5193_v22, %v8136_v59 }
 0x28a   : > { %v4791_v53 = vpop.f32.mrf.mxu0  ;;  %v6630_v57 = vpop.f32.mrf.mxu1 }
 0x28b   : > { %5026 = vst [vmem:[#allocation4 + $0x68] sm:$0xff] %v4922_v10  ;;  %v4943_v45 = vadd.f32 %v6630_v57, %v4766_v5  ;;  %v4761_v5 = vadd.f32 %v8124_v60, %v8046_v13  ;;  %v5222_v57 = vmul.f32 %v5218_v52, %v8136_v59  ;;  %v4782_v13 = vadd.f32 %v8157_v29, %v8076_v1 }
 0x28c   : > { %v8182_v41 = vpop.f32.mrf.mxu0  ;;  %v4934_v24 = vpop.f32.mrf.mxu1 }
 0x28d   : > { %v5272_v15 = vadd.f32 %v8142_v6, %v4943_v45  ;;  %v4935_v51 = vadd.f32 %v4934_v24, %v4758_v28  ;;  %v5275_v28 = vmul.f32 %v5271_v7, %v8136_v59 }
 0x28e   : > { %v4794_v48 = vpop.f32.mrf.mxu0  ;;  %v5190_v46 = vld [vmem:[#allocation4 + $0x5a] sm:$0xff]  ;;  %v6631_v23 = vpop.f32.mrf.mxu1 }
 0x28f   : > { %v5194_v31 = vadd.f32 %v8142_v6, %v5190_v46  ;;  %v8196_v11 = vadd.f32 %v5274_v39, %v5272_v15  ;;  %5029 = vst [vmem:[#allocation4 + $0x80] sm:$0xff] %v4935_v51  ;;  %v4946_v34 = vadd.f32 %v6631_v23, %v4769_v19  ;;  %v4777_v23 = vadd.f32 %v8147_v42, %v8070_v61 }
 0x290   : > { %v7051_v37 = vpop.eup %7050  ;;  %v4797_v10 = vpop.f32.mrf.mxu0  ;;  %v5217_v53 = vld [vmem:[#allocation4 + $0x74] sm:$0xff] }
 0x291   : > { %v4937_v8 = vpop.f32.mrf.mxu1  ;;  %v5181_v45 = vadd.f32 1.0, %v7051_v37  ;;  %v8205_v22 = vadd.f32 %v5196_v12, %v5194_v31  ;;  %v5221_v24 = vadd.f32 %v8142_v6, %v5217_v53  ;;  %v6171_v52 = vmul.f32 -1.442695, %v8196_v11 }
 0x292   : > { %v4799_v60 = vpop.f32.mrf.mxu0  ;;  %v5191_v19 = vld [vmem:[#allocation4 + $0x62] sm:$0xff]  ;;  %v5216_v15 = vld [vmem:[#allocation4 + $0x6c] sm:$0xff]  ;;  %v5273_v39 = vadd.f32 %v8142_v6, %v4946_v34  ;;  %v4938_v51 = vadd.f32 %v4937_v8, %v4761_v5  ;;  %v4785_v37 = vadd.f32 %v8165_v9, %v8082_v21 }
 0x293   : > { %v6634_v17 = vpop.f32.mrf.mxu1  ;;  %7054 = vrcp.f32 %v5181_v45  ;;  %v6165_v43 = vmul.f32 -1.442695, %v8205_v22  ;;  %v8213_v3 = vadd.f32 %v5223_v18, %v5221_v24  ;;  %v5195_v7 = vadd.f32 %v8142_v6, %v5191_v19  ;;  %v5245_v19 = vld [vmem:[%s7512_s15 + $0x78] sm:$0xff] }
 0x294   : > { %v4800_v48 = vpop.f32.mrf.mxu0  ;;  %v5220_v46 = vadd.f32 %v8142_v6, %v5216_v15  ;;  %7056 = vpow2.f32 %v6171_v52  ;;  %v8217_v1 = vadd.f32 %v5275_v28, %v5273_v39  ;;  %5030 = vst [vmem:[#allocation4 + $0x88] sm:$0xff] %v4938_v51  ;;  %v4959_v29 = vadd.f32 %v6634_v17, %v4782_v13  ;;  %v5322_v15 = vld [vmem:[%s7512_s15 + $0xa0] sm:$0xff]  ;;  %v5296_v51 = vld [vmem:[%s7512_s15 + $0x90] sm:$0xff]  ;;  %v5297_v17 = vld [vmem:[%s7512_s15 + $0x98] sm:$0xff] }
 0x295   : > { %v4950_v12 = vpop.f32.mrf.mxu1  ;;  %7058 = vpow2.f32 %v6165_v43  ;;  %v6168_v31 = vmul.f32 -1.442695, %v8213_v3  ;;  %v8222_v34 = vadd.f32 %v5197_v27, %v5195_v7  ;;  %v4790_v7 = vadd.f32 %v8174_v44, %v8090_v62  ;;  %v5349_v62 = vld [vmem:[%s7512_s15 + $0xb8] sm:$0xff] }
 0x296   : > { %v7053_v18 = vpop.eup %7052  ;;  %v4802_v5 = vpop.f32.mrf.mxu0  ;;  %v8226_v53 = vadd.f32 %v5222_v57, %v5220_v46  ;;  %v5242_v28 = vld [vmem:[#allocation4 + $0x7e] sm:$0xff]  ;;  %v6172_v8 = vmul.f32 -1.442695, %v8217_v1  ;;  %5035 = vst [vmem:[#allocation4 + $0xb0] sm:$0xff] %v4959_v29  ;;  %v4951_v45 = vadd.f32 %v4950_v12, %v4774_v25  ;;  %v4798_v25 = vadd.f32 %v4797_v10, %v8099_v58  ;;  %v5323_v46 = vld [vmem:[%s7512_s15 + $0xa8] sm:$0xff] }
 0x297   : > { %v6635_v42 = vpop.f32.mrf.mxu1  ;;  %v5180_v61 = vadd.f32 1.0, %v7053_v18  ;;  %7060 = vpow2.f32 %v6168_v31  ;;  %v6166_v27 = vmul.f32 -1.442695, %v8222_v34  ;;  %v5246_v24 = vadd.f32 %v8142_v6, %v5242_v28  ;;  %v5374_v29 = vld [vmem:[%s7512_s15 + $0xc0] sm:$0xff]  ;;  %v5348_v5 = vld [vmem:[%s7512_s15 + $0xb0] sm:$0xff] }
 0x298   : > { %v8231_v13 = vpop.f32.mrf.mxu0  ;;  %v6167_v21 = vmul.f32 -1.442695, %v8226_v53  ;;  %7062 = vpow2.f32 %v6172_v8  ;;  %5033 = vst [vmem:[#allocation4 + $0xa0] sm:$0xff] %v4951_v45  ;;  %v4962_v9 = vadd.f32 %v6635_v42, %v4785_v37  ;;  %v5249_v31 = vmul.f32 %v5245_v19, %v8136_v59  ;;  %v5375_v45 = vld [vmem:[%s7512_s15 + $0xc8] sm:$0xff] }
 0x299   : > { %v4953_v57 = vpop.f32.mrf.mxu1  ;;  %7064 = vrcp.f32 %v5180_v61  ;;  %v8235_v60 = vadd.f32 %v5248_v63, %v5246_v24  ;;  %v5326_v18 = vmul.f32 %v5322_v15, %v8136_v59  ;;  %v4801_v44 = vadd.f32 %v4800_v48, %v8102_v30 }
 0x29a   : > { %v4954_v52 = vadd.f32 %v4953_v57, %v4777_v23  ;;  %v4807_v39 = vpop.f32.mrf.mxu0  ;;  %7066 = vpow2.f32 %v6166_v27  ;;  %5036 = vst [vmem:[#allocation4 + $0xb8] sm:$0xff] %v4962_v9  ;;  %v5300_v28 = vmul.f32 %v5296_v51, %v8136_v59  ;;  %v5301_v27 = vmul.f32 %v5297_v17, %v8136_v59 }
 0x29b   : > { %v6638_v43 = vpop.f32.mrf.mxu1  ;;  %7068 = vpow2.f32 %v6167_v21  ;;  %v6169_v58 = vmul.f32 -1.442695, %v8235_v60  ;;  %v5243_v10 = vld [vmem:[#allocation4 + $0x86] sm:$0xff]  ;;  %v8260_v24 = vmul.f32 %v5323_v46, %v8136_v59  ;;  %v5378_v9 = vmul.f32 %v5374_v29, %v8136_v59 }
 0x29c   : > { %5034 = vst [vmem:[#allocation4 + $0xa8] sm:$0xff] %v4954_v52  ;;  %v4975_v63 = vadd.f32 %v6638_v43, %v4798_v25  ;;  %v8246_v12 = vpop.f32.mrf.mxu0  ;;  %v5247_v23 = vadd.f32 %v8142_v6, %v5243_v10  ;;  %v4793_v30 = vadd.f32 %v8182_v41, %v8096_v36  ;;  %v8266_v57 = vmul.f32 %v5348_v5, %v8136_v59 }
 0x29d   : > { %v4966_v37 = vpop.f32.mrf.mxu1  ;;  %7070 = vpow2.f32 %v6169_v58  ;;  %v8269_v25 = vmul.f32 %v5349_v62, %v8136_v59  ;;  %v4637_v15 = vadd.f32 %v8114_v40, %v8001_v38  ;;  %v4640_v52 = vadd.f32 %v8118_v16, %v8007_v55 }
 0x29e   : > { %5039 = vst [vmem:[#allocation4 + $0xd0] sm:$0xff] %v4975_v63  ;;  %v4967_v8 = vadd.f32 %v4966_v37, %v4790_v7  ;;  %v4810_v42 = vpop.f32.mrf.mxu0  ;;  %v8256_v61 = vadd.f32 %v5249_v31, %v5247_v23  ;;  %v8277_v36 = vmul.f32 %v5375_v45, %v8136_v59  ;;  %v4645_v43 = vadd.f32 %v8122_v54, %v8013_v56 }
 0x29f   : > { %v6639_v21 = vpop.f32.mrf.mxu1  ;;  %v4806_v62 = vadd.f32 %v8231_v13, %v8107_v35 }
 0x2a0   : > { %5037 = vst [vmem:[#allocation4 + $0xc0] sm:$0xff] %v4967_v8  ;;  %v4978_v48 = vadd.f32 %v6639_v21, %v4801_v44  ;;  %v7055_v19 = vpop.eup %7054  ;;  %v4813_v39 = vpop.f32.mrf.mxu0  ;;  %v6170_v51 = vmul.f32 -1.442695, %v8256_v61 }
 0x2a1   : > { %v4969_v17 = vpop.f32.mrf.mxu1  ;;  %v7057_v41 = vpop.eup %7056  ;;  %v5187_v7 = vmul.f32 %v7055_v19, %v8154_v20  ;;  %v5320_v58 = vld [vmem:[#allocation4 + $0xb4] sm:$0xff]  ;;  %v4814_v16 = vadd.f32 %v4813_v39, %v4637_v15 }
 0x2a2   : > { %v5376_v38 = vadd.f32 %v8142_v6, %v4978_v48  ;;  %v4970_v40 = vadd.f32 %v4969_v17, %v4793_v30  ;;  %v7059_v10 = vpop.eup %7058  ;;  %v5284_v55 = vadd.f32 1.0, %v7057_v41  ;;  %v4815_v63 = vpop.f32.mrf.mxu0  ;;  %7072 = vpow2.f32 %v6170_v51 }
 0x2a3   : > { %v5324_v46 = vadd.f32 %v8142_v6, %v5320_v58  ;;  %v5294_v29 = vld [vmem:[#allocation4 + $0xa2] sm:$0xff]  ;;  %v5295_v23 = vld [vmem:[#allocation4 + $0xaa] sm:$0xff]  ;;  %v6642_v31 = vpop.f32.mrf.mxu1  ;;  %5189 = vst [vmem:[%s8286_s12 + $0x48] sm:$0xff] %v5187_v7  ;;  %v5206_v56 = vadd.f32 1.0, %v7059_v10  ;;  %v4809_v48 = vadd.f32 %v8246_v12, %v8112_v26 }
 0x2a4   : > { %v5298_v20 = vadd.f32 %v8142_v6, %v5294_v29  ;;  %v5299_v54 = vadd.f32 %v8142_v6, %v5295_v23  ;;  %v8291_v37 = vadd.f32 %v5378_v9, %v5376_v38  ;;  %5038 = vst [vmem:[#allocation4 + $0xc8] sm:$0xff] %v4970_v40  ;;  %v7061_v5 = vpop.eup %7060  ;;  %7074 = vrcp.f32 %v5284_v55  ;;  %v4816_v44 = vpop.f32.mrf.mxu0 }
 0x2a5   : > { %v8295_v8 = vadd.f32 %v5326_v18, %v5324_v46  ;;  %v4991_v45 = vadd.f32 %v6642_v31, %v4814_v16  ;;  %v4982_v42 = vpop.f32.mrf.mxu1  ;;  %v7063_v21 = vpop.eup %7062  ;;  %7076 = vrcp.f32 %v5206_v56  ;;  %v5233_v30 = vadd.f32 1.0, %v7061_v5 }
 0x2a6   : > { %v8299_v19 = vadd.f32 %v5300_v28, %v5298_v20  ;;  %v7065_v9 = vpop.eup %7064  ;;  %v5285_v15 = vadd.f32 1.0, %v7063_v21  ;;  %v4817_v39 = vadd.f32 %v4816_v44, %v4640_v52  ;;  %v4818_v51 = vpop.f32.mrf.mxu0  ;;  %v8302_v13 = vadd.f32 %v5301_v27, %v5299_v54 }
 0x2a7   : > { %v6175_v35 = vmul.f32 -1.442695, %v8295_v8  ;;  %v5321_v18 = vld [vmem:[#allocation4 + $0xbc] sm:$0xff]  ;;  %5043 = vst [vmem:[#allocation4 + $0xf0] sm:$0xff] %v4991_v45  ;;  %v6643_v17 = vpop.f32.mrf.mxu1  ;;  %v7067_v41 = vpop.eup %7066  ;;  %v5186_v7 = vmul.f32 %v7065_v9, %v8169_v33  ;;  %7078 = vrcp.f32 %v5233_v30  ;;  %v4983_v27 = vadd.f32 %v4982_v42, %v4806_v62 }
 0x2a8   : > { %v6173_v26 = vmul.f32 -1.442695, %v8299_v19  ;;  %v5325_v12 = vadd.f32 %v8142_v6, %v5321_v18  ;;  %v7069_v28 = vpop.eup %7068  ;;  %v5207_v58 = vadd.f32 1.0, %v7067_v41  ;;  %7080 = vrcp.f32 %v5285_v15  ;;  %v4821_v52 = vpop.f32.mrf.mxu0 }
 0x2a9   : > { %v6174_v38 = vmul.f32 -1.442695, %v8302_v13  ;;  %v4985_v40 = vpop.f32.mrf.mxu1  ;;  %5188 = vst [vmem:[%s8286_s12 + $0x40] sm:$0xff] %v5186_v7  ;;  %v5232_v10 = vadd.f32 1.0, %v7069_v28  ;;  %v4822_v55 = vadd.f32 %v4821_v52, %v4645_v43  ;;  %7082 = vpow2.f32 %v6175_v35 }
 0x2aa   : > { %v8310_v16 = vadd.f32 %v8260_v24, %v5325_v12  ;;  %v7071_v33 = vpop.eup %7070  ;;  %7084 = vrcp.f32 %v5207_v58  ;;  %v4823_v63 = vpop.f32.mrf.mxu0  ;;  %v5377_v23 = vadd.f32 %v8142_v6, %v4983_v27  ;;  %v4994_v31 = vadd.f32 %v6643_v17, %v4817_v39  ;;  %v5400_v12 = vld [vmem:[%s7512_s15 + $0xd0] sm:$0xff] }
 0x2ab   : > { %v5346_v46 = vld [vmem:[#allocation4 + $0xc6] sm:$0xff]  ;;  %v5347_v29 = vld [vmem:[#allocation4 + $0xce] sm:$0xff]  ;;  %v4986_v56 = vadd.f32 %v4985_v40, %v4809_v48  ;;  %v6646_v20 = vpop.f32.mrf.mxu1  ;;  %7086 = vrcp.f32 %v5232_v10  ;;  %v5258_v54 = vadd.f32 1.0, %v7071_v33  ;;  %v6179_v24 = vmul.f32 -1.442695, %v8291_v37 }
 0x2ac   : > { %v6176_v5 = vmul.f32 -1.442695, %v8310_v16  ;;  %v5350_v43 = vadd.f32 %v8142_v6, %v5346_v46  ;;  %7088 = vpow2.f32 %v6173_v26  ;;  %v4824_v62 = vpop.f32.mrf.mxu0  ;;  %v5351_v44 = vadd.f32 %v8142_v6, %v5347_v29  ;;  %5044 = vst [vmem:[#allocation4 + $0xf8] sm:$0xff] %v4994_v31  ;;  %v5052_v10 = vld [vmem:[%s7512_s15] sm:$0xff] }
 0x2ad   : > { %v8318_v45 = vadd.f32 %v8277_v36, %v5377_v23  ;;  %5042 = vst [vmem:[#allocation4 + $0xe8] sm:$0xff] %v4986_v56  ;;  %v4998_v42 = vpop.f32.mrf.mxu1  ;;  %v4648_v21 = vadd.f32 %v8126_v4, %v8019_v49  ;;  %7090 = vrcp.f32 %v5258_v54  ;;  %v4653_v51 = vadd.f32 %v8128_v2, %v8025_v0  ;;  %v5401_v4 = vld [vmem:[%s7512_s15 + $0xd8] sm:$0xff]  ;;  %v5053_v56 = vld [vmem:[%s7512_s15 + $0x8] sm:$0xff] }
 0x2ae   : > { %v8323_v30 = vadd.f32 %v8266_v57, %v5350_v43  ;;  %v4999_v48 = vadd.f32 %v4998_v42, %v4822_v55  ;;  %7092 = vpow2.f32 %v6174_v38  ;;  %v4826_v9 = vpop.f32.mrf.mxu0  ;;  %v8326_v15 = vadd.f32 %v8269_v25, %v5351_v44 }
 0x2af   : > { %v6647_v39 = vpop.f32.mrf.mxu1  ;;  %v7073_v36 = vpop.eup %7072  ;;  %v4825_v35 = vadd.f32 %v4824_v62, %v4648_v21  ;;  %7094 = vpow2.f32 %v6176_v5  ;;  %v6180_v25 = vmul.f32 -1.442695, %v8318_v45  ;;  %v5405_v52 = vmul.f32 %v5401_v4, %v8136_v59 }
 0x2b0   : > { %v6177_v49 = vmul.f32 -1.442695, %v8323_v30  ;;  %5045 = vst [vmem:[#allocation4 + $0x100] sm:$0xff] %v4999_v48  ;;  %v5259_v57 = vadd.f32 1.0, %v7073_v36  ;;  %v4829_v18 = vpop.f32.mrf.mxu0  ;;  %7096 = vpow2.f32 %v6179_v24  ;;  %v6178_v17 = vmul.f32 -1.442695, %v8326_v15 }
 0x2b1   : > { %v5001_v41 = vpop.f32.mrf.mxu1  ;;  %v7075_v7 = vpop.eup %7074  ;;  %v4830_v26 = vadd.f32 %v4829_v18, %v4653_v51  ;;  %v4656_v38 = vadd.f32 %v8132_v50, %v8031_v32  ;;  %v5404_v32 = vmul.f32 %v5400_v12, %v8136_v59  ;;  %v5426_v50 = vld [vmem:[%s7512_s15 + $0xe0] sm:$0xff]  ;;  %v5066_v62 = vmul.f32 %v8136_v59, %v5052_v10  ;;  %v5453_v36 = vld [vmem:[%s7512_s15 + $0xf8] sm:$0xff] }
 0x2b2   : > { %7098 = vpow2.f32 %v6177_v49  ;;  %v5002_v0 = vadd.f32 %v5001_v41, %v4825_v35  ;;  %v7077_v2 = vpop.eup %7076  ;;  %v5290_v28 = vmul.f32 %v7075_v7, %v8196_v11  ;;  %v4831_v58 = vpop.f32.mrf.mxu0  ;;  %v5430_v48 = vmul.f32 %v5426_v50, %v8136_v59 }
 0x2b3   : > { %7100 = vrcp.f32 %v5259_v57  ;;  %v5212_v27 = vmul.f32 %v7077_v2, %v8205_v22  ;;  %v5399_v40 = vld [vmem:[#allocation4 + $0xf2] sm:$0xff]  ;;  %v5007_v33 = vadd.f32 %v6646_v20, %v4830_v26  ;;  %v8365_v18 = vmul.f32 %v8136_v59, %v5053_v56 }
 0x2b4   : > { %7102 = vpow2.f32 %v6178_v17  ;;  %v5398_v55 = vld [vmem:[#allocation4 + $0xea] sm:$0xff]  ;;  %5046 = vst [vmem:[#allocation4 + $0x108] sm:$0xff] %v5002_v0  ;;  %v7079_v63 = vpop.eup %7078  ;;  %5292 = vst [vmem:[%s8286_s12 + $0x80] sm:$0xff] %v5290_v28  ;;  %v4832_v11 = vpop.f32.mrf.mxu0  ;;  %v5403_v46 = vadd.f32 %v8142_v6, %v5399_v40  ;;  %v5457_v0 = vmul.f32 %v5453_v36, %v8136_v59 }
 0x2b5   : > { %7104 = vpow2.f32 %v6180_v25  ;;  %v5402_v29 = vadd.f32 %v8142_v6, %v5398_v55  ;;  %v7081_v22 = vpop.eup %7080  ;;  %5214 = vst [vmem:[%s8286_s12 + $0x50] sm:$0xff] %v5212_v27  ;;  %v5239_v23 = vmul.f32 %v7079_v63, %v8213_v3  ;;  %v4833_v31 = vadd.f32 %v4832_v11, %v4656_v38  ;;  %5047 = vst [vmem:[#allocation4 + $0x110] sm:$0xff] %v5007_v33 }
 0x2b6   : > { %v7083_v20 = vpop.eup %7082  ;;  %v5291_v54 = vmul.f32 %v7081_v22, %v8217_v1  ;;  %v4834_v5 = vpop.f32.mrf.mxu0  ;;  %v8350_v43 = vadd.f32 %v5405_v52, %v5403_v46  ;;  %v5427_v1 = vld [vmem:[%s7512_s15 + $0xe8] sm:$0xff] }
 0x2b7   : > { %v8353_v24 = vadd.f32 %v5404_v32, %v5402_v29  ;;  %v5424_v44 = vld [vmem:[#allocation4 + $0xfc] sm:$0xff]  ;;  %v7085_v42 = vpop.eup %7084  ;;  %5241 = vst [vmem:[%s8286_s12 + $0x68] sm:$0xff] %v5239_v23  ;;  %v5336_v3 = vadd.f32 1.0, %v7083_v20  ;;  %v5010_v9 = vadd.f32 %v6647_v39, %v4833_v31  ;;  %v5431_v28 = vmul.f32 %v5427_v1, %v8136_v59  ;;  %v8569_v46 = vld [vmem:[#allocation16_spill] sm:$0xff] }
 0x2b8   : > { %v5428_v21 = vadd.f32 %v8142_v6, %v5424_v44  ;;  %v7087_v51 = vpop.eup %7086  ;;  %v5213_v35 = vmul.f32 %v7085_v42, %v8222_v34  ;;  %5293 = vst [vmem:[%s8286_s12 + $0x88] sm:$0xff] %v5291_v54  ;;  %v6614_v49 = vpop.f32.mrf.mxu0  ;;  %v6182_v4 = vmul.f32 -1.442695, %v8350_v43  ;;  %v5452_v34 = vld [vmem:[%s7512_s15 + $0xf0] sm:$0xff]  ;;  %v8570_v54 = vld [vmem:[#allocation15_spill] sm:$0xff] }
 0x2b9   : > { %v6181_v57 = vmul.f32 -1.442695, %v8353_v24  ;;  %v7089_v17 = vpop.eup %7088  ;;  %v5238_v39 = vmul.f32 %v7087_v51, %v8226_v53  ;;  %7106 = vrcp.f32 %v5336_v3  ;;  %v4879_v25 = vadd.f32 %v6614_v49, %v8049_v14  ;;  %5048 = vst [vmem:[#allocation4 + $0x118] sm:$0xff] %v5010_v9  ;;  %v8571_v49 = vld [vmem:[#allocation19_spill] sm:$0xff] }
 0x2ba   : > { %v8369_v41 = vadd.f32 %v5430_v48, %v5428_v21  ;;  %v7091_v7 = vpop.eup %7090  ;;  %5215 = vst [vmem:[%s8286_s12 + $0x58] sm:$0xff] %v5213_v35  ;;  %v5310_v26 = vadd.f32 1.0, %v7089_v17  ;;  %7108 = vpow2.f32 %v6182_v4  ;;  %v4870_v12 = vpop.f32.mrf.mxu0  ;;  %v5456_v33 = vmul.f32 %v5452_v34, %v8136_v59  ;;  %v5088_v17 = vld [vmem:[%s7512_s15 + $0x10] sm:$0xff] }
 0x2bb   : > { %v5425_v2 = vld [vmem:[#allocation4 + $0x104] sm:$0xff]  ;;  %v7093_v58 = vpop.eup %7092  ;;  %5240 = vst [vmem:[%s8286_s12 + $0x60] sm:$0xff] %v5238_v39  ;;  %v5264_v53 = vmul.f32 %v7091_v7, %v8235_v60  ;;  %5015 = vst [vmem:[#allocation4 + $0x10] sm:$0xff] %v4879_v25  ;;  %v4871_v14 = vadd.f32 %v4870_v12, %v8037_v47  ;;  %7110 = vpow2.f32 %v6181_v57  ;;  %v8572_v25 = vld [vmem:[#allocation17_spill] sm:$0xff] }
 0x2bc   : > { %v6183_v52 = vmul.f32 -1.442695, %v8369_v41  ;;  %v7095_v38 = vpop.eup %7094  ;;  %v5311_v27 = vadd.f32 1.0, %v7093_v58  ;;  %7112 = vrcp.f32 %v5310_v26  ;;  %v6615_v40 = vpop.f32.mrf.mxu0  ;;  %v5429_v10 = vadd.f32 %v8142_v6, %v5425_v2  ;;  %v5450_v55 = vld [vmem:[#allocation4 + $0x10e] sm:$0xff] }
 0x2bd   : > { %v7097_v63 = vpop.eup %7096  ;;  %5266 = vst [vmem:[%s8286_s12 + $0x70] sm:$0xff] %v5264_v53  ;;  %v5337_v11 = vadd.f32 1.0, %v7095_v38  ;;  %v5060_v60 = vadd.f32 %v8142_v6, %v4871_v14  ;;  %v4882_v29 = vadd.f32 %v6615_v40, %v8569_v46  ;;  %v5454_v23 = vadd.f32 %v8142_v6, %v5450_v55 }
 0x2be   : > { %7114 = vpow2.f32 %v6183_v52  ;;  %v5388_v32 = vadd.f32 1.0, %v7097_v63  ;;  %v4873_v50 = vpop.f32.mrf.mxu0  ;;  %v8384_v22 = vadd.f32 %v5431_v28, %v5429_v10  ;;  %v8573_v28 = vld [vmem:[#allocation20_spill] sm:$0xff]  ;;  %v8574_v10 = vld [vmem:[#allocation18_spill] sm:$0xff] }
 0x2bf   : > { %v7099_v47 = vpop.eup %7098  ;;  %7116 = vrcp.f32 %v5311_v27  ;;  %v8387_v20 = vadd.f32 %v5066_v62, %v5060_v60  ;;  %5016 = vst [vmem:[#allocation4 + $0x18] sm:$0xff] %v4882_v29  ;;  %v4874_v5 = vadd.f32 %v4873_v50, %v8570_v54  ;;  %v8392_v9 = vadd.f32 %v5456_v33, %v5454_v23 }
 0x2c0   : > { %v7101_v31 = vpop.eup %7100  ;;  %7118 = vrcp.f32 %v5337_v11  ;;  %v5362_v56 = vadd.f32 1.0, %v7099_v47  ;;  %v6618_v3 = vpop.f32.mrf.mxu0  ;;  %v5451_v21 = vld [vmem:[#allocation4 + $0x116] sm:$0xff]  ;;  %v6184_v48 = vmul.f32 -1.442695, %v8384_v22 }
 0x2c1   : > { %v7103_v44 = vpop.eup %7102  ;;  %v5265_v42 = vmul.f32 %v7101_v31, %v8256_v61  ;;  %7120 = vrcp.f32 %v5388_v32  ;;  %v6155_v62 = vmul.f32 -1.442695, %v8387_v20  ;;  %v5061_v51 = vadd.f32 %v8142_v6, %v4874_v5  ;;  %v5089_v47 = vld [vmem:[%s7512_s15 + $0x18] sm:$0xff]  ;;  %v5140_v31 = vld [vmem:[%s7512_s15 + $0x30] sm:$0xff] }
 0x2c2   : > { %v7105_v36 = vpop.eup %7104  ;;  %v5363_v1 = vadd.f32 1.0, %v7103_v44  ;;  %7122 = vrcp.f32 %v5362_v56  ;;  %v4895_v4 = vadd.f32 %v6618_v3, %v8571_v49  ;;  %v5455_v61 = vadd.f32 %v8142_v6, %v5451_v21  ;;  %v4886_v57 = vpop.f32.mrf.mxu0  ;;  %v5141_v56 = vld [vmem:[%s7512_s15 + $0x38] sm:$0xff] }
 0x2c3   : > { %5267 = vst [vmem:[%s8286_s12 + $0x78] sm:$0xff] %v5265_v42  ;;  %v5389_v35 = vadd.f32 1.0, %v7105_v36  ;;  %7124 = vpow2.f32 %v6184_v48  ;;  %v8401_v39 = vadd.f32 %v8365_v18, %v5061_v51  ;;  %v4887_v34 = vadd.f32 %v4886_v57, %v8572_v25  ;;  %v5114_v48 = vld [vmem:[%s7512_s15 + $0x20] sm:$0xff]  ;;  %v5115_v36 = vld [vmem:[%s7512_s15 + $0x28] sm:$0xff] }
 0x2c4   : > { %7126 = vrcp.f32 %v5363_v1  ;;  %v6185_v7 = vmul.f32 -1.442695, %v8392_v9  ;;  %5019 = vst [vmem:[#allocation4 + $0x30] sm:$0xff] %v4895_v4  ;;  %v8405_v26 = vadd.f32 %v5457_v0, %v5455_v61  ;;  %v6619_v12 = vpop.f32.mrf.mxu0  ;;  %v5092_v18 = vmul.f32 %v5088_v17, %v8136_v59 }
 0x2c5   : > { %7128 = vrcp.f32 %v5389_v35  ;;  %v6156_v2 = vmul.f32 -1.442695, %v8401_v39  ;;  %5017 = vst [vmem:[#allocation4 + $0x20] sm:$0xff] %v4887_v34  ;;  %v4898_v58 = vadd.f32 %v6619_v12, %v8573_v28  ;;  %v5093_v21 = vmul.f32 %v5089_v47, %v8136_v59 }
 0x2c6   : > { %7130 = vpow2.f32 %v6155_v62  ;;  %v7107_v53 = vpop.eup %7106  ;;  %v5086_v14 = vld [vmem:[#allocation4 + $0x12] sm:$0xff]  ;;  %v6186_v52 = vmul.f32 -1.442695, %v8405_v26  ;;  %v4889_v38 = vpop.f32.mrf.mxu0  ;;  %v5144_v35 = vmul.f32 %v5140_v31, %v8136_v59  ;;  %v5145_v49 = vmul.f32 %v5141_v56, %v8136_v59 }
 0x2c7   : > { %7132 = vpow2.f32 %v6185_v7  ;;  %v7109_v27 = vpop.eup %7108  ;;  %v5342_v0 = vmul.f32 %v7107_v53, %v8295_v8  ;;  %v5090_v40 = vadd.f32 %v8142_v6, %v5086_v14  ;;  %5020 = vst [vmem:[#allocation4 + $0x38] sm:$0xff] %v4898_v58  ;;  %v4890_v55 = vadd.f32 %v4889_v38, %v8574_v10 }
 0x2c8   : > { %7134 = vpow2.f32 %v6156_v2  ;;  %v7111_v33 = vpop.eup %7110  ;;  %v5415_v63 = vadd.f32 1.0, %v7109_v27  ;;  %v5118_v12 = vmul.f32 %v5114_v48, %v8136_v59  ;;  %v5119_v2 = vmul.f32 %v5115_v36, %v8136_v59 }
 0x2c9   : > { %7136 = vpow2.f32 %v6186_v52  ;;  %v7113_v11 = vpop.eup %7112  ;;  %5344 = vst [vmem:[%s8286_s12 + $0xa0] sm:$0xff] %v5342_v0  ;;  %v5414_v60 = vadd.f32 1.0, %v7111_v33  ;;  %v8415_v46 = vadd.f32 %v5092_v18, %v5090_v40  ;;  %5018 = vst [vmem:[#allocation4 + $0x28] sm:$0xff] %v4890_v55 }
 0x2ca   : > { %v5316_v29 = vmul.f32 %v7113_v11, %v8299_v19  ;;  %7138 = vrcp.f32 %v5415_v63 }
 0x2cb   : > { %v7115_v8 = vpop.eup %7114  ;;  %7140 = vrcp.f32 %v5414_v60  ;;  %v6157_v50 = vmul.f32 -1.442695, %v8415_v46 }
 0x2cc   : > { %v7117_v32 = vpop.eup %7116  ;;  %v5440_v23 = vadd.f32 1.0, %v7115_v8  ;;  %5318 = vst [vmem:[%s8286_s12 + $0x90] sm:$0xff] %v5316_v29  ;;  %v5087_v44 = vld [vmem:[#allocation4 + $0x1a] sm:$0xff] }
 0x2cd   : > { %v7119_v54 = vpop.eup %7118  ;;  %v5317_v5 = vmul.f32 %v7117_v32, %v8302_v13  ;;  %7142 = vpow2.f32 %v6157_v50  ;;  %v5091_v3 = vadd.f32 %v8142_v6, %v5087_v44 }
 0x2ce   : > { %v7121_v42 = vpop.eup %7120  ;;  %v5343_v19 = vmul.f32 %v7119_v54, %v8310_v16  ;;  %7144 = vrcp.f32 %v5440_v23  ;;  %v5138_v13 = vld [vmem:[#allocation4 + $0x36] sm:$0xff]  ;;  %v5139_v51 = vld [vmem:[#allocation4 + $0x3e] sm:$0xff] }
 0x2cf   : > { %v7123_v1 = vpop.eup %7122  ;;  %5319 = vst [vmem:[%s8286_s12 + $0x98] sm:$0xff] %v5317_v5  ;;  %v5394_v62 = vmul.f32 %v7121_v42, %v8291_v37  ;;  %v8435_v61 = vadd.f32 %v5093_v21, %v5091_v3  ;;  %v5142_v57 = vadd.f32 %v8142_v6, %v5138_v13  ;;  %v5143_v17 = vadd.f32 %v8142_v6, %v5139_v51 }
 0x2d0   : > { %v7125_v16 = vpop.eup %7124  ;;  %5345 = vst [vmem:[%s8286_s12 + $0xa8] sm:$0xff] %v5343_v19  ;;  %v5368_v4 = vmul.f32 %v7123_v1, %v8323_v30  ;;  %v5112_v34 = vld [vmem:[#allocation4 + $0x24] sm:$0xff]  ;;  %v5113_v7 = vld [vmem:[#allocation4 + $0x2c] sm:$0xff] }
 0x2d1   : > { %v7127_v25 = vpop.eup %7126  ;;  %5396 = vst [vmem:[%s8286_s12 + $0xc0] sm:$0xff] %v5394_v62  ;;  %v5441_v37 = vadd.f32 1.0, %v7125_v16  ;;  %v6158_v58 = vmul.f32 -1.442695, %v8435_v61  ;;  %v8445_v53 = vadd.f32 %v5144_v35, %v5142_v57  ;;  %v8447_v14 = vadd.f32 %v5145_v49, %v5143_v17 }
 0x2d2   : > { %v7129_v28 = vpop.eup %7128  ;;  %v5369_v30 = vmul.f32 %v7127_v25, %v8326_v15  ;;  %5370 = vst [vmem:[%s8286_s12 + $0xb0] sm:$0xff] %v5368_v4  ;;  %v5116_v38 = vadd.f32 %v8142_v6, %v5112_v34  ;;  %v5117_v27 = vadd.f32 %v8142_v6, %v5113_v7 }
 0x2d3   : > { %v7131_v18 = vpop.eup %7130  ;;  %v5395_v52 = vmul.f32 %v7129_v28, %v8318_v45  ;;  %7146 = vrcp.f32 %v5441_v37  ;;  %v6161_v63 = vmul.f32 -1.442695, %v8445_v53  ;;  %v6162_v6 = vmul.f32 -1.442695, %v8447_v14 }
 0x2d4   : > { %v7133_v59 = vpop.eup %7132  ;;  %5371 = vst [vmem:[%s8286_s12 + $0xb8] sm:$0xff] %v5369_v30  ;;  %v5076_v0 = vadd.f32 1.0, %v7131_v18  ;;  %7148 = vpow2.f32 %v6158_v58  ;;  %v8454_v10 = vadd.f32 %v5118_v12, %v5116_v38  ;;  %v8456_v55 = vadd.f32 %v5119_v2, %v5117_v27 }
 0x2d5   : > { %v7135_v15 = vpop.eup %7134  ;;  %5397 = vst [vmem:[%s8286_s12 + $0xc8] sm:$0xff] %v5395_v52  ;;  %v5466_v40 = vadd.f32 1.0, %v7133_v59 }
 0x2d6   : > { %v7137_v33 = vpop.eup %7136  ;;  %7150 = vrcp.f32 %v5076_v0  ;;  %v5077_v45 = vadd.f32 1.0, %v7135_v15  ;;  %v6159_v8 = vmul.f32 -1.442695, %v8454_v10  ;;  %v6160_v32 = vmul.f32 -1.442695, %v8456_v55 }
 0x2d7   : > { %v5467_v11 = vadd.f32 1.0, %v7137_v33  ;;  %7152 = vrcp.f32 %v5466_v40  ;;  %v7139_v60 = vpop.eup %7138 }
 0x2d8   : > { %7154 = vrcp.f32 %v5077_v45  ;;  %v7141_v29 = vpop.eup %7140  ;;  %v5421_v47 = vmul.f32 %v7139_v60, %v8350_v43 }
 0x2d9   : > { %7156 = vrcp.f32 %v5467_v11  ;;  %v5420_v50 = vmul.f32 %v7141_v29, %v8353_v24 }
 0x2da   : > { %7158 = vpow2.f32 %v6161_v63  ;;  %v7143_v23 = vpop.eup %7142  ;;  %5423 = vst [vmem:[%s8286_s12 + $0xd8] sm:$0xff] %v5421_v47 }
 0x2db   : > { %7160 = vpow2.f32 %v6162_v6  ;;  %v7145_v31 = vpop.eup %7144  ;;  %5422 = vst [vmem:[%s8286_s12 + $0xd0] sm:$0xff] %v5420_v50  ;;  %v5102_v56 = vadd.f32 1.0, %v7143_v23 }
 0x2dc   : > { %7162 = vpow2.f32 %v6159_v8  ;;  %v5446_v54 = vmul.f32 %v7145_v31, %v8369_v41 }
 0x2dd   : > { %7164 = vpow2.f32 %v6160_v32 }
 0x2de   : > { %7166 = vrcp.f32 %v5102_v56  ;;  %5448 = vst [vmem:[%s8286_s12 + $0xe0] sm:$0xff] %v5446_v54 }
 0x2e0   : > { %v7147_v43 = vpop.eup %7146 }
 0x2e1   : > { %v7149_v5 = vpop.eup %7148  ;;  %v5447_v24 = vmul.f32 %v7147_v43, %v8384_v22 }
 0x2e2   : > { %v5103_v44 = vadd.f32 1.0, %v7149_v5 }
 0x2e3   : > { %v7151_v42 = vpop.eup %7150  ;;  %5449 = vst [vmem:[%s8286_s12 + $0xe8] sm:$0xff] %v5447_v24 }
 0x2e4   : > { %v7153_v19 = vpop.eup %7152  ;;  %v5082_v3 = vmul.f32 %v7151_v42, %v8387_v20  ;;  %7168 = vrcp.f32 %v5103_v44 }
 0x2e5   : > { %v7155_v21 = vpop.eup %7154  ;;  %v5472_v41 = vmul.f32 %v7153_v19, %v8392_v9 }
 0x2e6   : > { %v7157_v48 = vpop.eup %7156  ;;  %5084 = vst [vmem:[%s8286_s12] sm:$0xff] %v5082_v3  ;;  %v5083_v36 = vmul.f32 %v7155_v21, %v8401_v39 }
 0x2e7   : > { %v7159_v1 = vpop.eup %7158  ;;  %v5473_v62 = vmul.f32 %v7157_v48, %v8405_v26  ;;  %5474 = vst [vmem:[%s8286_s12 + $0xf0] sm:$0xff] %v5472_v41 }
 0x2e8   : > { %v7161_v22 = vpop.eup %7160  ;;  %5085 = vst [vmem:[%s8286_s12 + $0x8] sm:$0xff] %v5083_v36  ;;  %v5154_v13 = vadd.f32 1.0, %v7159_v1 }
 0x2e9   : > { %v7163_v51 = vpop.eup %7162  ;;  %5475 = vst [vmem:[%s8286_s12 + $0xf8] sm:$0xff] %v5473_v62  ;;  %v5155_v20 = vadd.f32 1.0, %v7161_v22 }
 0x2ea   : > { %v7165_v35 = vpop.eup %7164  ;;  %7170 = vrcp.f32 %v5154_v13  ;;  %v5128_v9 = vadd.f32 1.0, %v7163_v51 }
 0x2eb   : > { %v7167_v49 = vpop.eup %7166  ;;  %7172 = vrcp.f32 %v5155_v20  ;;  %v5129_v39 = vadd.f32 1.0, %v7165_v35 }
 0x2ec   : > { %v5108_v26 = vmul.f32 %v7167_v49, %v8415_v46  ;;  %7174 = vrcp.f32 %v5128_v9 }
 0x2ed   : > { %7176 = vrcp.f32 %v5129_v39 }
 0x2ee   : > { %5110 = vst [vmem:[%s8286_s12 + $0x10] sm:$0xff] %v5108_v26 }
 0x2f1   : > { %v7169_v16 = vpop.eup %7168 }
 0x2f2   : > { %v5109_v4 = vmul.f32 %v7169_v16, %v8435_v61 }
 0x2f4   : > { %5111 = vst [vmem:[%s8286_s12 + $0x18] sm:$0xff] %v5109_v4 }
 0x2f7   : > { %v7171_v57 = vpop.eup %7170 }
 0x2f8   : > { %v7173_v17 = vpop.eup %7172  ;;  %v5160_v25 = vmul.f32 %v7171_v57, %v8445_v53 }
 0x2f9   : > { %v7175_v37 = vpop.eup %7174  ;;  %v5161_v46 = vmul.f32 %v7173_v17, %v8447_v14 }
 0x2fa   : > { %v7177_v34 = vpop.eup %7176  ;;  %5162 = vst [vmem:[%s8286_s12 + $0x30] sm:$0xff] %v5160_v25  ;;  %v5134_v7 = vmul.f32 %v7175_v37, %v8454_v10 }
 0x2fb   : > { %5163 = vst [vmem:[%s8286_s12 + $0x38] sm:$0xff] %v5161_v46  ;;  %v5135_v61 = vmul.f32 %v7177_v34, %v8456_v55 }
 0x2fc   : > { %5136 = vst [vmem:[%s8286_s12 + $0x20] sm:$0xff] %v5134_v7 }
 0x2fd   : > { %5137 = vst [vmem:[%s8286_s12 + $0x28] sm:$0xff] %v5135_v61 }
 0x2fe   : > { %7272 = shalt.err (!%p7269_p9)
}
 0x2ff   : > { %s7273_s15 = scalar_lea.hbm %s8491_s11, 4096  ;;  %s7277_s14 = scalar_lea.hbm %s8545_s5, 8192 }
 0x300   : > { %p7274_p13 = scmp.ne.s32.totalorder %s8491_s11, %s7273_s15  ;;  %p7278_p4 = scmp.lt.s32.totalorder %s8491_s11, %s8545_s5 }
 0x301   : > { %p7279_p8 = scmp.lt.s32.totalorder %s7277_s14, %s7273_s15 }
 0x302   : > { %p7275_p5 = pnand %p7274_p13, %p8575_p10 }
 0x303   : > { %p7280_p7 = por %p7279_p8, %p7278_p4 }
 0x304   : > { %p7276_p0 = pneg %p7275_p5 }
 0x306   : > { %p7281_p11 = pnand %p7280_p7, %p7276_p0 }
 0x308   : > { %7284 = shalt.err (!%p7281_p11)
}
 0x309   : > { %s7341_s16 = smov 128   ;;  %s7342_s9 = smov 8  }
 0x30a   : > { %6674 = dma.vmem_to_hbm [thread:$0]  (%p8575_p10), %s8493_s8, 4096, %s8491_s11, %s5477_s22, %s7341_s16, %s7341_s16, %s7342_s9  }
 0x30b PF: > { %s5505_s30 = sand.u32 1, %s7315_s18   ;;  %p8576_p1 = scmp.ne.s32.totalorder %s8552_s25, 0 }
 0x30c   : > { %p8577_p2 = scmp.ge.s32.totalorder %s7327_s21, 2  ;;  %s5506_s27 = scalar_lea.sflag [#allocation7], %s5505_s30 }
 0x30e   : > { %p6688_p6 = pnand %p8577_p2, %p8576_p1 }
 0x310   : > { %p6689_p12 = pneg %p6688_p6 }
 0x312   : > { %7310 = dma.done.wait (%p6689_p12), %s5506_s27, 4096  }
 0x313   : > { %7312 = vsyncadd (%p6689_p12), %s5506_s27, 4294963200  ;;  %p19_p3 = scmp.ge.s32.totalorder %s7448_s17, 4   ;;  %s8578_s18 = smov %s7319_s19 }
 0x314   : > { %s8579_s19 = smov %s7323_s20  ;;  %s8580_s20 = smov %s7457_s28 }
 0x315   : > { %s8581_s21 = smov %s7448_s17  ;;  %21 = sbr.rel (!%p19_p3) target bundleno = 6 (0x6), region = 93 }
 0x31a   :  { %5511 = vsyncpa [#allocation6], 1 }
 0x31b   :  { %5513 = vsyncpa [#allocation6 + $0x1], 1 }
 0x31c   :  { %5514 = vsyncpa [#allocation9], 1 }
 0x31d   :  { %5515 = vsyncpa [#allocation7], 1 }
 0x31e   :  { %5517 = vsyncpa [#allocation7 + $0x1], 1 }

</bundles_post_ra>
